<compile_context>
chip_gen: v7x
topology: tpu7x:2x2x1
jax: 0.10.0
libtpu: 0.0.40
codegen_flags: <defaults>
</compile_context>

<pallas_src>
import functools

import jax
import jax.numpy as jnp
from jax.experimental import pallas as pl
from jax.experimental.pallas import tpu as pltpu


def _vmem_limit_bytes(per_step_bytes):
    # Derived from the actual per-step footprint (double-buffered tiles +
    # resident weights) with headroom; capped well under v7x's 64 MiB VMEM.
    return int(min(32 * 1024 * 1024, max(4 * 1024 * 1024, 4 * per_step_bytes)))


def _pick_tm(M, target=4096, min_steps=2):
    # Large tiles to amortize per-grid-step overhead, but keep >=2 parallel
    # steps so the axis can shard across v7x's two TensorCores.
    steps = max(min_steps, -(-M // target))
    tm = -(-M // steps)
    tm = -(-tm // 8) * 8
    return max(tm, 8)


# ----------------------------------------------------------------------------
# Kernel A: fused 1x1x1 conv_1 (+BN1+ReLU) and 1x1x1 conv_res (+BN_res)
#           as a single matmul against the concatenated weight.
# ----------------------------------------------------------------------------
def _conv1_res_kernel(C1, x_ref, w_ref, b_ref, o_ref):
    x = x_ref[...]                                            # (TM, C0) bf16
    h = jnp.dot(x, w_ref[...], preferred_element_type=jnp.float32) + b_ref[...]
    col = jax.lax.broadcasted_iota(jnp.int32, h.shape, 1)
    h = jnp.where(col < C1, jnp.maximum(h, 0.0), h)           # ReLU on conv_1 half only
    o_ref[...] = h.astype(o_ref.dtype)


def _conv1_and_res(x2d, wcat, bcat, C1, tm):
    M, C0 = x2d.shape
    Ccat = wcat.shape[1]
    per_step = 2 * tm * C0 * 2 + 2 * tm * Ccat * 2 + wcat.size * 2 + bcat.size * 4
    return pl.pallas_call(
        functools.partial(_conv1_res_kernel, C1),
        grid_spec=pltpu.PrefetchScalarGridSpec(
            num_scalar_prefetch=0,
            grid=(M // tm,),
            in_specs=[
                pl.BlockSpec((tm, C0), lambda i: (i, 0)),
                pl.BlockSpec((C0, Ccat), lambda i: (0, 0)),
                pl.BlockSpec((1, Ccat), lambda i: (0, 0)),
            ],
            out_specs=pl.BlockSpec((tm, Ccat), lambda i: (i, 0)),
        ),
        out_shape=jax.ShapeDtypeStruct((M, Ccat), jnp.bfloat16),
        compiler_params=pltpu.CompilerParams(
            dimension_semantics=("parallel",),
            vmem_limit_bytes=_vmem_limit_bytes(per_step)),
    )(x2d, wcat, bcat)


# ----------------------------------------------------------------------------
# Kernel B: direct 3x3x3 conv_2 (+BN2+ReLU) + 1x1x1 conv_3 (+BN3) + residual
#           add + final ReLU.  One wide-K matmul per output depth plane.
# ----------------------------------------------------------------------------
def _conv2_conv3_kernel(Sp, G, Wp,
                        a_ref, w2_ref, b2_ref, w3_ref, b3_ref, r_ref, o_ref):
    d = pl.program_id(1)
    # Gather the 27 (kz,ky,kx) taps of this output plane into one wide-K slab.
    # Halo/guard contamination only affects padded-ring rows that are discarded.
    cols = []
    for kz in range(3):
        plane = a_ref[d + kz]                                 # (Sg, C1) bf16
        for ky in range(3):
            for kx in range(3):
                off = G + (ky - 1) * Wp + (kx - 1)
                cols.append(plane[off:off + Sp, :])
    patch = jnp.concatenate(cols, axis=-1)                    # (Sp, 27*C1)
    y2 = jnp.dot(patch, w2_ref[...], preferred_element_type=jnp.float32) + b2_ref[...]
    y2 = jnp.maximum(y2, 0.0).astype(jnp.bfloat16)            # BN2 + ReLU
    y3 = jnp.dot(y2, w3_ref[...], preferred_element_type=jnp.float32)
    out = y3 + b3_ref[...] + r_ref[...].astype(jnp.float32)   # BN3 + residual
    o_ref[...] = jnp.maximum(out, 0.0).astype(o_ref.dtype)    # final ReLU


def _conv2_conv3(y1g, w2r, b2, w3, b3, resp, Sp, G, Wp):
    N, Dp, Sg, C1 = y1g.shape
    Do = resp.shape[1]
    K2, C2 = w2r.shape
    C3 = w3.shape[1]
    per_step = (2 * Dp * Sg * C1 * 2          # resident padded y1 volume (dbl buf)
                + K2 * C2 * 2 + C2 * C3 * 2   # resident weights
                + 2 * Sp * C3 * (2 + 4)       # res in / out planes
                + Sp * K2 * 2)                # in-kernel patch slab
    kernel = functools.partial(_conv2_conv3_kernel, Sp, G, Wp)
    return pl.pallas_call(
        kernel,
        grid_spec=pltpu.PrefetchScalarGridSpec(
            num_scalar_prefetch=0,
            grid=(N, Do),
            in_specs=[
                # full padded y1 volume of one batch: resident across the Do axis
                pl.BlockSpec((None, Dp, Sg, C1), lambda n, d: (n, 0, 0, 0)),
                pl.BlockSpec((K2, C2), lambda n, d: (0, 0)),
                pl.BlockSpec((1, C2), lambda n, d: (0, 0)),
                pl.BlockSpec((C2, C3), lambda n, d: (0, 0)),
                pl.BlockSpec((1, C3), lambda n, d: (0, 0)),
                pl.BlockSpec((None, None, Sp, C3), lambda n, d: (n, d, 0, 0)),
            ],
            out_specs=pl.BlockSpec((None, None, Sp, C3), lambda n, d: (n, d, 0, 0)),
        ),
        out_shape=jax.ShapeDtypeStruct((N, Do, Sp, C3), jnp.float32),
        compiler_params=pltpu.CompilerParams(
            dimension_semantics=("parallel", "arbitrary"),
            vmem_limit_bytes=_vmem_limit_bytes(per_step)),
    )(y1g, w2r, b2, w3, b3, resp)


# ----------------------------------------------------------------------------
# Wrapper: layout, stride subsampling, BN folding, single merged pad
# ----------------------------------------------------------------------------
def conv_block_pallas(x_ncdhw, p, strides=(2, 2, 2), eps=1e-5):
    x = jnp.transpose(x_ncdhw, (0, 2, 3, 4, 1))               # NCDHW -> NDHWC
    sd, sh, sw = strides
    xs = x[:, ::sd, ::sh, ::sw, :]                            # strided 1x1x1 conv == subsample
    N, Do, Ho, Wo, C0 = xs.shape
    M = N * Do * Ho * Wo

    def fold(w, b, stats):                                    # BN (inference) into conv
        g, beta, mean, var = stats
        s = g / jnp.sqrt(var + eps)
        return w * s.reshape((1,) * (w.ndim - 1) + (-1,)), (b - mean) * s + beta

    C1 = p["conv1_w"].shape[0]
    C2 = p["conv2_w"].shape[0]
    C3 = p["conv3_w"].shape[0]

    w1, b1 = fold(p["conv1_w"].reshape(C1, C0).T, p["conv1_b"], p["bn1"])
    wr, br = fold(p["convres_w"].reshape(C3, C0).T, p["convres_b"], p["bnres"])
    w2, b2 = fold(jnp.transpose(p["conv2_w"], (2, 3, 4, 1, 0)).reshape(27, C1, C2),
                  p["conv2_b"], p["bn2"])
    w3, b3 = fold(p["conv3_w"].reshape(C3, C2).T, p["conv3_b"], p["bn3"])

    bf = jnp.bfloat16                                         # bf16 in, f32 accumulate
    wcat = jnp.concatenate([w1, wr], axis=1).astype(bf)       # (C0, C1+C3) fused weight
    bcat = jnp.concatenate([b1, br]).reshape(1, C1 + C3).astype(jnp.float32)
    w2r = w2.reshape(27 * C1, C2).astype(bf)                  # single wide-K conv_2 weight
    w3 = w3.astype(bf)
    b2 = b2.reshape(1, C2).astype(jnp.float32)
    b3 = b3.reshape(1, C3).astype(jnp.float32)

    # ---- kernel A: conv_1(+BN+ReLU) and conv_res(+BN) in one matmul over x --
    TM = _pick_tm(M)
    Mpad = -(-M // TM) * TM
    x2d = xs.reshape(M, C0).astype(bf)
    if Mpad != M:
        x2d = jnp.pad(x2d, ((0, Mpad - M), (0, 0)))
    fused = _conv1_and_res(x2d, wcat, bcat, C1, tm=TM)
    y1_2d = fused[:M, :C1]
    res_2d = fused[:M, C1:]

    # ---- single merged pad: conv_2 zero padding + flattened-plane guard rows -
    Dp, Hp, Wp = Do + 2, Ho + 2, Wo + 2
    Sp = Hp * Wp
    E = 2                                     # extra H guard rows; E*Wp >= Wp+1
    G = E * Wp
    Sg = (Hp + 2 * E) * Wp

    y1 = y1_2d.reshape(N, Do, Ho, Wo, C1)
    y1g = jnp.pad(y1, ((0, 0), (1, 1), (1 + E, 1 + E), (1, 1), (0, 0))
                  ).reshape(N, Dp, Sg, C1)
    res = res_2d.reshape(N, Do, Ho, Wo, C3)
    resp = jnp.pad(res, ((0, 0), (0, 0), (1, 1), (1, 1), (0, 0))
                   ).reshape(N, Do, Sp, C3)

    out_g = _conv2_conv3(y1g, w2r, b2, w3, b3, resp, Sp, G, Wp)

    # discard the halo ring computed on the padded plane grid
    out = out_g.reshape(N, Do, Hp, Wp, C3)[:, :, 1:1 + Ho, 1:1 + Wo, :]
    return jnp.transpose(out, (0, 4, 1, 2, 3))                # NDHWC -> NCDHW


# ----------------------------------------------------------------------------
# Deterministic parameter init (PyTorch-shaped weights) + pure-JAX reference
# ----------------------------------------------------------------------------
def init_params(key, filters):
    C0, C1, C2, C3 = filters
    ks = iter(jax.random.split(key, 32))

    def w(shape):
        return 0.1 * jax.random.normal(next(ks), shape, jnp.float32)

    def bn(c):
        gamma = jax.random.uniform(next(ks), (c,), jnp.float32, 0.5, 1.5)
        beta = 0.1 * jax.random.normal(next(ks), (c,), jnp.float32)
        mean = 0.1 * jax.random.normal(next(ks), (c,), jnp.float32)
        var = jax.random.uniform(next(ks), (c,), jnp.float32, 0.5, 1.5)
        return (gamma, beta, mean, var)

    return {
        "conv1_w": w((C1, C0, 1, 1, 1)), "conv1_b": w((C1,)), "bn1": bn(C1),
        "conv2_w": w((C2, C1, 3, 3, 3)), "conv2_b": w((C2,)), "bn2": bn(C2),
        "conv3_w": w((C3, C2, 1, 1, 1)), "conv3_b": w((C3,)), "bn3": bn(C3),
        "convres_w": w((C3, C0, 1, 1, 1)), "convres_b": w((C3,)), "bnres": bn(C3),
    }


def reference_forward(x, p, strides=(2, 2, 2), eps=1e-5):
    def conv(x, w, b, stride, pad):
        y = jax.lax.conv_general_dilated(
            x, w, window_strides=stride, padding=[(pad, pad)] * 3,
            dimension_numbers=("NCDHW", "OIDHW", "NCDHW"),
            precision=jax.lax.Precision.HIGHEST)
        return y + b[None, :, None, None, None]

    def bn(x, stats):
        g, b_, m, v = stats
        sh = (1, -1, 1, 1, 1)
        return ((x - m.reshape(sh)) * (g.reshape(sh) / jnp.sqrt(v.reshape(sh) + eps))
                + b_.reshape(sh))

    out = jnp.maximum(bn(conv(x, p["conv1_w"], p["conv1_b"], strides, 0), p["bn1"]), 0.0)
    out = jnp.maximum(bn(conv(out, p["conv2_w"], p["conv2_b"], (1, 1, 1), 1), p["bn2"]), 0.0)
    out = bn(conv(out, p["conv3_w"], p["conv3_b"], (1, 1, 1), 0), p["bn3"])
    res = bn(conv(x, p["convres_w"], p["convres_b"], strides, 0), p["bnres"])
    return jnp.maximum(out + res, 0.0)


if __name__ == "__main__":
    key = jax.random.PRNGKey(0)
    k_x, k_p = jax.random.split(key)

    # filters = (filters0, filters1, filters2, filters3); stride-2 ConvBlock
    N, C0, D, H, W = 2, 8, 16, 16, 16
    filters = (C0, 16, 16, 32)
    strides = (2, 2, 2)

    x = jax.random.normal(k_x, (N, C0, D, H, W), jnp.float32)   # NCDHW like PyTorch
    params = init_params(k_p, filters)

    fwd = jax.jit(functools.partial(conv_block_pallas, strides=strides))
    out = jax.block_until_ready(fwd(x, params))

    Do = (D - 1) // strides[0] + 1
    Ho = (H - 1) // strides[1] + 1
    Wo = (W - 1) // strides[2] + 1
    assert out.shape == (N, filters[3], Do, Ho, Wo), out.shape
    assert out.dtype == jnp.float32

    ref = jax.block_until_ready(reference_forward(x, params, strides))
    max_err = float(jnp.max(jnp.abs(out - ref)))
    # bf16 matmul inputs / bf16 intermediates with f32 accumulation -> relaxed tol
    assert max_err < 5e-2, f"mismatch vs reference: {max_err}"

    print("KERNEL_OK")
</pallas_src>

<mosaic_0001>
module attributes {stable_mosaic.version = 11 : i64} {
  func.func @_conv1_res_kernel(%arg0: i32, %arg1: memref<512x8xbf16, #tpu.memory_space<vmem>>, %arg2: memref<8x48xbf16, #tpu.memory_space<vmem>>, %arg3: memref<1x48xf32, #tpu.memory_space<vmem>>, %arg4: memref<512x48xbf16, #tpu.memory_space<vmem>>) attributes {dimension_semantics = [#tpu.dimension_semantics<parallel>], iteration_bounds = array<i64: 2>, scalar_prefetch = 0 : i64, scratch_operands = 0 : i64, tpu.core_type = #tpu.core_type<tc>, window_params = [{transform_indices = @transform_0, window_bounds = array<i64: 512, 8>}, {pipeline_mode = #tpu.pipeline_mode<synchronous>, transform_indices = @transform_1, window_bounds = array<i64: 8, 48>}, {pipeline_mode = #tpu.pipeline_mode<synchronous>, transform_indices = @transform_2, window_bounds = array<i64: 1, 48>}, {transform_indices = @transform_3, window_bounds = array<i64: 512, 48>}]} {
    %c0 = arith.constant 0 : index
    %c0_0 = arith.constant 0 : index
    %0 = vector.load %arg1[%c0, %c0_0] : memref<512x8xbf16, #tpu.memory_space<vmem>>, vector<512x8xbf16>
    %c0_1 = arith.constant 0 : index
    %c0_2 = arith.constant 0 : index
    %1 = vector.load %arg2[%c0_1, %c0_2] : memref<8x48xbf16, #tpu.memory_space<vmem>>, vector<8x48xbf16>
    %cst = arith.constant dense<0.000000e+00> : vector<512x48xf32>
    %2 = tpu.matmul %0, %1, %cst {dimension_numbers = #tpu.dot_dimension_numbers<[1], [0], [0], [1], [0, 0, 1, 1], [], []>} : vector<512x8xbf16>, vector<8x48xbf16>, vector<512x48xf32> -> vector<512x48xf32>
    %c0_3 = arith.constant 0 : index
    %c0_4 = arith.constant 0 : index
    %3 = vector.load %arg3[%c0_3, %c0_4] : memref<1x48xf32, #tpu.memory_space<vmem>>, vector<1x48xf32>
    %4 = vector.broadcast %3 : vector<1x48xf32> to vector<512x48xf32>
    %5 = arith.addf %2, %4 : vector<512x48xf32>
    %6 = tpu.iota {dimensions = array<i32: 1>} : vector<512x48xi32>
    %c16_i32 = arith.constant 16 : i32
    %7 = vector.broadcast %c16_i32 : i32 to vector<512x48xi32>
    %8 = arith.cmpi slt, %6, %7 : vector<512x48xi32>
    %cst_5 = arith.constant 0.000000e+00 : f32
    %9 = vector.broadcast %cst_5 : f32 to vector<512x48xf32>
    %10 = arith.maximumf %5, %9 : vector<512x48xf32>
    %11 = arith.select %8, %10, %5 : vector<512x48xi1>, vector<512x48xf32>
    %12 = arith.truncf %11 : vector<512x48xf32> to vector<512x48xbf16>
    %c0_6 = arith.constant 0 : index
    %c0_7 = arith.constant 0 : index
    %13 = vector.load %arg4[%c0_6, %c0_7] : memref<512x48xbf16, #tpu.memory_space<vmem>>, vector<512x48xbf16>
    tpu.vector_store %arg4[%c0_6, %c0_7], %12 {strides = array<i32>} : memref<512x48xbf16, #tpu.memory_space<vmem>>, vector<512x48xbf16>,
    return
  }
  func.func @transform_0(%arg0: i32) -> (i32, i32) {
    %c0_i32 = arith.constant 0 : i32
    %c0_i32_0 = arith.constant 0 : i32
    return %arg0, %c0_i32 : i32, i32
  }
  func.func @transform_1(%arg0: i32) -> (i32, i32) {
    %c0_i32 = arith.constant 0 : i32
    %c0_i32_0 = arith.constant 0 : i32
    %c0_i32_1 = arith.constant 0 : i32
    return %c0_i32, %c0_i32_0 : i32, i32
  }
  func.func @transform_2(%arg0: i32) -> (i32, i32) {
    %c0_i32 = arith.constant 0 : i32
    %c0_i32_0 = arith.constant 0 : i32
    %c0_i32_1 = arith.constant 0 : i32
    return %c0_i32, %c0_i32_0 : i32, i32
  }
  func.func @transform_3(%arg0: i32) -> (i32, i32) {
    %c0_i32 = arith.constant 0 : i32
    %c0_i32_0 = arith.constant 0 : i32
    return %arg0, %c0_i32 : i32, i32
  }
}

module attributes {stable_mosaic.version = 11 : i64} {
  func.func @_conv2_conv3_kernel(%arg0: i32, %arg1: i32, %arg2: memref<1x10x140x16xbf16, #tpu.memory_space<vmem>>, %arg3: memref<432x16xbf16, #tpu.memory_space<vmem>>, %arg4: memref<1x16xf32, #tpu.memory_space<vmem>>, %arg5: memref<16x32xbf16, #tpu.memory_space<vmem>>, %arg6: memref<1x32xf32, #tpu.memory_space<vmem>>, %arg7: memref<1x1x100x32xbf16, #tpu.memory_space<vmem>>, %arg8: memref<1x1x100x32xf32, #tpu.memory_space<vmem>>) attributes {dimension_semantics = [#tpu.dimension_semantics<parallel>, #tpu.dimension_semantics<arbitrary>], iteration_bounds = array<i64: 2, 8>, scalar_prefetch = 0 : i64, scratch_operands = 0 : i64, tpu.core_type = #tpu.core_type<tc>, window_params = [{transform_indices = @transform_0, window_bounds = array<i64: 1, 10, 140, 16>}, {pipeline_mode = #tpu.pipeline_mode<synchronous>, transform_indices = @transform_1, window_bounds = array<i64: 432, 16>}, {pipeline_mode = #tpu.pipeline_mode<synchronous>, transform_indices = @transform_2, window_bounds = array<i64: 1, 16>}, {pipeline_mode = #tpu.pipeline_mode<synchronous>, transform_indices = @transform_3, window_bounds = array<i64: 16, 32>}, {pipeline_mode = #tpu.pipeline_mode<synchronous>, transform_indices = @transform_4, window_bounds = array<i64: 1, 32>}, {transform_indices = @transform_5, window_bounds = array<i64: 1, 1, 100, 32>}, {transform_indices = @transform_6, window_bounds = array<i64: 1, 1, 100, 32>}]} {
    %c0_i32 = arith.constant 0 : i32
    %0 = arith.addi %arg1, %c0_i32 : i32
    %c0 = arith.constant 0 : index
    %1 = arith.index_cast %0 : i32 to index
    %c0_0 = arith.constant 0 : index
    %c0_1 = arith.constant 0 : index
    %2 = vector.load %arg2[%c0, %1, %c0_0, %c0_1] : memref<1x10x140x16xbf16, #tpu.memory_space<vmem>>, vector<1x1x140x16xbf16>
    %3 = vector.shape_cast %2 : vector<1x1x140x16xbf16> to vector<140x16xbf16>
    %4 = vector.extract_strided_slice %3 {offsets = [9, 0], sizes = [100, 16], strides = [1, 1]} : vector<140x16xbf16> to vector<100x16xbf16>
    %5 = vector.extract_strided_slice %3 {offsets = [10, 0], sizes = [100, 16], strides = [1, 1]} : vector<140x16xbf16> to vector<100x16xbf16>
    %6 = vector.extract_strided_slice %3 {offsets = [11, 0], sizes = [100, 16], strides = [1, 1]} : vector<140x16xbf16> to vector<100x16xbf16>
    %7 = vector.extract_strided_slice %3 {offsets = [19, 0], sizes = [100, 16], strides = [1, 1]} : vector<140x16xbf16> to vector<100x16xbf16>
    %8 = vector.extract_strided_slice %3 {offsets = [20, 0], sizes = [100, 16], strides = [1, 1]} : vector<140x16xbf16> to vector<100x16xbf16>
    %9 = vector.extract_strided_slice %3 {offsets = [21, 0], sizes = [100, 16], strides = [1, 1]} : vector<140x16xbf16> to vector<100x16xbf16>
    %10 = vector.extract_strided_slice %3 {offsets = [29, 0], sizes = [100, 16], strides = [1, 1]} : vector<140x16xbf16> to vector<100x16xbf16>
    %11 = vector.extract_strided_slice %3 {offsets = [30, 0], sizes = [100, 16], strides = [1, 1]} : vector<140x16xbf16> to vector<100x16xbf16>
    %12 = vector.extract_strided_slice %3 {offsets = [31, 0], sizes = [100, 16], strides = [1, 1]} : vector<140x16xbf16> to vector<100x16xbf16>
    %c1_i32 = arith.constant 1 : i32
    %13 = arith.addi %arg1, %c1_i32 : i32
    %c0_2 = arith.constant 0 : index
    %14 = arith.index_cast %13 : i32 to index
    %c0_3 = arith.constant 0 : index
    %c0_4 = arith.constant 0 : index
    %15 = vector.load %arg2[%c0_2, %14, %c0_3, %c0_4] : memref<1x10x140x16xbf16, #tpu.memory_space<vmem>>, vector<1x1x140x16xbf16>
    %16 = vector.shape_cast %15 : vector<1x1x140x16xbf16> to vector<140x16xbf16>
    %17 = vector.extract_strided_slice %16 {offsets = [9, 0], sizes = [100, 16], strides = [1, 1]} : vector<140x16xbf16> to vector<100x16xbf16>
    %18 = vector.extract_strided_slice %16 {offsets = [10, 0], sizes = [100, 16], strides = [1, 1]} : vector<140x16xbf16> to vector<100x16xbf16>
    %19 = vector.extract_strided_slice %16 {offsets = [11, 0], sizes = [100, 16], strides = [1, 1]} : vector<140x16xbf16> to vector<100x16xbf16>
    %20 = vector.extract_strided_slice %16 {offsets = [19, 0], sizes = [100, 16], strides = [1, 1]} : vector<140x16xbf16> to vector<100x16xbf16>
    %21 = vector.extract_strided_slice %16 {offsets = [20, 0], sizes = [100, 16], strides = [1, 1]} : vector<140x16xbf16> to vector<100x16xbf16>
    %22 = vector.extract_strided_slice %16 {offsets = [21, 0], sizes = [100, 16], strides = [1, 1]} : vector<140x16xbf16> to vector<100x16xbf16>
    %23 = vector.extract_strided_slice %16 {offsets = [29, 0], sizes = [100, 16], strides = [1, 1]} : vector<140x16xbf16> to vector<100x16xbf16>
    %24 = vector.extract_strided_slice %16 {offsets = [30, 0], sizes = [100, 16], strides = [1, 1]} : vector<140x16xbf16> to vector<100x16xbf16>
    %25 = vector.extract_strided_slice %16 {offsets = [31, 0], sizes = [100, 16], strides = [1, 1]} : vector<140x16xbf16> to vector<100x16xbf16>
    %c2_i32 = arith.constant 2 : i32
    %26 = arith.addi %arg1, %c2_i32 : i32
    %c0_5 = arith.constant 0 : index
    %27 = arith.index_cast %26 : i32 to index
    %c0_6 = arith.constant 0 : index
    %c0_7 = arith.constant 0 : index
    %28 = vector.load %arg2[%c0_5, %27, %c0_6, %c0_7] : memref<1x10x140x16xbf16, #tpu.memory_space<vmem>>, vector<1x1x140x16xbf16>
    %29 = vector.shape_cast %28 : vector<1x1x140x16xbf16> to vector<140x16xbf16>
    %30 = vector.extract_strided_slice %29 {offsets = [9, 0], sizes = [100, 16], strides = [1, 1]} : vector<140x16xbf16> to vector<100x16xbf16>
    %31 = vector.extract_strided_slice %29 {offsets = [10, 0], sizes = [100, 16], strides = [1, 1]} : vector<140x16xbf16> to vector<100x16xbf16>
    %32 = vector.extract_strided_slice %29 {offsets = [11, 0], sizes = [100, 16], strides = [1, 1]} : vector<140x16xbf16> to vector<100x16xbf16>
    %33 = vector.extract_strided_slice %29 {offsets = [19, 0], sizes = [100, 16], strides = [1, 1]} : vector<140x16xbf16> to vector<100x16xbf16>
    %34 = vector.extract_strided_slice %29 {offsets = [20, 0], sizes = [100, 16], strides = [1, 1]} : vector<140x16xbf16> to vector<100x16xbf16>
    %35 = vector.extract_strided_slice %29 {offsets = [21, 0], sizes = [100, 16], strides = [1, 1]} : vector<140x16xbf16> to vector<100x16xbf16>
    %36 = vector.extract_strided_slice %29 {offsets = [29, 0], sizes = [100, 16], strides = [1, 1]} : vector<140x16xbf16> to vector<100x16xbf16>
    %37 = vector.extract_strided_slice %29 {offsets = [30, 0], sizes = [100, 16], strides = [1, 1]} : vector<140x16xbf16> to vector<100x16xbf16>
    %38 = vector.extract_strided_slice %29 {offsets = [31, 0], sizes = [100, 16], strides = [1, 1]} : vector<140x16xbf16> to vector<100x16xbf16>
    %39 = tpu.concatenate %4, %5, %6, %7, %8, %9, %10, %11, %12, %17, %18, %19, %20, %21, %22, %23 in 1 : vector<100x16xbf16>, vector<100x16xbf16>, vector<100x16xbf16>, vector<100x16xbf16>, vector<100x16xbf16>, vector<100x16xbf16>, vector<100x16xbf16>, vector<100x16xbf16>, vector<100x16xbf16>, vector<100x16xbf16>, vector<100x16xbf16>, vector<100x16xbf16>, vector<100x16xbf16>, vector<100x16xbf16>, vector<100x16xbf16>, vector<100x16xbf16> -> vector<100x256xbf16>
    %40 = tpu.concatenate %24, %25, %30, %31, %32, %33, %34, %35, %36, %37, %38 in 1 : vector<100x16xbf16>, vector<100x16xbf16>, vector<100x16xbf16>, vector<100x16xbf16>, vector<100x16xbf16>, vector<100x16xbf16>, vector<100x16xbf16>, vector<100x16xbf16>, vector<100x16xbf16>, vector<100x16xbf16>, vector<100x16xbf16> -> vector<100x176xbf16>
    %41 = tpu.concatenate %39, %40 in 1 : vector<100x256xbf16>, vector<100x176xbf16> -> vector<100x432xbf16>
    %c0_8 = arith.constant 0 : index
    %c0_9 = arith.constant 0 : index
    %42 = vector.load %arg3[%c0_8, %c0_9] : memref<432x16xbf16, #tpu.memory_space<vmem>>, vector<432x16xbf16>
    %cst = arith.constant dense<0.000000e+00> : vector<100x16xf32>
    %43 = tpu.matmul %41, %42, %cst {dimension_numbers = #tpu.dot_dimension_numbers<[1], [0], [0], [1], [0, 0, 1, 1], [], []>} : vector<100x432xbf16>, vector<432x16xbf16>, vector<100x16xf32> -> vector<100x16xf32>
    %c0_10 = arith.constant 0 : index
    %c0_11 = arith.constant 0 : index
    %44 = vector.load %arg4[%c0_10, %c0_11] : memref<1x16xf32, #tpu.memory_space<vmem>>, vector<1x16xf32>
    %45 = vector.broadcast %44 : vector<1x16xf32> to vector<100x16xf32>
    %46 = arith.addf %43, %45 : vector<100x16xf32>
    %cst_12 = arith.constant 0.000000e+00 : f32
    %47 = vector.broadcast %cst_12 : f32 to vector<100x16xf32>
    %48 = arith.maximumf %46, %47 : vector<100x16xf32>
    %49 = arith.truncf %48 : vector<100x16xf32> to vector<100x16xbf16>
    %c0_13 = arith.constant 0 : index
    %c0_14 = arith.constant 0 : index
    %50 = vector.load %arg5[%c0_13, %c0_14] : memref<16x32xbf16, #tpu.memory_space<vmem>>, vector<16x32xbf16>
    %cst_15 = arith.constant dense<0.000000e+00> : vector<100x32xf32>
    %51 = tpu.matmul %49, %50, %cst_15 {dimension_numbers = #tpu.dot_dimension_numbers<[1], [0], [0], [1], [0, 0, 1, 1], [], []>} : vector<100x16xbf16>, vector<16x32xbf16>, vector<100x32xf32> -> vector<100x32xf32>
    %c0_16 = arith.constant 0 : index
    %c0_17 = arith.constant 0 : index
    %52 = vector.load %arg6[%c0_16, %c0_17] : memref<1x32xf32, #tpu.memory_space<vmem>>, vector<1x32xf32>
    %53 = vector.broadcast %52 : vector<1x32xf32> to vector<100x32xf32>
    %54 = arith.addf %51, %53 : vector<100x32xf32>
    %c0_18 = arith.constant 0 : index
    %c0_19 = arith.constant 0 : index
    %c0_20 = arith.constant 0 : index
    %c0_21 = arith.constant 0 : index
    %55 = vector.load %arg7[%c0_18, %c0_19, %c0_20, %c0_21] : memref<1x1x100x32xbf16, #tpu.memory_space<vmem>>, vector<1x1x100x32xbf16>
    %56 = vector.shape_cast %55 : vector<1x1x100x32xbf16> to vector<100x32xbf16>
    %57 = arith.extf %56 : vector<100x32xbf16> to vector<100x32xf32>
    %58 = arith.addf %54, %57 : vector<100x32xf32>
    %cst_22 = arith.constant 0.000000e+00 : f32
    %59 = vector.broadcast %cst_22 : f32 to vector<100x32xf32>
    %60 = arith.maximumf %58, %59 : vector<100x32xf32>
    %c0_23 = arith.constant 0 : index
    %c0_24 = arith.constant 0 : index
    %c0_25 = arith.constant 0 : index
    %c0_26 = arith.constant 0 : index
    %61 = vector.load %arg8[%c0_23, %c0_24, %c0_25, %c0_26] : memref<1x1x100x32xf32, #tpu.memory_space<vmem>>, vector<1x1x100x32xf32>
    %62 = vector.shape_cast %61 : vector<1x1x100x32xf32> to vector<100x32xf32>
    %63 = vector.shape_cast %60 : vector<100x32xf32> to vector<1x1x100x32xf32>
    tpu.vector_store %arg8[%c0_23, %c0_24, %c0_25, %c0_26], %63 {strides = array<i32>} : memref<1x1x100x32xf32, #tpu.memory_space<vmem>>, vector<1x1x100x32xf32>,
    return
  }
  func.func @transform_0(%arg0: i32, %arg1: i32) -> (i32, i32, i32, i32) {
    %c0_i32 = arith.constant 0 : i32
    %c0_i32_0 = arith.constant 0 : i32
    %c0_i32_1 = arith.constant 0 : i32
    %c0_i32_2 = arith.constant 0 : i32
    return %arg0, %c0_i32, %c0_i32_0, %c0_i32_1 : i32, i32, i32, i32
  }
  func.func @transform_1(%arg0: i32, %arg1: i32) -> (i32, i32) {
    %c0_i32 = arith.constant 0 : i32
    %c0_i32_0 = arith.constant 0 : i32
    %c0_i32_1 = arith.constant 0 : i32
    return %c0_i32, %c0_i32_0 : i32, i32
  }
  func.func @transform_2(%arg0: i32, %arg1: i32) -> (i32, i32) {
    %c0_i32 = arith.constant 0 : i32
    %c0_i32_0 = arith.constant 0 : i32
    %c0_i32_1 = arith.constant 0 : i32
    return %c0_i32, %c0_i32_0 : i32, i32
  }
  func.func @transform_3(%arg0: i32, %arg1: i32) -> (i32, i32) {
    %c0_i32 = arith.constant 0 : i32
    %c0_i32_0 = arith.constant 0 : i32
    %c0_i32_1 = arith.constant 0 : i32
    return %c0_i32, %c0_i32_0 : i32, i32
  }
  func.func @transform_4(%arg0: i32, %arg1: i32) -> (i32, i32) {
    %c0_i32 = arith.constant 0 : i32
    %c0_i32_0 = arith.constant 0 : i32
    %c0_i32_1 = arith.constant 0 : i32
    return %c0_i32, %c0_i32_0 : i32, i32
  }
  func.func @transform_5(%arg0: i32, %arg1: i32) -> (i32, i32, i32, i32) {
    %c0_i32 = arith.constant 0 : i32
    %c0_i32_0 = arith.constant 0 : i32
    %c0_i32_1 = arith.constant 0 : i32
    return %arg0, %arg1, %c0_i32, %c0_i32_0 : i32, i32, i32, i32
  }
  func.func @transform_6(%arg0: i32, %arg1: i32) -> (i32, i32, i32, i32) {
    %c0_i32 = arith.constant 0 : i32
    %c0_i32_0 = arith.constant 0 : i32
    %c0_i32_1 = arith.constant 0 : i32
    return %arg0, %arg1, %c0_i32, %c0_i32_0 : i32, i32, i32, i32
  }
}

</mosaic_0001>

<bundles_post_ra>
// kernel: conv_block_pallas.2
= control target key start
LH: loop header
LB: loop body
LE: loop exit
PB: predicated region body
PF: predicated region fallthrough
CT: control target
= control target key end

     0   :  { %s1680_s12 = smov 0   ;;  %s2103_s0 = inlined_call_operand.vmem [shape: bf16[1024,8], index: 0, kind: input, shape index: {}]   ;;  %s2104_s1 = inlined_call_operand.vmem [shape: bf16[8,48], index: 1, kind: input, shape index: {}]   ;;  %s2105_s2 = inlined_call_operand.vmem [shape: f32[1,48], index: 2, kind: input, shape index: {}]   ;;  %s2106_s3 = inlined_call_operand.vmem [shape: bf16[1024,48], index: 3, kind: output, shape index: {}]  }
   0x1 LB: > { %s1305_s13 = sadd.s32 4294967295, %s1658_s12   ;;  %p1309_p0 = scmp.ge.s32.totalorder %s1658_s12, 1  ;;  %s1658_s12 = sphi %s1680_s12, %s13_s12  }
   0x2   : > { %p138_p1 = scmp.lt.s32.totalorder %s1658_s12, 3 }
   0x4   : > { %p139_p2 = pnand %p1309_p0, %p138_p1 }
   0x5   : > { %v239_v0 = vld [vmem:[%s2104_s1] sm:$0xf] (!%p139_p2)  ;;  %vm504_vm0 = vcmask (!%p139_p2), 1043456   ;;  %s1310_s16 = sshll.u32 (!%p139_p2), %s1305_s13, 6  ;;  %vm407_vm1 = vcmask (!%p139_p2), 64512   ;;  %v797_v34 = vlaneseq (!%p139_p2)  ;;  %vm1184_vm3 = vcmask (!%p139_p2), 388096  }
   0x6   : > { %142 = sbr.rel (%p139_p2) target bundleno = 303 (0x12f), region = 32  ;;  %1610 = vmatprep.subr.msk.bf16.mxu0 (!%p139_p2), %vm504_vm0, %v239_v0  ;;  %1611 = vmatprep.subr.msk.bf16.mxu1 (!%p139_p2), %vm504_vm0, %v239_v0  ;;  %v506_v1 = vsel (!%p139_p2), %vm504_vm0, %v239_v0, 0  ;;  %p163_p3 = scmp.lt.s32.totalorder (!%p139_p2), %s1310_s16, 127  ;;  %v1768_v35 = vld [vmem:[%s2105_s2] ss:$0 sm:$0xff] (!%p139_p2) }
   0x7   : > { %1543 = vmatpush3.bf16.msra.mxu0 (!%p139_p2), %v506_v1  ;;  %1609 = vmatpush3.bf16.msra.mxu1 (!%p139_p2), %v506_v1  ;;  %v1770_v36 = vand.u32 (!%p139_p2), 127, %v797_v34 }
   0x9   : > { %vm799_vm2 = vcmp.lt.s32.totalorder (!%p139_p2), %v1770_v36, 16 }
   0xd   : > { %s2108_s16 = smov (!%p163_p3, %s1310_s16), 127 }
   0xe   : > { %s1311_s17 = sshll.u32 %s2108_s16, 2 }
   0xf   : > { %s1699_s20 = scalar_lea.vmem %s2103_s0, %s1311_s17  ;;  %s1785_s25 = scalar_lea.vmem %s2106_s3, %s1311_s17 }
  0x10   : > { %v1620_v2 = vld [vmem:[%s1699_s20] sm:$0xff]   ;;  %v1622_v4 = vld [vmem:[%s1699_s20 + $0x8] sm:$0xff]   ;;  %v1624_v6 = vld [vmem:[%s1699_s20 + $0x10] sm:$0xff]  }
  0x11   : > { %v1621_v3 = vld [vmem:[%s1699_s20 + $0x80] sm:$0xff]   ;;  %1544 = vmatprep.mubr.msk.bf16.mxu0 %vm407_vm1, %v1620_v2  ;;  %v1623_v5 = vld [vmem:[%s1699_s20 + $0x88] sm:$0xff]   ;;  %v1625_v7 = vld [vmem:[%s1699_s20 + $0x90] sm:$0xff]  }
  0x12   : > { %1576 = vmatprep.mubr.msk.bf16.mxu1 %vm407_vm1, %v1621_v3  ;;  %1545 = vmatmul.mubr.msk.bf16.vlgmr.msra.gmra.mrb[0].mxu0 %vm407_vm1, %v1622_v4  ;;  %v1626_v8 = vld [vmem:[%s1699_s20 + $0x18] sm:$0xff]   ;;  %v1628_v10 = vld [vmem:[%s1699_s20 + $0x20] sm:$0xff]   ;;  %v1630_v12 = vld [vmem:[%s1699_s20 + $0x28] sm:$0xff]  }
  0x13   : > { %1577 = vmatmul.mubr.msk.bf16.vlgmr.msra.gmra.mrb[0].mxu1 %vm407_vm1, %v1623_v5  ;;  %1548 = vmatprep.mubr.msk.bf16.mxu0 %vm407_vm1, %v1624_v6  ;;  %v1627_v9 = vld [vmem:[%s1699_s20 + $0x98] sm:$0xff]   ;;  %v1629_v11 = vld [vmem:[%s1699_s20 + $0xa0] sm:$0xff]   ;;  %v1631_v13 = vld [vmem:[%s1699_s20 + $0xa8] sm:$0xff]  }
  0x14   : > { %1580 = vmatprep.mubr.msk.bf16.mxu1 %vm407_vm1, %v1625_v7  ;;  %v1632_v14 = vld [vmem:[%s1699_s20 + $0x30] sm:$0xff]   ;;  %v1634_v16 = vld [vmem:[%s1699_s20 + $0x38] sm:$0xff]   ;;  %v1636_v18 = vld [vmem:[%s1699_s20 + $0x40] sm:$0xff]  }
  0x15   : > { %v1633_v15 = vld [vmem:[%s1699_s20 + $0xb0] sm:$0xff]   ;;  %v1635_v17 = vld [vmem:[%s1699_s20 + $0xb8] sm:$0xff]   ;;  %v1637_v19 = vld [vmem:[%s1699_s20 + $0xc0] sm:$0xff]  }
  0x16   : > { %v1638_v20 = vld [vmem:[%s1699_s20 + $0x48] sm:$0xff]   ;;  %v1640_v22 = vld [vmem:[%s1699_s20 + $0x50] sm:$0xff]   ;;  %v1642_v24 = vld [vmem:[%s1699_s20 + $0x58] sm:$0xff]  }
  0x17   : > { %v1639_v21 = vld [vmem:[%s1699_s20 + $0xc8] sm:$0xff]   ;;  %v1641_v23 = vld [vmem:[%s1699_s20 + $0xd0] sm:$0xff]   ;;  %v1643_v25 = vld [vmem:[%s1699_s20 + $0xd8] sm:$0xff]  }
  0x18   : > { %v1644_v26 = vld [vmem:[%s1699_s20 + $0x60] sm:$0xff]   ;;  %v1646_v28 = vld [vmem:[%s1699_s20 + $0x68] sm:$0xff]   ;;  %v1648_v30 = vld [vmem:[%s1699_s20 + $0x70] sm:$0xff]  }
  0x19   : > { %v1645_v27 = vld [vmem:[%s1699_s20 + $0xe0] sm:$0xff]   ;;  %v1647_v29 = vld [vmem:[%s1699_s20 + $0xe8] sm:$0xff]   ;;  %v1649_v31 = vld [vmem:[%s1699_s20 + $0xf0] sm:$0xff]  }
  0x1a   : > { %1549 = vmatmul.mubr.msk.bf16.gmra.mrb[4].mxu0 %vm407_vm1, %v1626_v8  ;;  %v1650_v32 = vld [vmem:[%s1699_s20 + $0x78] sm:$0xff]  }
  0x1b   : > { %1581 = vmatmul.mubr.msk.bf16.gmra.mrb[4].mxu1 %vm407_vm1, %v1627_v9  ;;  %1552 = vmatprep.mubr.msk.bf16.mxu0 %vm407_vm1, %v1628_v10  ;;  %v1651_v33 = vld [vmem:[%s1699_s20 + $0xf8] sm:$0xff]  }
  0x1c   : > { %1584 = vmatprep.mubr.msk.bf16.mxu1 %vm407_vm1, %v1629_v11 }
  0x22   : > { %1553 = vmatmul.mubr.msk.bf16.gmra.mrb[8].mxu0 %vm407_vm1, %v1630_v12 }
  0x23   : > { %1585 = vmatmul.mubr.msk.bf16.gmra.mrb[8].mxu1 %vm407_vm1, %v1631_v13  ;;  %1556 = vmatprep.mubr.msk.bf16.mxu0 %vm407_vm1, %v1632_v14 }
  0x24   : > { %1588 = vmatprep.mubr.msk.bf16.mxu1 %vm407_vm1, %v1633_v15 }
  0x2a   : > { %1557 = vmatmul.mubr.msk.bf16.gmra.mrb[12].mxu0 %vm407_vm1, %v1634_v16 }
  0x2b   : > { %1589 = vmatmul.mubr.msk.bf16.gmra.mrb[12].mxu1 %vm407_vm1, %v1635_v17  ;;  %1560 = vmatprep.mubr.msk.bf16.mxu0 %vm407_vm1, %v1636_v18 }
  0x2c   : > { %1592 = vmatprep.mubr.msk.bf16.mxu1 %vm407_vm1, %v1637_v19 }
  0x32   : > { %1561 = vmatmul.mubr.msk.bf16.gmra.mrb[16].mxu0 %vm407_vm1, %v1638_v20 }
  0x33   : > { %1593 = vmatmul.mubr.msk.bf16.gmra.mrb[16].mxu1 %vm407_vm1, %v1639_v21  ;;  %1564 = vmatprep.mubr.msk.bf16.mxu0 %vm407_vm1, %v1640_v22 }
  0x34   : > { %1596 = vmatprep.mubr.msk.bf16.mxu1 %vm407_vm1, %v1641_v23 }
  0x3a   : > { %1565 = vmatmul.mubr.msk.bf16.gmra.mrb[20].mxu0 %vm407_vm1, %v1642_v24 }
  0x3b   : > { %1597 = vmatmul.mubr.msk.bf16.gmra.mrb[20].mxu1 %vm407_vm1, %v1643_v25  ;;  %1568 = vmatprep.mubr.msk.bf16.mxu0 %vm407_vm1, %v1644_v26 }
  0x3c   : > { %1600 = vmatprep.mubr.msk.bf16.mxu1 %vm407_vm1, %v1645_v27 }
  0x42   : > { %1569 = vmatmul.mubr.msk.bf16.gmra.mrb[24].mxu0 %vm407_vm1, %v1646_v28 }
  0x43   : > { %1601 = vmatmul.mubr.msk.bf16.gmra.mrb[24].mxu1 %vm407_vm1, %v1647_v29  ;;  %1572 = vmatprep.mubr.msk.bf16.mxu0 %vm407_vm1, %v1648_v30 }
  0x44   : > { %1604 = vmatprep.mubr.msk.bf16.mxu1 %vm407_vm1, %v1649_v31 }
  0x4a   : > { %1573 = vmatmul.mubr.msk.bf16.gmra.mrb[28].mxu0 %vm407_vm1, %v1650_v32 }
  0x4b   : > { %1605 = vmatmul.mubr.msk.bf16.gmra.mrb[28].mxu1 %vm407_vm1, %v1651_v33 }
  0xe5   : > { %v1546_v37 = vpop.f32.mrb[0].mxu0 }
  0xe6   : > { %v551_v38 = vadd.f32 %v1546_v37, %v1768_v35  ;;  %v1578_v39 = vpop.f32.mrb[0].mxu1  ;;  %v542_v40 = vpop.f32.mrb[1].mxu0 }
  0xe7   : > { %v679_v41 = vadd.f32 %v1578_v39, %v1768_v35  ;;  %v543_v42 = vadd.f32 %v1768_v35, %v542_v40  ;;  %v670_v43 = vpop.f32.mrb[1].mxu1  ;;  %v1547_v44 = vpop.f32.mrb[2].mxu0 }
  0xe8   : > { %v802_v45 = vmax.f32 %v551_v38, 0.0  ;;  %v671_v46 = vadd.f32 %v1768_v35, %v670_v43  ;;  %v554_v47 = vadd.f32 %v1547_v44, %v1768_v35  ;;  %v1579_v48 = vpop.f32.mrb[2].mxu1  ;;  %v545_v49 = vpop.f32.mrb[3].mxu0 }
  0xe9   : > { %v834_v50 = vmax.f32 %v679_v41, 0.0  ;;  %v800_v51 = vmax.f32 %v543_v42, 0.0  ;;  %v682_v52 = vadd.f32 %v1579_v48, %v1768_v35  ;;  %v546_v53 = vadd.f32 %v1768_v35, %v545_v49  ;;  %v673_v54 = vpop.f32.mrb[3].mxu1 }
  0xea   : > { %v866_v55 = vsel %vm799_vm2, %v802_v45, %v551_v38  ;;  %v832_v56 = vmax.f32 %v671_v46, 0.0  ;;  %v803_v57 = vmax.f32 %v554_v47, 0.0  ;;  %v674_v58 = vadd.f32 %v1768_v35, %v673_v54 }
  0xeb   : > { %v1447_v59 = vpack.c.bf16 %v866_v55, %v866_v55  ;;  %v898_v60 = vsel %vm799_vm2, %v834_v50, %v679_v41  ;;  %v864_v61 = vsel %vm799_vm2, %v800_v51, %v543_v42  ;;  %v835_v62 = vmax.f32 %v682_v52, 0.0 }
  0xec   : > { %v1479_v63 = vpack.c.bf16 %v898_v60, %v898_v60  ;;  %v1445_v0 = vpack.c.bf16 %v864_v61, %v864_v61  ;;  %v896_v1 = vsel %vm799_vm2, %v832_v56, %v671_v46  ;;  %v867_v2 = vsel %vm799_vm2, %v803_v57, %v554_v47 }
  0xed   : > { %1187 = vst.msk [vmem:[%s1785_s25 + $0x8] sm:$0xf] %vm1184_vm3, %v1447_v59  ;;  %v1477_v3 = vpack.c.bf16 %v896_v1, %v896_v1  ;;  %v1448_v4 = vpack.c.bf16 %v867_v2, %v867_v2  ;;  %v899_v5 = vsel %vm799_vm2, %v835_v62, %v682_v52  ;;  %v801_v6 = vmax.f32 %v546_v53, 0.0  ;;  %v1550_v7 = vpop.f32.mrb[4].mxu0 }
  0xee   : > { %1219 = vst.msk [vmem:[%s1785_s25 + $0x88] sm:$0xf] %vm1184_vm3, %v1479_v63  ;;  %1185 = vst.msk [vmem:[%s1785_s25] sm:$0xf] %vm1184_vm3, %v1445_v0  ;;  %v1480_v8 = vpack.c.bf16 %v899_v5, %v899_v5  ;;  %v833_v9 = vmax.f32 %v674_v58, 0.0  ;;  %v567_v10 = vadd.f32 %v1550_v7, %v1768_v35  ;;  %v1582_v11 = vpop.f32.mrb[4].mxu1 }
  0xef   : > { %v558_v12 = vpop.f32.mrb[5].mxu0  ;;  %1217 = vst.msk [vmem:[%s1785_s25 + $0x80] sm:$0xf] %vm1184_vm3, %v1477_v3  ;;  %1188 = vst.msk [vmem:[%s1785_s25 + $0xc] sm:$0xf] %vm1184_vm3, %v1448_v4  ;;  %v865_v13 = vsel %vm799_vm2, %v801_v6, %v546_v53  ;;  %v695_v14 = vadd.f32 %v1582_v11, %v1768_v35  ;;  %v686_v16 = vpop.f32.mrb[5].mxu1 }
  0xf0   : > { %v559_v15 = vadd.f32 %v1768_v35, %v558_v12  ;;  %v1551_v17 = vpop.f32.mrb[6].mxu0  ;;  %1220 = vst.msk [vmem:[%s1785_s25 + $0x8c] sm:$0xf] %vm1184_vm3, %v1480_v8  ;;  %v1446_v18 = vpack.c.bf16 %v865_v13, %v865_v13  ;;  %v897_v19 = vsel %vm799_vm2, %v833_v9, %v674_v58  ;;  %v806_v20 = vmax.f32 %v567_v10, 0.0  ;;  %v1583_v22 = vpop.f32.mrb[6].mxu1 }
  0xf1   : > { %v687_v21 = vadd.f32 %v1768_v35, %v686_v16  ;;  %v561_v23 = vpop.f32.mrb[7].mxu0  ;;  %v1478_v24 = vpack.c.bf16 %v897_v19, %v897_v19  ;;  %v838_v25 = vmax.f32 %v695_v14, 0.0  ;;  %v570_v27 = vadd.f32 %v1551_v17, %v1768_v35  ;;  %v689_v28 = vpop.f32.mrb[7].mxu1 }
  0xf2   : > { %v804_v26 = vmax.f32 %v559_v15, 0.0  ;;  %1186 = vst.msk [vmem:[%s1785_s25 + $0x4] sm:$0xf] %vm1184_vm3, %v1446_v18  ;;  %v870_v29 = vsel %vm799_vm2, %v806_v20, %v567_v10  ;;  %v698_v31 = vadd.f32 %v1583_v22, %v1768_v35  ;;  %v562_v32 = vadd.f32 %v1768_v35, %v561_v23 }
  0xf3   : > { %v836_v30 = vmax.f32 %v687_v21, 0.0  ;;  %1218 = vst.msk [vmem:[%s1785_s25 + $0x84] sm:$0xf] %vm1184_vm3, %v1478_v24  ;;  %v1451_v33 = vpack.c.bf16 %v870_v29, %v870_v29  ;;  %v902_v34 = vsel %vm799_vm2, %v838_v25, %v695_v14  ;;  %v807_v38 = vmax.f32 %v570_v27, 0.0 }
  0xf4   : > { %v868_v37 = vsel %vm799_vm2, %v804_v26, %v559_v15  ;;  %v1483_v39 = vpack.c.bf16 %v902_v34, %v902_v34  ;;  %v839_v42 = vmax.f32 %v698_v31, 0.0  ;;  %v805_v45 = vmax.f32 %v562_v32, 0.0 }
  0xf5   : > { %v1449_v40 = vpack.c.bf16 %v868_v37, %v868_v37  ;;  %v900_v41 = vsel %vm799_vm2, %v836_v30, %v687_v21  ;;  %1191 = vst.msk [vmem:[%s1785_s25 + $0x18] sm:$0xf] %vm1184_vm3, %v1451_v33  ;;  %v871_v44 = vsel %vm799_vm2, %v807_v38, %v570_v27  ;;  %v690_v46 = vadd.f32 %v1768_v35, %v689_v28  ;;  %v1554_v47 = vpop.f32.mrb[8].mxu0 }
  0xf6   : > { %v1481_v43 = vpack.c.bf16 %v900_v41, %v900_v41  ;;  %1223 = vst.msk [vmem:[%s1785_s25 + $0x98] sm:$0xf] %vm1184_vm3, %v1483_v39  ;;  %v1452_v48 = vpack.c.bf16 %v871_v44, %v871_v44  ;;  %v903_v49 = vsel %vm799_vm2, %v839_v42, %v698_v31  ;;  %v583_v50 = vadd.f32 %v1554_v47, %v1768_v35  ;;  %v1586_v51 = vpop.f32.mrb[8].mxu1  ;;  %v574_v52 = vpop.f32.mrb[9].mxu0 }
  0xf7   : > { %1189 = vst.msk [vmem:[%s1785_s25 + $0x10] sm:$0xf] %vm1184_vm3, %v1449_v40  ;;  %v1484_v53 = vpack.c.bf16 %v903_v49, %v903_v49  ;;  %v869_v54 = vsel %vm799_vm2, %v805_v45, %v562_v32  ;;  %v837_v55 = vmax.f32 %v690_v46, 0.0  ;;  %v711_v56 = vadd.f32 %v1586_v51, %v1768_v35  ;;  %v702_v57 = vpop.f32.mrb[9].mxu1  ;;  %v1555_v58 = vpop.f32.mrb[10].mxu0 }
  0xf8   : > { %1221 = vst.msk [vmem:[%s1785_s25 + $0x90] sm:$0xf] %vm1184_vm3, %v1481_v43  ;;  %1192 = vst.msk [vmem:[%s1785_s25 + $0x1c] sm:$0xf] %vm1184_vm3, %v1452_v48  ;;  %v1450_v59 = vpack.c.bf16 %v869_v54, %v869_v54  ;;  %v810_v60 = vmax.f32 %v583_v50, 0.0  ;;  %v575_v61 = vadd.f32 %v1768_v35, %v574_v52  ;;  %v703_v62 = vadd.f32 %v1768_v35, %v702_v57  ;;  %v1587_v63 = vpop.f32.mrb[10].mxu1 }
  0xf9   : > { %v577_v0 = vpop.f32.mrb[11].mxu0  ;;  %1224 = vst.msk [vmem:[%s1785_s25 + $0x9c] sm:$0xf] %vm1184_vm3, %v1484_v53  ;;  %v901_v1 = vsel %vm799_vm2, %v837_v55, %v690_v46  ;;  %v842_v2 = vmax.f32 %v711_v56, 0.0  ;;  %v586_v3 = vadd.f32 %v1555_v58, %v1768_v35  ;;  %v714_v4 = vadd.f32 %v1587_v63, %v1768_v35  ;;  %v705_v5 = vpop.f32.mrb[11].mxu1 }
  0xfa   : > { %1190 = vst.msk [vmem:[%s1785_s25 + $0x14] sm:$0xf] %vm1184_vm3, %v1450_v59  ;;  %v1482_v6 = vpack.c.bf16 %v901_v1, %v901_v1  ;;  %v874_v7 = vsel %vm799_vm2, %v810_v60, %v583_v50  ;;  %v808_v8 = vmax.f32 %v575_v61, 0.0  ;;  %v840_v9 = vmax.f32 %v703_v62, 0.0 }
  0xfb   : > { %v1455_v10 = vpack.c.bf16 %v874_v7, %v874_v7  ;;  %v906_v11 = vsel %vm799_vm2, %v842_v2, %v711_v56  ;;  %v811_v12 = vmax.f32 %v586_v3, 0.0  ;;  %v843_v13 = vmax.f32 %v714_v4, 0.0 }
  0xfc   : > { %1222 = vst.msk [vmem:[%s1785_s25 + $0x94] sm:$0xf] %vm1184_vm3, %v1482_v6  ;;  %v1487_v14 = vpack.c.bf16 %v906_v11, %v906_v11  ;;  %v872_v15 = vsel %vm799_vm2, %v808_v8, %v575_v61  ;;  %v904_v16 = vsel %vm799_vm2, %v840_v9, %v703_v62  ;;  %v578_v17 = vadd.f32 %v1768_v35, %v577_v0 }
  0xfd   : > { %1195 = vst.msk [vmem:[%s1785_s25 + $0x28] sm:$0xf] %vm1184_vm3, %v1455_v10  ;;  %v1453_v18 = vpack.c.bf16 %v872_v15, %v872_v15  ;;  %v1485_v19 = vpack.c.bf16 %v904_v16, %v904_v16  ;;  %v875_v20 = vsel %vm799_vm2, %v811_v12, %v586_v3  ;;  %v907_v21 = vsel %vm799_vm2, %v843_v13, %v714_v4  ;;  %v1558_v22 = vpop.f32.mrb[12].mxu0 }
  0xfe   : > { %1227 = vst.msk [vmem:[%s1785_s25 + $0xa8] sm:$0xf] %vm1184_vm3, %v1487_v14  ;;  %v1456_v23 = vpack.c.bf16 %v875_v20, %v875_v20  ;;  %v1488_v24 = vpack.c.bf16 %v907_v21, %v907_v21  ;;  %v809_v25 = vmax.f32 %v578_v17, 0.0  ;;  %v706_v26 = vadd.f32 %v1768_v35, %v705_v5  ;;  %v1590_v27 = vpop.f32.mrb[12].mxu1  ;;  %v590_v28 = vpop.f32.mrb[13].mxu0 }
  0xff   : > { %1193 = vst.msk [vmem:[%s1785_s25 + $0x20] sm:$0xf] %vm1184_vm3, %v1453_v18  ;;  %1225 = vst.msk [vmem:[%s1785_s25 + $0xa0] sm:$0xf] %vm1184_vm3, %v1485_v19  ;;  %v599_v29 = vadd.f32 %v1558_v22, %v1768_v35  ;;  %v727_v30 = vadd.f32 %v1590_v27, %v1768_v35  ;;  %v591_v31 = vadd.f32 %v1768_v35, %v590_v28  ;;  %v718_v32 = vpop.f32.mrb[13].mxu1  ;;  %v1559_v33 = vpop.f32.mrb[14].mxu0 }
 0x100   : > { %1196 = vst.msk [vmem:[%s1785_s25 + $0x2c] sm:$0xf] %vm1184_vm3, %v1456_v23  ;;  %1228 = vst.msk [vmem:[%s1785_s25 + $0xac] sm:$0xf] %vm1184_vm3, %v1488_v24  ;;  %v873_v34 = vsel %vm799_vm2, %v809_v25, %v578_v17  ;;  %v841_v37 = vmax.f32 %v706_v26, 0.0  ;;  %v719_v38 = vadd.f32 %v1768_v35, %v718_v32  ;;  %v602_v39 = vadd.f32 %v1559_v33, %v1768_v35  ;;  %v1591_v40 = vpop.f32.mrb[14].mxu1 }
 0x101   : > { %v593_v41 = vpop.f32.mrb[15].mxu0  ;;  %v1454_v42 = vpack.c.bf16 %v873_v34, %v873_v34  ;;  %v814_v43 = vmax.f32 %v599_v29, 0.0  ;;  %v846_v44 = vmax.f32 %v727_v30, 0.0  ;;  %v812_v45 = vmax.f32 %v591_v31, 0.0  ;;  %v721_v46 = vpop.f32.mrb[15].mxu1 }
 0x102   : > { %v905_v47 = vsel %vm799_vm2, %v841_v37, %v706_v26  ;;  %v844_v48 = vmax.f32 %v719_v38, 0.0  ;;  %v815_v49 = vmax.f32 %v602_v39, 0.0  ;;  %v730_v50 = vadd.f32 %v1591_v40, %v1768_v35 }
 0x103   : > { %1194 = vst.msk [vmem:[%s1785_s25 + $0x24] sm:$0xf] %vm1184_vm3, %v1454_v42  ;;  %v1486_v51 = vpack.c.bf16 %v905_v47, %v905_v47  ;;  %v878_v52 = vsel %vm799_vm2, %v814_v43, %v599_v29  ;;  %v910_v53 = vsel %vm799_vm2, %v846_v44, %v727_v30  ;;  %v876_v54 = vsel %vm799_vm2, %v812_v45, %v591_v31 }
 0x104   : > { %v1459_v55 = vpack.c.bf16 %v878_v52, %v878_v52  ;;  %v1491_v56 = vpack.c.bf16 %v910_v53, %v910_v53  ;;  %v1457_v57 = vpack.c.bf16 %v876_v54, %v876_v54  ;;  %v908_v58 = vsel %vm799_vm2, %v844_v48, %v719_v38 }
 0x105   : > { %1226 = vst.msk [vmem:[%s1785_s25 + $0xa4] sm:$0xf] %vm1184_vm3, %v1486_v51  ;;  %v1489_v59 = vpack.c.bf16 %v908_v58, %v908_v58  ;;  %v879_v60 = vsel %vm799_vm2, %v815_v49, %v602_v39  ;;  %v847_v61 = vmax.f32 %v730_v50, 0.0  ;;  %v594_v62 = vadd.f32 %v1768_v35, %v593_v41  ;;  %v1562_v63 = vpop.f32.mrb[16].mxu0 }
 0x106   : > { %1199 = vst.msk [vmem:[%s1785_s25 + $0x38] sm:$0xf] %vm1184_vm3, %v1459_v55  ;;  %1231 = vst.msk [vmem:[%s1785_s25 + $0xb8] sm:$0xf] %vm1184_vm3, %v1491_v56  ;;  %v1460_v0 = vpack.c.bf16 %v879_v60, %v879_v60  ;;  %v722_v1 = vadd.f32 %v1768_v35, %v721_v46  ;;  %v615_v2 = vadd.f32 %v1562_v63, %v1768_v35  ;;  %v1594_v3 = vpop.f32.mrb[16].mxu1  ;;  %v606_v4 = vpop.f32.mrb[17].mxu0 }
 0x107   : > { %1197 = vst.msk [vmem:[%s1785_s25 + $0x30] sm:$0xf] %vm1184_vm3, %v1457_v57  ;;  %1229 = vst.msk [vmem:[%s1785_s25 + $0xb0] sm:$0xf] %vm1184_vm3, %v1489_v59  ;;  %v911_v5 = vsel %vm799_vm2, %v847_v61, %v730_v50  ;;  %v813_v6 = vmax.f32 %v594_v62, 0.0  ;;  %v743_v7 = vadd.f32 %v1594_v3, %v1768_v35  ;;  %v607_v8 = vadd.f32 %v1768_v35, %v606_v4  ;;  %v734_v9 = vpop.f32.mrb[17].mxu1 }
 0x108   : > { %v1563_v10 = vpop.f32.mrb[18].mxu0  ;;  %1200 = vst.msk [vmem:[%s1785_s25 + $0x3c] sm:$0xf] %vm1184_vm3, %v1460_v0  ;;  %v1492_v11 = vpack.c.bf16 %v911_v5, %v911_v5  ;;  %v845_v12 = vmax.f32 %v722_v1, 0.0  ;;  %v818_v13 = vmax.f32 %v615_v2, 0.0  ;;  %v735_v14 = vadd.f32 %v1768_v35, %v734_v9  ;;  %v1595_v15 = vpop.f32.mrb[18].mxu1 }
 0x109   : > { %v609_v16 = vpop.f32.mrb[19].mxu0  ;;  %v877_v17 = vsel %vm799_vm2, %v813_v6, %v594_v62  ;;  %v850_v18 = vmax.f32 %v743_v7, 0.0  ;;  %v816_v19 = vmax.f32 %v607_v8, 0.0  ;;  %v618_v20 = vadd.f32 %v1563_v10, %v1768_v35  ;;  %v737_v21 = vpop.f32.mrb[19].mxu1 }
 0x10a   : > { %1232 = vst.msk [vmem:[%s1785_s25 + $0xbc] sm:$0xf] %vm1184_vm3, %v1492_v11  ;;  %v1458_v22 = vpack.c.bf16 %v877_v17, %v877_v17  ;;  %v909_v23 = vsel %vm799_vm2, %v845_v12, %v722_v1  ;;  %v882_v24 = vsel %vm799_vm2, %v818_v13, %v615_v2  ;;  %v848_v25 = vmax.f32 %v735_v14, 0.0 }
 0x10b   : > { %v1490_v26 = vpack.c.bf16 %v909_v23, %v909_v23  ;;  %v1463_v27 = vpack.c.bf16 %v882_v24, %v882_v24  ;;  %v914_v28 = vsel %vm799_vm2, %v850_v18, %v743_v7  ;;  %v880_v29 = vsel %vm799_vm2, %v816_v19, %v607_v8 }
 0x10c   : > { %1198 = vst.msk [vmem:[%s1785_s25 + $0x34] sm:$0xf] %vm1184_vm3, %v1458_v22  ;;  %v1495_v30 = vpack.c.bf16 %v914_v28, %v914_v28  ;;  %v1461_v31 = vpack.c.bf16 %v880_v29, %v880_v29  ;;  %v912_v32 = vsel %vm799_vm2, %v848_v25, %v735_v14  ;;  %v819_v33 = vmax.f32 %v618_v20, 0.0 }
 0x10d   : > { %1230 = vst.msk [vmem:[%s1785_s25 + $0xb4] sm:$0xf] %vm1184_vm3, %v1490_v26  ;;  %1203 = vst.msk [vmem:[%s1785_s25 + $0x48] sm:$0xf] %vm1184_vm3, %v1463_v27  ;;  %v1493_v34 = vpack.c.bf16 %v912_v32, %v912_v32  ;;  %v746_v37 = vadd.f32 %v1595_v15, %v1768_v35  ;;  %v610_v38 = vadd.f32 %v1768_v35, %v609_v16  ;;  %v1566_v40 = vpop.f32.mrb[20].mxu0 }
 0x10e   : > { %v738_v39 = vadd.f32 %v1768_v35, %v737_v21  ;;  %1235 = vst.msk [vmem:[%s1785_s25 + $0xc8] sm:$0xf] %vm1184_vm3, %v1495_v30  ;;  %1201 = vst.msk [vmem:[%s1785_s25 + $0x40] sm:$0xf] %vm1184_vm3, %v1461_v31  ;;  %v883_v41 = vsel %vm799_vm2, %v819_v33, %v618_v20  ;;  %v631_v42 = vadd.f32 %v1566_v40, %v1768_v35  ;;  %v1598_v43 = vpop.f32.mrb[20].mxu1  ;;  %v622_v44 = vpop.f32.mrb[21].mxu0 }
 0x10f   : > { %1233 = vst.msk [vmem:[%s1785_s25 + $0xc0] sm:$0xf] %vm1184_vm3, %v1493_v34  ;;  %v1464_v45 = vpack.c.bf16 %v883_v41, %v883_v41  ;;  %v851_v46 = vmax.f32 %v746_v37, 0.0  ;;  %v817_v47 = vmax.f32 %v610_v38, 0.0  ;;  %v750_v49 = vpop.f32.mrb[21].mxu1  ;;  %v1567_v50 = vpop.f32.mrb[22].mxu0  ;;  %v759_v52 = vadd.f32 %v1598_v43, %v1768_v35 }
 0x110   : > { %v849_v48 = vmax.f32 %v738_v39, 0.0  ;;  %v822_v51 = vmax.f32 %v631_v42, 0.0  ;;  %v623_v53 = vadd.f32 %v1768_v35, %v622_v44  ;;  %v751_v54 = vadd.f32 %v1768_v35, %v750_v49  ;;  %v1599_v55 = vpop.f32.mrb[22].mxu1  ;;  %v625_v56 = vpop.f32.mrb[23].mxu0 }
 0x111   : > { %1204 = vst.msk [vmem:[%s1785_s25 + $0x4c] sm:$0xf] %vm1184_vm3, %v1464_v45  ;;  %v915_v57 = vsel %vm799_vm2, %v851_v46, %v746_v37  ;;  %v881_v58 = vsel %vm799_vm2, %v817_v47, %v610_v38  ;;  %v634_v60 = vadd.f32 %v1567_v50, %v1768_v35  ;;  %v753_v61 = vpop.f32.mrb[23].mxu1  ;;  %v854_v3 = vmax.f32 %v759_v52, 0.0 }
 0x112   : > { %v913_v59 = vsel %vm799_vm2, %v849_v48, %v738_v39  ;;  %v1496_v62 = vpack.c.bf16 %v915_v57, %v915_v57  ;;  %v1462_v63 = vpack.c.bf16 %v881_v58, %v881_v58  ;;  %v886_v1 = vsel %vm799_vm2, %v822_v51, %v631_v42 }
 0x113   : > { %v1494_v0 = vpack.c.bf16 %v913_v59, %v913_v59  ;;  %v1467_v2 = vpack.c.bf16 %v886_v1, %v886_v1  ;;  %v820_v4 = vmax.f32 %v623_v53, 0.0  ;;  %v852_v5 = vmax.f32 %v751_v54, 0.0 }
 0x114   : > { %1236 = vst.msk [vmem:[%s1785_s25 + $0xcc] sm:$0xf] %vm1184_vm3, %v1496_v62  ;;  %1202 = vst.msk [vmem:[%s1785_s25 + $0x44] sm:$0xf] %vm1184_vm3, %v1462_v63  ;;  %v823_v6 = vmax.f32 %v634_v60, 0.0  ;;  %v762_v7 = vadd.f32 %v1599_v55, %v1768_v35  ;;  %v626_v8 = vadd.f32 %v1768_v35, %v625_v56  ;;  %v754_v9 = vadd.f32 %v1768_v35, %v753_v61 }
 0x115   : > { %1234 = vst.msk [vmem:[%s1785_s25 + $0xc4] sm:$0xf] %vm1184_vm3, %v1494_v0  ;;  %1207 = vst.msk [vmem:[%s1785_s25 + $0x58] sm:$0xf] %vm1184_vm3, %v1467_v2  ;;  %v918_v10 = vsel %vm799_vm2, %v854_v3, %v759_v52  ;;  %v884_v11 = vsel %vm799_vm2, %v820_v4, %v623_v53  ;;  %v916_v12 = vsel %vm799_vm2, %v852_v5, %v751_v54  ;;  %v1570_v13 = vpop.f32.mrb[24].mxu0 }
 0x116   : > { %v1499_v14 = vpack.c.bf16 %v918_v10, %v918_v10  ;;  %v1465_v15 = vpack.c.bf16 %v884_v11, %v884_v11  ;;  %v1497_v16 = vpack.c.bf16 %v916_v12, %v916_v12  ;;  %v887_v17 = vsel %vm799_vm2, %v823_v6, %v634_v60  ;;  %v1602_v18 = vpop.f32.mrb[24].mxu1  ;;  %v638_v19 = vpop.f32.mrb[25].mxu0 }
 0x117   : > { %v1468_v20 = vpack.c.bf16 %v887_v17, %v887_v17  ;;  %v855_v21 = vmax.f32 %v762_v7, 0.0  ;;  %v821_v22 = vmax.f32 %v626_v8, 0.0  ;;  %v853_v23 = vmax.f32 %v754_v9, 0.0  ;;  %v766_v24 = vpop.f32.mrb[25].mxu1  ;;  %v1571_v25 = vpop.f32.mrb[26].mxu0 }
 0x118   : > { %1239 = vst.msk [vmem:[%s1785_s25 + $0xd8] sm:$0xf] %vm1184_vm3, %v1499_v14  ;;  %1205 = vst.msk [vmem:[%s1785_s25 + $0x50] sm:$0xf] %vm1184_vm3, %v1465_v15  ;;  %v647_v26 = vadd.f32 %v1570_v13, %v1768_v35  ;;  %v775_v27 = vadd.f32 %v1602_v18, %v1768_v35  ;;  %v639_v28 = vadd.f32 %v1768_v35, %v638_v19  ;;  %v1603_v30 = vpop.f32.mrb[26].mxu1  ;;  %v641_v31 = vpop.f32.mrb[27].mxu0 }
 0x119   : > { %1237 = vst.msk [vmem:[%s1785_s25 + $0xd0] sm:$0xf] %vm1184_vm3, %v1497_v16  ;;  %v767_v29 = vadd.f32 %v1768_v35, %v766_v24  ;;  %1208 = vst.msk [vmem:[%s1785_s25 + $0x5c] sm:$0xf] %vm1184_vm3, %v1468_v20  ;;  %v919_v32 = vsel %vm799_vm2, %v855_v21, %v762_v7  ;;  %v885_v33 = vsel %vm799_vm2, %v821_v22, %v626_v8  ;;  %v769_v38 = vpop.f32.mrb[27].mxu1 }
 0x11a   : > { %v917_v34 = vsel %vm799_vm2, %v853_v23, %v754_v9  ;;  %v650_v37 = vadd.f32 %v1571_v25, %v1768_v35  ;;  %v1500_v39 = vpack.c.bf16 %v919_v32, %v919_v32  ;;  %v1466_v40 = vpack.c.bf16 %v885_v33, %v885_v33 }
 0x11b   : > { %v1498_v41 = vpack.c.bf16 %v917_v34, %v917_v34  ;;  %v826_v42 = vmax.f32 %v647_v26, 0.0  ;;  %v858_v43 = vmax.f32 %v775_v27, 0.0  ;;  %v824_v44 = vmax.f32 %v639_v28, 0.0 }
 0x11c   : > { %v856_v45 = vmax.f32 %v767_v29, 0.0  ;;  %v827_v46 = vmax.f32 %v650_v37, 0.0  ;;  %1240 = vst.msk [vmem:[%s1785_s25 + $0xdc] sm:$0xf] %vm1184_vm3, %v1500_v39  ;;  %1206 = vst.msk [vmem:[%s1785_s25 + $0x54] sm:$0xf] %vm1184_vm3, %v1466_v40  ;;  %v778_v48 = vadd.f32 %v1603_v30, %v1768_v35  ;;  %v642_v49 = vadd.f32 %v1768_v35, %v641_v31 }
 0x11d   : > { %1238 = vst.msk [vmem:[%s1785_s25 + $0xd4] sm:$0xf] %vm1184_vm3, %v1498_v41  ;;  %v890_v47 = vsel %vm799_vm2, %v826_v42, %v647_v26  ;;  %v770_v50 = vadd.f32 %v1768_v35, %v769_v38  ;;  %v922_v52 = vsel %vm799_vm2, %v858_v43, %v775_v27  ;;  %v888_v53 = vsel %vm799_vm2, %v824_v44, %v639_v28  ;;  %v1574_v55 = vpop.f32.mrb[28].mxu0 }
 0x11e   : > { %v1471_v51 = vpack.c.bf16 %v890_v47, %v890_v47  ;;  %v920_v54 = vsel %vm799_vm2, %v856_v45, %v767_v29  ;;  %v1503_v56 = vpack.c.bf16 %v922_v52, %v922_v52  ;;  %v1469_v57 = vpack.c.bf16 %v888_v53, %v888_v53  ;;  %v1606_v60 = vpop.f32.mrb[28].mxu1  ;;  %v654_v61 = vpop.f32.mrb[29].mxu0 }
 0x11f   : > { %v1501_v58 = vpack.c.bf16 %v920_v54, %v920_v54  ;;  %v891_v59 = vsel %vm799_vm2, %v827_v46, %v650_v37  ;;  %v859_v63 = vmax.f32 %v778_v48, 0.0  ;;  %v825_v0 = vmax.f32 %v642_v49, 0.0  ;;  %v782_v2 = vpop.f32.mrb[29].mxu1  ;;  %v1575_v3 = vpop.f32.mrb[30].mxu0 }
 0x120   : > { %1211 = vst.msk [vmem:[%s1785_s25 + $0x68] sm:$0xf] %vm1184_vm3, %v1471_v51  ;;  %v1472_v62 = vpack.c.bf16 %v891_v59, %v891_v59  ;;  %v857_v1 = vmax.f32 %v770_v50, 0.0  ;;  %1243 = vst.msk [vmem:[%s1785_s25 + $0xe8] sm:$0xf] %vm1184_vm3, %v1503_v56  ;;  %v663_v4 = vadd.f32 %v1574_v55, %v1768_v35  ;;  %v791_v5 = vadd.f32 %v1606_v60, %v1768_v35  ;;  %v1607_v8 = vpop.f32.mrb[30].mxu1 }
 0x121   : > { %1209 = vst.msk [vmem:[%s1785_s25 + $0x60] sm:$0xf] %vm1184_vm3, %v1469_v57  ;;  %1241 = vst.msk [vmem:[%s1785_s25 + $0xe0] sm:$0xf] %vm1184_vm3, %v1501_v58  ;;  %v655_v6 = vadd.f32 %v1768_v35, %v654_v61  ;;  %v783_v7 = vadd.f32 %v1768_v35, %v782_v2  ;;  %v657_v9 = vpop.f32.mrb[31].mxu0  ;;  %v923_v10 = vsel %vm799_vm2, %v859_v63, %v778_v48  ;;  %v785_v14 = vpop.f32.mrb[31].mxu1 }
 0x122   : > { %1212 = vst.msk [vmem:[%s1785_s25 + $0x6c] sm:$0xf] %vm1184_vm3, %v1472_v62  ;;  %v889_v11 = vsel %vm799_vm2, %v825_v0, %v642_v49  ;;  %v921_v12 = vsel %vm799_vm2, %v857_v1, %v770_v50  ;;  %v666_v13 = vadd.f32 %v1575_v3, %v1768_v35  ;;  %v1504_v15 = vpack.c.bf16 %v923_v10, %v923_v10 }
 0x123   : > { %v1470_v16 = vpack.c.bf16 %v889_v11, %v889_v11  ;;  %v1502_v17 = vpack.c.bf16 %v921_v12, %v921_v12  ;;  %v830_v18 = vmax.f32 %v663_v4, 0.0  ;;  %v862_v19 = vmax.f32 %v791_v5, 0.0 }
 0x124   : > { %v828_v20 = vmax.f32 %v655_v6, 0.0  ;;  %v860_v21 = vmax.f32 %v783_v7, 0.0  ;;  %v831_v22 = vmax.f32 %v666_v13, 0.0  ;;  %1244 = vst.msk [vmem:[%s1785_s25 + $0xec] sm:$0xf] %vm1184_vm3, %v1504_v15  ;;  %v794_v24 = vadd.f32 %v1607_v8, %v1768_v35 }
 0x125   : > { %1210 = vst.msk [vmem:[%s1785_s25 + $0x64] sm:$0xf] %vm1184_vm3, %v1470_v16  ;;  %1242 = vst.msk [vmem:[%s1785_s25 + $0xe4] sm:$0xf] %vm1184_vm3, %v1502_v17  ;;  %v894_v23 = vsel %vm799_vm2, %v830_v18, %v663_v4  ;;  %v658_v25 = vadd.f32 %v1768_v35, %v657_v9  ;;  %v786_v26 = vadd.f32 %v1768_v35, %v785_v14 }
 0x126   : > { %v1475_v27 = vpack.c.bf16 %v894_v23, %v894_v23  ;;  %v926_v28 = vsel %vm799_vm2, %v862_v19, %v791_v5  ;;  %v892_v29 = vsel %vm799_vm2, %v828_v20, %v655_v6  ;;  %v924_v30 = vsel %vm799_vm2, %v860_v21, %v783_v7 }
 0x127   : > { %v1507_v31 = vpack.c.bf16 %v926_v28, %v926_v28  ;;  %v1473_v32 = vpack.c.bf16 %v892_v29, %v892_v29  ;;  %v1505_v33 = vpack.c.bf16 %v924_v30, %v924_v30  ;;  %v895_v34 = vsel %vm799_vm2, %v831_v22, %v666_v13 }
 0x128   : > { %1215 = vst.msk [vmem:[%s1785_s25 + $0x78] sm:$0xf] %vm1184_vm3, %v1475_v27  ;;  %v1476_v35 = vpack.c.bf16 %v895_v34, %v895_v34  ;;  %v863_v37 = vmax.f32 %v794_v24, 0.0  ;;  %v829_v38 = vmax.f32 %v658_v25, 0.0  ;;  %v861_v39 = vmax.f32 %v786_v26, 0.0 }
 0x129   : > { %1247 = vst.msk [vmem:[%s1785_s25 + $0xf8] sm:$0xf] %vm1184_vm3, %v1507_v31  ;;  %1213 = vst.msk [vmem:[%s1785_s25 + $0x70] sm:$0xf] %vm1184_vm3, %v1473_v32 }
 0x12a   : > { %1245 = vst.msk [vmem:[%s1785_s25 + $0xf0] sm:$0xf] %vm1184_vm3, %v1505_v33  ;;  %1216 = vst.msk [vmem:[%s1785_s25 + $0x7c] sm:$0xf] %vm1184_vm3, %v1476_v35  ;;  %v927_v40 = vsel %vm799_vm2, %v863_v37, %v794_v24  ;;  %v893_v41 = vsel %vm799_vm2, %v829_v38, %v658_v25  ;;  %v925_v42 = vsel %vm799_vm2, %v861_v39, %v786_v26 }
 0x12b   : > { %v1508_v43 = vpack.c.bf16 %v927_v40, %v927_v40  ;;  %v1474_v44 = vpack.c.bf16 %v893_v41, %v893_v41  ;;  %v1506_v45 = vpack.c.bf16 %v925_v42, %v925_v42 }
 0x12d   : > { %1248 = vst.msk [vmem:[%s1785_s25 + $0xfc] sm:$0xf] %vm1184_vm3, %v1508_v43  ;;  %1214 = vst.msk [vmem:[%s1785_s25 + $0x74] sm:$0xf] %vm1184_vm3, %v1474_v44 }
 0x12e   : > { %1246 = vst.msk [vmem:[%s1785_s25 + $0xf4] sm:$0xf] %vm1184_vm3, %v1506_v45 }
 0x12f PF: > { %s13_s12 = sadd.s32 1, %s1658_s12  }
 0x130   : > { %p10_p4 = scmp.ge.s32.totalorder %s13_s12, 4  }
 0x132   :  { %12 = sbr.rel (!%p10_p4) target bundleno = 1 (0x1), region = 62 }

// kernel: conv_block_pallas.3
= control target key start
LH: loop header
LB: loop body
LE: loop exit
PB: predicated region body
PF: predicated region fallthrough
CT: control target
= control target key end

     0   :  { %s3412_s21 = smov 0   ;;  %s3414_s22 = smov 0   ;;  %s5735_s0 = inlined_call_operand.vmem [shape: bf16[2,10,140,16], index: 0, kind: input, shape index: {}]   ;;  %s5736_s1 = inlined_call_operand.vmem [shape: bf16[432,16], index: 1, kind: input, shape index: {}]   ;;  %s5737_s2 = inlined_call_operand.vmem [shape: f32[1,16], index: 2, kind: input, shape index: {}]   ;;  %s5738_s3 = inlined_call_operand.vmem [shape: bf16[16,32], index: 3, kind: input, shape index: {}]   ;;  %s5739_s4 = inlined_call_operand.vmem [shape: f32[1,32], index: 4, kind: input, shape index: {}]   ;;  %s5740_s5 = inlined_call_operand.vmem [shape: bf16[2,8,100,32], index: 5, kind: input, shape index: {}]   ;;  %s5741_s6 = inlined_call_operand.vmem [shape: f32[2,8,100,32], index: 6, kind: output, shape index: {}]  }
   0x1   :  { %s3416_s23 = smov 0   ;;  %s3418_s24 = smov 0  }
   0x2   :  { %s3420_s25 = smov 0  }
   0x3 LB: > { %s25_s26 = sadd.s32 1, %s3357_s23  ;;  %s28_s27 = sadd.s32 1, %s3361_s24  ;;  %s3365_s25 = sphi %s3420_s25, %s16_s25   ;;  %s3361_s24 = sphi %s3418_s24, %s6021_s24   ;;  %s3357_s23 = sphi %s3416_s23, %s6020_s23   ;;  %s3353_s22 = sphi %s3414_s22, %s6019_s22   ;;  %s3349_s21 = sphi %s3412_s21, %s6018_s21  }
   0x4   : > { %p26_p0 = scmp.ge.s32.totalorder %s25_s26, 8  ;;  %p2933_p1 = scmp.ge.s32.totalorder %s3365_s25, 1 }
   0x5   : > { %p242_p2 = scmp.lt.s32.totalorder %s3365_s25, 17 }
   0x6   : > { %s6023_s26 = smov (%p26_p0, %s25_s26), 0  ;;  %s6025_s27 = smov (!%p26_p0, %s28_s27), %s3361_s24 }
   0x7   : > { %p243_p3 = pnand %p2933_p1, %p242_p2  ;;  %p30_p4 = scmp.ge.s32.totalorder %s6025_s27, 2 }
   0x9   : > { %s6027_s27 = smov (%p30_p4, %s6025_s27), 0  ;;  %246 = sbr.rel (%p243_p3) target bundleno = 923 (0x39b), region = 44 }
  0x10   : > { %p285_p5 = scmp.lt.s32.totalorder %s3353_s22, 1  ;;  %s3067_s28 = smul.u32 72, %s3349_s21  ;;  %vm1406_vm0 = vcmask 1041408   ;;  %vm401_vm1 = vsmask.f32 7424  ;;  %vm471_vm3 = vcmask 1046528  }
  0x11   : > { %s3367_s10 = smov 16   ;;  %s3368_s11 = smov 48   ;;  %vm1329_vm2 = vsmask.f32 2304  ;;  %vm1434_vm4 = vsmask.f32 1280 }
  0x12   : > { %s6029_s22 = smov (!%p285_p5, %s3353_s22), 1  ;;  %s3369_s12 = smov 32   ;;  %vm535_vm5 = vsmask.f32 6400  ;;  %vm1561_vm6 = vcmask 1040384   ;;  %vm615_vm7 = vcmask 1045504  }
  0x13   : > { %s3195_s29 = smul.u32 720, %s6029_s22  ;;  %s3370_s13 = smov 64   ;;  %vm5802_vm8 = vsmask.f32 256  ;;  %vm674_vm9 = vsmask.f32 5376 }
  0x14   : > { %s3371_s14 = smov 80   ;;  %s3372_s15 = smov 96   ;;  %vm1056_vm10 = vcmask 130048   ;;  %vm1071_vm11 = vcmask 261120   ;;  %vm726_vm12 = vcmask 1044480   ;;  %vm1086_vm13 = vcmask 392192  }
  0x15   : > { %s289_s8 = scalar_lea.vmem %s5735_s0, %s3195_s29  ;;  %s3373_s7 = smov 112   ;;  %vm1101_vm14 = vcmask 523264   ;;  %vm1116_vm15 = vcmask 654336  }
  0x16   : > { %s3451_s9 = scalar_lea.vmem %s289_s8, %s3067_s28  ;;  %p292_p6 = scmp.lt.s32.totalorder %s3349_s21, 7 }
  0x17   : > { %v2938_v0 = vld [vmem:[%s3451_s9 + $0x4c] sm:$0xf]  ;;  %v3455_v1 = vld [vmem:[%s3451_s9 + $0x50] sm:$0xf]  ;;  %v3458_v2 = vld [vmem:[%s3451_s9 + $0x54] sm:$0xf] }
  0x18   : > { %v3461_v3 = vld [vmem:[%s3451_s9 + $0x58] sm:$0xf]  ;;  %v3464_v4 = vld [vmem:[%s3451_s9 + $0x5c] sm:$0xf]  ;;  %v3467_v5 = vld [vmem:[%s3451_s9 + $0x60] sm:$0xf]  ;;  %v3470_v6 = vcombine.low %v2938_v0, %v3455_v1 }
  0x19   : > { %v3474_v7 = vcombine.low %v3458_v2, %v3461_v3  ;;  %v3478_v8 = vcombine.low %v3464_v4, %v3467_v5  ;;  %v2954_v9 = vld [vmem:[%s3451_s9 + $0x94] sm:$0xf]  ;;  %v3482_v10 = vld [vmem:[%s3451_s9 + $0x98] sm:$0xf]  ;;  %v3485_v11 = vld [vmem:[%s3451_s9 + $0x9c] sm:$0xf] }
  0x1a   : > { %773 = vrot.lane.b32.xlu1 %v3470_v6, %s3367_s10  ;;  %v3490_v12 = vld [vmem:[%s3451_s9 + $0xa0] sm:$0xf]  ;;  %v3493_v13 = vld [vmem:[%s3451_s9 + $0xa4] sm:$0xf]  ;;  %v3496_v14 = vld [vmem:[%s3451_s9 + $0xa8] sm:$0xf]  ;;  %v3499_v15 = vcombine.low %v2954_v9, %v3482_v10 }
  0x1b   : > { %5824 = vst [vmem:[#allocation2_spill] sm:$0xff] %v3474_v7  ;;  %v3503_v16 = vcombine.low %v3485_v11, %v3490_v12  ;;  %v3507_v17 = vcombine.low %v3493_v13, %v3496_v14  ;;  %v795_v18 = vshll.u32 %v3474_v7, 16  ;;  %v3511_v19 = vld [vmem:[%s3451_s9 + $0x64] sm:$0xf]  ;;  %v3514_v20 = vld [vmem:[%s3451_s9 + $0x68] sm:$0xf] }
  0x1c   : > { %v1407_v21 = vrot.slane %v3499_v15, 6  ;;  %v799_v22 = vshrl.u32 %v3474_v7, 16  ;;  %v803_v23 = vshll.u32 %v3478_v8, 16  ;;  %v1331_v24 = vshrl.u32 %v3499_v15, 16  ;;  %v312_v25 = vld [vmem:[%s3451_s9 + $0x4] sm:$0xf] }
  0x1d   : > { %v1408_v26 = vrot.slane %v3503_v16, 6  ;;  %v3522_v27 = vrot.slane %v795_v18, 1  ;;  %v1334_v28 = vshll.u32 %v3499_v15, 16  ;;  %v3527_v29 = vcombine.low %v3511_v19, %v3514_v20  ;;  %v3530_v30 = vld [vmem:[%s3451_s9 + $0x8] sm:$0xf]  ;;  %s6031_s21 = smov (!%p292_p6, %s3349_s21), 7 }
  0x1e   : > { %1420 = vrot.lane.b32.xlu0 %v1407_v21, %s3368_s11  ;;  %v805_v31 = vrot.slane %v803_v23, 1  ;;  %v1333_v32 = vrot.slane %v1331_v24, 5  ;;  %v807_v33 = vshrl.u32 %v3478_v8, 16  ;;  %v3537_v34 = vld [vmem:[%s3451_s9 + $0xc] sm:$0xf]  ;;  %v3540_v35 = vcombine.low %v312_v25, %v3530_v30 }
  0x1f   : > { %v1409_v36 = vsel %vm1406_vm0, %v1407_v21, %v1408_v26  ;;  %v801_v37 = vor.u32 %v799_v22, %v3522_v27  ;;  %v1336_v38 = vrot.slane %v1334_v28, 6  ;;  %v811_v39 = vshll.u32 %v3527_v29, 16  ;;  %v3550_v40 = vld [vmem:[%s3451_s9 + $0x10] sm:$0xf]  ;;  %v3553_v41 = vld [vmem:[%s3451_s9 + $0x6c] sm:$0xf] }
  0x20   : > { %5825 = vst [vmem:[#allocation3_spill] sm:$0xff] %v3540_v35  ;;  %1422 = vrot.lane.b32.xlu1 %v1409_v36, %s3368_s11  ;;  %v809_v42 = vor.u32 %v807_v33, %v805_v31  ;;  %v3558_v43 = vcombine.low %v3537_v34, %v3550_v40  ;;  %v403_v44 = vshrl.u32 %v3540_v35, 16  ;;  %v405_v45 = vshll.u32 %v3540_v35, 16  ;;  %v3563_v46 = vld [vmem:[%s3451_s9 + $0x70] sm:$0xf] }
  0x21   : > { %v3566_v47 = vsel %vm401_vm1, %v801_v37, %v805_v31  ;;  %v1337_v48 = vor.u32 %v1336_v38, %v1333_v32  ;;  %v813_v49 = vrot.slane %v811_v39, 1  ;;  %v3569_v50 = vshrl.u32 %v3503_v16, 16 }
  0x22   : > { %5826 = vst [vmem:[#allocation4_spill] sm:$0xff] %v3558_v43  ;;  %1282 = vrot.lane.b32.xlu0 %v3566_v47, %s3367_s10  ;;  %v407_v51 = vrot.slane %v405_v45, 1  ;;  %v410_v52 = vshll.u32 %v3558_v43, 16  ;;  %v3575_v53 = vshll.u32 %v3503_v16, 16  ;;  %v3579_v54 = vcombine.low %v3553_v41, %v3563_v46 }
  0x23   : > { %5827 = vst [vmem:[#allocation5_spill] sm:$0xff] %v3569_v50  ;;  %v3582_v55 = vsel %vm401_vm1, %v809_v42, %v813_v49  ;;  %v1341_v56 = vrot.slane %v3569_v50, 5  ;;  %v815_v57 = vshrl.u32 %v3527_v29, 16  ;;  %v788_v63 = vshrl.u32 %v3470_v6, 16  ;;  %v316_v42 = vld [vmem:[%s3451_s9 + $0x14] sm:$0xf] }
  0x24   : > { %5828 = vst [vmem:[#allocation6_spill] sm:$0xff] %v3575_v53  ;;  %1392 = vrot.lane.b32.xlu1 %v1337_v48, %s3369_s12  ;;  %v408_v58 = vor.u32 %v407_v51, %v403_v44  ;;  %v412_v59 = vrot.slane %v410_v52, 1  ;;  %v1344_v60 = vrot.slane %v3575_v53, 6  ;;  %v819_v61 = vshll.u32 %v3579_v54, 16  ;;  %v3617_v44 = vld [vmem:[%s3451_s9 + $0x18] sm:$0xf] }
  0x25   : > { %v817_v62 = vor.u32 %v815_v57, %v813_v49  ;;  %v790_v0 = vshll.u32 %v3470_v6, 16  ;;  %v3599_v22 = vshrl.u32 %v3507_v17, 16  ;;  %v3602_v25 = vshll.u32 %v3507_v17, 16 }
  0x26   : > { %1284 = vrot.lane.b32.xlu0 %v3582_v55, %s3367_s10  ;;  %v413_v9 = vsel %vm401_vm1, %v408_v58, %v412_v59  ;;  %v1345_v18 = vor.u32 %v1344_v60, %v1341_v56  ;;  %v3596_v21 = vrot.slane %v819_v61, 1  ;;  %v472_v38 = vrot.slane %v3540_v35, 1 }
  0x27   : > { %v792_v23 = vrot.slane %v790_v0, 1  ;;  %v1350_v36 = vrot.slane %v3599_v22, 5  ;;  %v1353_v37 = vrot.slane %v3602_v25, 6  ;;  %v473_v39 = vrot.slane %v3558_v43, 1 }
  0x28   : > { %457 = vrot.lane.b32.xlu1 %v413_v9, %s3367_s10  ;;  %v1346_v31 = vsel %vm1329_vm2, %v1337_v48, %v1345_v18  ;;  %v3608_v32 = vsel %vm401_vm1, %v817_v62, %v3596_v21  ;;  %v1435_v48 = vrot.slane %v1331_v24, 6  ;;  %v1436_v49 = vrot.slane %v1334_v28, 7 }
  0x29   : > { %5829 = vst [vmem:[#allocation7_spill] sm:$0xff] %v3608_v32  ;;  %v793_v33 = vor.u32 %v792_v23, %v788_v63  ;;  %v3627_v51 = vor.u32 %v1353_v37, %v1350_v36  ;;  %v1438_v56 = vrot.slane %v3569_v50, 6  ;;  %v1439_v57 = vrot.slane %v3575_v53, 7 }
  0x2a   : > { %1394 = vrot.lane.b32.xlu0 %v1346_v31, %s3369_s12  ;;  %v856_v58 = vrot.slane %v3470_v6, 1  ;;  %v857_v60 = vrot.slane %v3474_v7, 1  ;;  %v3638_v24 = vcombine.low %v316_v42, %v3617_v44  ;;  %v1437_v15 = vor.u32 %v1436_v49, %v1435_v48 }
  0x2b   : > { %v798_v45 = vsel %vm401_vm1, %v793_v33, %v3522_v27  ;;  %v474_v27 = vsel %vm471_vm3, %v472_v38, %v473_v39  ;;  %v1355_v28 = vsel %vm1329_vm2, %v1345_v18, %v3627_v51  ;;  %v3644_v61 = vor.u32 %v1439_v57, %v1438_v56 }
  0x2c   : > { %1286 = vrot.lane.b32.xlu1 %v3608_v32, %s3367_s10  ;;  %v3648_v62 = vcombine.low %v3530_v30, %v3537_v34  ;;  %v3651_v6 = vcombine.low %v3550_v40, %v316_v42  ;;  %v858_v63 = vsel %vm471_vm3, %v856_v58, %v857_v60  ;;  %v414_v0 = vshrl.u32 %v3558_v43, 16 }
  0x2d   : > { %v5746_v9 = vshll.u32 %v3638_v24, 16  ;;  %v3661_v18 = vcombine.low %v3455_v1, %v3458_v2  ;;  %v3665_v30 = vcombine.low %v3482_v10, %v3485_v11  ;;  %v3670_v34 = vcombine.low %v3461_v3, %v3464_v4 }
  0x2e   : > { %842 = vrot.lane.b32.xlu0 %v798_v45, %s3369_s12  ;;  %v1441_v40 = vsel %vm1434_vm4, %v1437_v15, %v3644_v61  ;;  %v508_v23 = vrot.slane %v3648_v62, 1  ;;  %v509_v31 = vrot.slane %v3651_v6, 1  ;;  %v3678_v1 = vcombine.low %v3490_v12, %v3493_v13 }
  0x2f   : > { %v416_v2 = vor.u32 %v414_v0, %v412_v59  ;;  %v3685_v3 = vrot.slane %v5746_v9, 1  ;;  %v1486_v4 = vshrl.u32 %v3665_v30, 16  ;;  %v1489_v10 = vshll.u32 %v3665_v30, 16 }
  0x30   : > { %775 = vrot.lane.b32.xlu1 %v3474_v7, %s3367_s10  ;;  %v510_v11 = vsel %vm471_vm3, %v508_v23, %v509_v31  ;;  %v892_v12 = vrot.slane %v3661_v18, 1  ;;  %v893_v13 = vrot.slane %v3670_v34, 1  ;;  %v1494_v59 = vshrl.u32 %v3678_v1, 16 }
  0x31   : > { %v1497_v33 = vshll.u32 %v3678_v1, 16  ;;  %v421_v36 = vsel %vm401_vm1, %v416_v2, %v3685_v3  ;;  %v1488_v37 = vrot.slane %v1486_v4, 6  ;;  %v1491_v38 = vrot.slane %v1489_v10, 7 }
  0x32   : > { %485 = vrot.lane.b32.xlu0 %v474_v27, %s3369_s12  ;;  %v894_v42 = vsel %vm471_vm3, %v892_v12, %v893_v13  ;;  %v1496_v45 = vrot.slane %v1494_v59, 6  ;;  %v3715_v49 = vcombine.low %v3467_v5, %v3511_v19  ;;  %v5742_v56 = vrot.slane %v3507_v17, 6 }
  0x33   : > { %v1499_v48 = vrot.slane %v1497_v33, 7  ;;  %v1492_v57 = vor.u32 %v1491_v38, %v1488_v37  ;;  %v537_v27 = vshrl.u32 %v3648_v62, 16  ;;  %v540_v58 = vshll.u32 %v3648_v62, 16 }
  0x34   : > { %1396 = vrot.lane.b32.xlu1 %v1355_v28, %s3369_s12  ;;  %v545_v28 = vshrl.u32 %v3651_v6, 16  ;;  %v1411_v5 = vsel %vm1406_vm0, %v1408_v26, %v5742_v56  ;;  %v5744_v19 = vrot.slane %v3638_v24, 1  ;;  %v920_v12 = vshrl.u32 %v3661_v18, 16 }
  0x35   : > { %v542_v23 = vrot.slane %v540_v58, 2  ;;  %v923_v26 = vshll.u32 %v3661_v18, 16  ;;  %v931_v37 = vshll.u32 %v3670_v34, 16  ;;  %v2960_v58 = vld [vmem:[%s3451_s9 + $0xac] sm:$0xf] }
  0x36   : > { %869 = vrot.lane.b32.xlu0 %v858_v63, %s3368_s11  ;;  %v548_v63 = vshll.u32 %v3651_v6, 16  ;;  %v547_v2 = vrot.slane %v545_v28, 1  ;;  %v476_v38 = vsel %vm471_vm3, %v473_v39, %v5744_v19  ;;  %v3756_v28 = vld [vmem:[%s3451_s9 + $0xb0] sm:$0xf] }
  0x37   : > { %v933_v56 = vrot.slane %v931_v37, 2  ;;  %v1682_v37 = vrot.slane %v3602_v25, 1 }
  0x38   : > { %1464 = vrot.lane.b32.xlu1 %v1441_v40, %s3370_s13  ;;  %v539_v40 = vrot.slane %v537_v27, 1 }
  0x3a   : > { %1462 = vrot.lane.b32.xlu0 %v1437_v15, %s3370_s13  ;;  %v3723_v15 = vor.u32 %v1499_v48, %v1496_v45  ;;  %v1442_v45 = vrot.slane %v3599_v22, 6  ;;  %v1443_v48 = vrot.slane %v3602_v25, 7 }
  0x3c   : > { %521 = vrot.lane.b32.xlu1 %v510_v11, %s3368_s11  ;;  %v550_v11 = vrot.slane %v548_v63, 2  ;;  %v925_v63 = vrot.slane %v923_v26, 2 }
  0x3e   : > { %459 = vrot.lane.b32.xlu0 %v421_v36, %s3367_s10  ;;  %v928_v36 = vshrl.u32 %v3670_v34, 16  ;;  %v3752_v27 = vor.u32 %v550_v11, %v547_v2 }
  0x40   : > { %905 = vrot.lane.b32.xlu1 %v894_v42, %s3370_s13  ;;  %v5743_v42 = vrot.slane %v3478_v8, 1 }
  0x42   : > { %844 = vrot.lane.b32.xlu0 %v3566_v47, %s3369_s12  ;;  %v1501_v47 = vsel %vm1434_vm4, %v1492_v57, %v3723_v15  ;;  %v860_v39 = vsel %vm471_vm3, %v857_v60, %v5743_v42  ;;  %v5745_v60 = vrot.slane %v3678_v1, 7 }
  0x44   : > { %1547 = vrot.lane.b32.xlu1 %v1492_v57, %s3371_s14  ;;  %v543_v57 = vor.u32 %v542_v23, %v539_v40  ;;  %v3764_v40 = vor.u32 %v1443_v48, %v1442_v45  ;;  %v3767_v23 = vcombine.low %v2960_v58, %v3756_v28  ;;  %v1680_v45 = vrot.slane %v3575_v53, 1 }
  0x45   : > { %v1684_v48 = vor.u32 %v1682_v37, %v3599_v22 }
  0x46   : > { %1424 = vrot.lane.b32.xlu0 %v1411_v5, %s3368_s11  ;;  %v930_v5 = vrot.slane %v928_v36, 1  ;;  %v1445_v26 = vsel %vm1434_vm4, %v3644_v61, %v3764_v40  ;;  %v3782_v36 = vshll.u32 %v3767_v23, 16 }
  0x48   : > { %1666 = vrot.lane.b32.xlu1 %v3503_v16, %s3367_s10  ;;  %v922_v16 = vrot.slane %v920_v12, 1  ;;  %v3773_v11 = vor.u32 %v933_v56, %v930_v5  ;;  %v1562_v12 = vrot.slane %v3665_v30, 7  ;;  %v3787_v56 = vld [vmem:[%s3451_s9 + $0x1c] sm:$0xf]  ;;  %v940_v5 = vshll.u32 %v3715_v49, 16 }
  0x49   : > { %v1029_v30 = vrot.slane %v3474_v7, 2  ;;  %v5832_v7 = vmov 0  }
  0x4a   : > { %1549 = vrot.lane.b32.xlu0 %v1501_v47, %s3371_s14  ;;  %v552_v47 = vsel %vm535_vm5, %v543_v57, %v3752_v27  ;;  %v926_v2 = vor.u32 %v925_v63, %v922_v16  ;;  %v1564_v61 = vsel %vm1561_vm6, %v1562_v12, %v5745_v60  ;;  %v1685_v57 = vrot.slane %v3782_v36, 1 }
  0x4b   : > { %v3800_v16 = vcombine.low %v3617_v44, %v3787_v56  ;;  %v937_v63 = vshrl.u32 %v3715_v49, 16  ;;  %v616_v44 = vrot.slane %v3648_v62, 2 }
  0x4c   : > { %487 = vrot.lane.b32.xlu1 %v476_v38, %s3369_s12  ;;  %v935_v38 = vsel %vm535_vm5, %v926_v2, %v3773_v11  ;;  %v3811_v2 = vcombine.low %v3496_v14, %v2960_v58 }
  0x4d   : > { %v5748_v14 = vrot.slane %v3800_v16, 1  ;;  %v939_v58 = vrot.slane %v937_v63, 1  ;;  %v998_v63 = vrot.slane %v3661_v18, 2 }
  0x4e   : > { %1668 = vrot.lane.b32.xlu0 %v3507_v17, %s3367_s10  ;;  %v5752_v9 = vshll.u32 %v3811_v2, 16 }
  0x50   : > { %871 = vrot.lane.b32.xlu1 %v860_v39, %s3368_s11  ;;  %v3807_v39 = vcombine.low %v3514_v20, %v3553_v41  ;;  %v1686_v20 = vsel %vm401_vm1, %v1684_v48, %v1685_v57  ;;  %v5751_v41 = vrot.slane %v3651_v6, 2  ;;  %v5754_v48 = vshrl.u32 %v3811_v2, 16 }
  0x52   : > { %598 = vrot.lane.b32.xlu0 %v552_v47, %s3370_s13  ;;  %v1681_v47 = vor.u32 %v1680_v45, %v3569_v50  ;;  %v946_v42 = vshrl.u32 %v3807_v39, 16  ;;  %v942_v45 = vrot.slane %v940_v5, 2  ;;  %v949_v19 = vshll.u32 %v3807_v39, 16 }
  0x53   : > { %v1505_v18 = vrot.slane %v5754_v48, 6 }
  0x54   : > { %1466 = vrot.lane.b32.xlu1 %v1445_v26, %s3370_s13  ;;  %v895_v26 = vrot.slane %v3715_v49, 1  ;;  %v1683_v60 = vsel %vm401_vm1, %v1681_v47, %v1682_v37  ;;  %v951_v5 = vrot.slane %v949_v19, 2  ;;  %v3845_v37 = vor.u32 %v942_v45, %v939_v58 }
  0x55   : > { %v1508_v19 = vrot.slane %v5752_v9, 7  ;;  %v3868_v45 = vrot.slane %v1494_v59, 7 }
  0x56   : > { %981 = vrot.lane.b32.xlu0 %v935_v38, %s3371_s14  ;;  %v5747_v38 = vrot.slane %v3807_v39, 1  ;;  %v896_v59 = vsel %vm471_vm3, %v893_v13, %v895_v26 }
  0x58   : > { %1577 = vrot.lane.b32.xlu1 %v1564_v61, %s3372_s15  ;;  %v3827_v62 = vsel %vm471_vm3, %v895_v26, %v5747_v38  ;;  %v948_v61 = vrot.slane %v946_v42, 1  ;;  %v618_v38 = vsel %vm615_vm7, %v616_v44, %v5751_v41  ;;  %v512_v42 = vsel %vm471_vm3, %v509_v31, %v5748_v14  ;;  %v3289_v14 = vld [vmem:[%s5736_s1] sm:$0xff]  }
  0x59   : > { %v5750_v44 = vrot.slane %v3715_v49, 2  ;;  %v1596_v41 = vor.u32 %v3868_v45, %v1497_v33 }
  0x5a   : > { %1575 = vrot.lane.b32.xlu0 %v1562_v12, %s3372_s15  ;;  %v5749_v12 = vrot.slane %v3670_v34, 2  ;;  %v3847_v47 = vor.u32 %v951_v5, %v948_v61  ;;  %v554_v61 = vshrl.u32 %v3800_v16, 16  ;;  %v3886_v5 = vor.u32 %v1508_v19, %v1505_v18 }
  0x5b   : > { %v647_v18 = vrot.slane %v3558_v43, 2  ;;  %v5756_v19 = vrot.slane %v3638_v24, 2 }
  0x5c   : > { %1702 = vrot.lane.b32.xlu1 %v1686_v20, %s3369_s12  ;;  %v1000_v31 = vsel %vm615_vm7, %v998_v63, %v5749_v12  ;;  %v1593_v20 = vrot.slane %v1486_v4, 7  ;;  %v3864_v58 = vsel %vm535_vm5, %v3845_v37, %v3847_v47  ;;  %v3287_v4 = vld [vmem:[%s5736_s1 + $0x40] sm:$0xff]   ;;  %v556_v13 = vrot.slane %v554_v61, 1 }
  0x5d   : > { %3097 = vmatprep.subr.bf16.mxu0 %v3287_v4  ;;  %v1510_v33 = vsel %vm1434_vm4, %v3723_v15, %v3886_v5  ;;  %v3921_v4 = vshrl.u32 %v3767_v23, 16  ;;  %v5755_v15 = vrot.slane %v3569_v50, 7 }
  0x5e   : > { %1700 = vrot.lane.b32.xlu0 %v1683_v60, %s3369_s12  ;;  %v5753_v60 = vrot.slane %v3807_v39, 2  ;;  %v1594_v12 = vor.u32 %v1593_v20, %v1489_v10  ;;  %3098 = vmatpush3.bf16.msra.mxu0 %v3289_v14  ;;  %v5757_v14 = vrot.slane %v3478_v8, 2  ;;  %v1597_v9 = vsel %vm5802_vm8, %v1593_v20, %v1596_v41  ;;  %v3949_v20 = vld [vmem:[%s3451_s9 + $0xbc] sm:$0xf] }
  0x60   : > { %629 = vrot.lane.b32.xlu1 %v618_v38, %s3371_s14  ;;  %v557_v38 = vshll.u32 %v3800_v16, 16  ;;  %v3877_v63 = vsel %vm615_vm7, %v5750_v44, %v5753_v60  ;;  %v2963_v44 = vld [vmem:[%s3451_s9 + $0xb8] sm:$0xf]  ;;  %v3932_v60 = vld [vmem:[%s3451_s9 + $0x74] sm:$0xf] }
  0x61   : > { %5830 = vst [vmem:[#allocation8_spill] sm:$0xff] %v3877_v63 }
  0x62   : > { %523 = vrot.lane.b32.xlu0 %v512_v42, %s3368_s11  ;;  %v2962_v42 = vld [vmem:[%s3451_s9 + $0xb4] sm:$0xf]  ;;  %v559_v26 = vrot.slane %v557_v38, 2  ;;  %v5758_v38 = vrot.slane %v3599_v22, 7 }
  0x63   : > { %v3904_v10 = vcombine.low %v3756_v28, %v2962_v42  ;;  %v3913_v61 = vcombine.low %v2962_v42, %v2963_v44  ;;  %v3292_v28 = vld [vmem:[%s5736_s1 + $0x8] sm:$0xff]  }
  0x64   : > { %1011 = vrot.lane.b32.xlu1 %v1000_v31, %s3372_s15  ;;  %v3291_v31 = vld [vmem:[%s5736_s1 + $0x48] sm:$0xff]   ;;  %v1639_v42 = vor.u32 %v5758_v38, %v3602_v25  ;;  %v1031_v25 = vsel %vm615_vm7, %v1029_v30, %v5757_v14  ;;  %v1687_v30 = vor.u32 %v1685_v57, %v3921_v4  ;;  %v3980_v14 = vrot.slane %v414_v0, 2 }
  0x65   : > { %3099 = vmatprep.subr.bf16.mxu0 %v3291_v31  ;;  %v5760_v48 = vshll.u32 %v3904_v10, 16  ;;  %v3946_v41 = vshll.u32 %v3913_v61, 16  ;;  %v3984_v57 = vrot.slane %v410_v52, 3  ;;  %v5761_v38 = vmov 0   ;;  %v3297_v52 = vld [vmem:[%s5736_s1 + $0x58] sm:$0xff]  }
  0x66   : > { %907 = vrot.lane.b32.xlu0 %v896_v59, %s3370_s13  ;;  %v3923_v59 = vor.u32 %v559_v26, %v556_v13  ;;  %3100 = vmatpush3.bf16.msra.mxu0 %v3292_v28  ;;  %v3294_v13 = vld [vmem:[%s5736_s1 + $0x50] sm:$0xff]   ;;  %v649_v26 = vsel %vm615_vm7, %v647_v18, %v5756_v19  ;;  %v3954_v31 = vsel %vm5802_vm8, %v5755_v15, %v1639_v42  ;;  %v5768_v28 = vshrl.u32 %v3638_v24, 16 }
  0x67   : > { %5831 = vst [vmem:[#allocation9_spill] sm:$0xff] %v3954_v31  ;;  %v3295_v18 = vld [vmem:[%s5736_s1 + $0x10] sm:$0xff]   ;;  %v3969_v42 = vcombine.low %v2963_v44, %v3949_v20  ;;  %v3973_v15 = vcombine.low %v3563_v46, %v3932_v60  ;;  %3101 = vmatprep.subr.bf16.mxu0 %v3294_v13  ;;  %v1517_v44 = vrot.slane %v5760_v48, 7  ;;  %2516 = vmatprep.subr.bf16.mxu1 %v5761_v38  ;;  %v3283_v48 = vld [vmem:[%s5736_s1 + $0x88] sm:$0xff]   ;;  %v3298_v38 = vld [vmem:[%s5736_s1 + $0x18] sm:$0xff]   ;;  %v5835_v31 = vrot.slane %v3807_v39, 1 }
  0x68   : > { %1618 = vrot.lane.b32.xlu1 %v1594_v12, %s3373_s7  ;;  %v5759_v12 = vshrl.u32 %v3904_v10, 16  ;;  %v561_v19 = vsel %vm535_vm5, %v3752_v27, %v3923_v59  ;;  %v678_v0 = vrot.slane %v5768_v28, 2  ;;  %v5837_v28 = vrot.slane %v3904_v10, 7 }
  0x69   : > { %v1521_v13 = vshrl.u32 %v3969_v42, 16  ;;  %v1524_v27 = vshll.u32 %v3969_v42, 16  ;;  %v5834_v43 = vrot.slane %v3973_v15, 1  ;;  %v958_v32 = vshll.u32 %v3973_v15, 16 }
  0x6a   : > { %1551 = vrot.lane.b32.xlu0 %v1510_v33, %s3371_s14  ;;  %v3282_v33 = vld [vmem:[%s5736_s1 + $0x80] sm:$0xff]   ;;  %3102 = vmatpush3.bf16.msra.mxu0 %v3295_v18  ;;  %v1514_v46 = vrot.slane %v5759_v12, 6  ;;  %v955_v18 = vshrl.u32 %v3973_v15, 16 }
  0x6b   : > { %2517 = vmatpush1.bf16.msra.mxu1 %v3282_v33  ;;  %v1523_v35 = vrot.slane %v1521_v13, 6  ;;  %v5833_v33 = vshll.u32 %v3638_v24, 16  ;;  %v4019_v50 = vsel %vm471_vm3, %v5835_v31, %v5834_v43  ;;  %3103 = vmatprep.subr.bf16.mxu0 %v3297_v52  ;;  %v3300_v31 = vld [vmem:[%s5736_s1 + $0x60] sm:$0xff]   ;;  %v960_v52 = vrot.slane %v958_v32, 2 }
  0x6c   : > { %1670 = vrot.lane.b32.xlu1 %v3767_v23, %s3367_s10  ;;  %2518 = vmatprep.subr.bf16.mxu1 %v5832_v7  ;;  %v957_v43 = vrot.slane %v955_v18, 1  ;;  %v4059_v32 = vrot.slane %v1521_v13, 7  ;;  %v2949_v13 = vld [vmem:[%s3451_s9 + $0x78] sm:$0xf] }
  0x6d   : > { %v679_v12 = vrot.slane %v5833_v33, 3  ;;  %v4030_v33 = vor.u32 %v1517_v44, %v1514_v46  ;;  %v4050_v46 = vld [vmem:[%s3451_s9 + $0x20] sm:$0xf] }
  0x6e   : > { %1620 = vrot.lane.b32.xlu0 %v1597_v9, %s3373_s7  ;;  %v1526_v9 = vrot.slane %v1524_v27, 7  ;;  %3104 = vmatpush3.bf16.msra.mxu0 %v3298_v38  ;;  %v3301_v38 = vld [vmem:[%s5736_s1 + $0x20] sm:$0xff]   ;;  %v4072_v18 = vor.u32 %v960_v52, %v957_v43 }
  0x6f   : > { %2519 = vmatpush1.bf16.msra.mxu1 %v3283_v48  ;;  %v4066_v44 = vor.u32 %v679_v12, %v678_v0  ;;  %3105 = vmatprep.subr.bf16.mxu0 %v3300_v31  ;;  %v5842_v12 = vrot.slane %v3921_v4, 7  ;;  %v5843_v0 = vrot.slane %v3973_v15, 2  ;;  %v3303_v31 = vld [vmem:[%s5736_s1 + $0x68] sm:$0xff]  }
  0x70   : > { %660 = vrot.lane.b32.xlu1 %v649_v26, %s3372_s15  ;;  %v5836_v26 = vrot.slane %v3969_v42, 7  ;;  %v4032_v63 = vor.u32 %v1526_v9, %v1523_v35  ;;  %v3285_v35 = vld [vmem:[%s5736_s1 + $0x90] sm:$0xff]   ;;  %2520 = vmatprep.subr.bf16.mxu1 %v5832_v7 }
  0x72   : > { %v4026_v53 = vsel %vm1561_vm6, %v5837_v28, %v5836_v26  ;;  %600 = vrot.lane.b32.xlu0 %v561_v19, %s3370_s13  ;;  %v944_v28 = vsel %vm535_vm5, %v3773_v11, %v3845_v37  ;;  %v677_v19 = vor.u32 %v3984_v57, %v3980_v14  ;;  %v4056_v11 = vsel %vm1434_vm4, %v4030_v33, %v4032_v63 }
  0x73   : > { %5838 = vst [vmem:[#allocation10_spill] sm:$0xff] %v4026_v53  ;;  %v5839_v14 = vrot.slane %v3946_v41, 1  ;;  %v5841_v26 = vshrl.u32 %v3904_v10, 16  ;;  %v1605_v37 = vor.u32 %v4059_v32, %v1524_v27  ;;  %3106 = vmatpush3.bf16.msra.mxu0 %v3301_v38  ;;  %v5846_v27 = vrot.slane %v3811_v2, 7  ;;  %2521 = vmatpush1.bf16.msra.mxu1 %v3285_v35 }
  0x74   : > { %1042 = vrot.lane.b32.xlu1 %v1031_v25, %s3373_s7  ;;  %v5840_v25 = vshrl.u32 %v3811_v2, 16  ;;  %v4107_v38 = vsel %vm535_vm5, %v3847_v47, %v4072_v18  ;;  %2522 = vmatprep.subr.bf16.mxu1 %v5832_v7  ;;  %v681_v35 = vsel %vm674_vm9, %v677_v19, %v4066_v44 }
  0x75   : > { %v1689_v57 = vsel %vm401_vm1, %v1687_v30, %v5839_v14  ;;  %v4078_v48 = vrot.slane %v5841_v26, 7  ;;  %v1642_v30 = vor.u32 %v5842_v12, %v3782_v36  ;;  %v5844_v14 = vrot.slane %v3807_v39, 2  ;;  %5848 = vst [vmem:[#allocation12_spill] sm:$0xff] %v4107_v38  ;;  %3107 = vmatprep.subr.bf16.mxu0 %v3303_v31  ;;  %v3290_v31 = vld [vmem:[%s5736_s1 + $0xa0] sm:$0xff]  }
  0x76   : > { %v4070_v9 = vrot.slane %v5840_v25, 7  ;;  %983 = vrot.lane.b32.xlu0 %v944_v28, %s3371_s14  ;;  %v4096_v28 = vcombine.low %v3787_v56, %v4050_v46  ;;  %v5847_v26 = vrot.slane %v3678_v1, 7  ;;  %v5771_v39 = vrot.slane %v3800_v16, 2  ;;  %v3286_v25 = vld [vmem:[%s5736_s1 + $0x98] sm:$0xff]   ;;  %v3305_v56 = vld [vmem:[%s5736_s1 + $0x28] sm:$0xff]  }
  0x77   : > { %v4089_v43 = vsel %vm615_vm7, %v5844_v14, %v5843_v0  ;;  %v4118_v1 = vsel %vm5802_vm8, %v4078_v48, %v1605_v37  ;;  %v5850_v12 = vrot.slane %v3599_v22, 7  ;;  %v5852_v0 = vshll.u32 %v3811_v2, 16  ;;  %3108 = vmatpush3.bf16.msra.mxu0 %v3305_v56  ;;  %v3308_v22 = vld [vmem:[%s5736_s1 + $0x70] sm:$0xff]   ;;  %2523 = vmatpush1.bf16.msra.mxu1 %v3286_v25 }
  0x78   : > { %5845 = vst [vmem:[#allocation11_spill] sm:$0xff] %v4089_v43  ;;  %v1566_v52 = vsel %vm1561_vm6, %v5847_v26, %v5846_v27  ;;  %1704 = vrot.lane.b32.xlu1 %v1689_v57, %s3369_s12  ;;  %5849 = vst [vmem:[#allocation13_spill] sm:$0xff] %v4118_v1  ;;  %v4132_v57 = vcombine.low %v3932_v60, %v2949_v13  ;;  %v5853_v37 = vrot.slane %v3651_v6, 2  ;;  %v5772_v60 = vshrl.u32 %v4096_v28, 16  ;;  %v3309_v27 = vld [vmem:[%s5736_s1 + $0x30] sm:$0xff]  }
  0x79   : > { %v4123_v47 = vsel %vm5802_vm8, %v5850_v12, %v1642_v30  ;;  %v1599_v14 = vor.u32 %v4070_v9, %v5852_v0  ;;  %v5773_v30 = vshll.u32 %v4096_v28, 16  ;;  %v5774_v6 = vrot.slane %v3527_v29, 2  ;;  %2524 = vmatprep.subr.bf16.mxu1 %v5832_v7  ;;  %3109 = vmatprep.subr.bf16.mxu0 %v3308_v22  ;;  %v4161_v12 = vld [vmem:[%s3451_s9 + $0xc0] sm:$0xf]  ;;  %v3312_v0 = vld [vmem:[%s5736_s1 + $0x78] sm:$0xff]  }
  0x7a   : > { %5851 = vst [vmem:[#allocation14_spill] sm:$0xff] %v4123_v47  ;;  %1579 = vrot.lane.b32.xlu0 %v1566_v52, %s3372_s15  ;;  %v620_v19 = vsel %vm615_vm7, %v5853_v37, %v5771_v39  ;;  %v823_v26 = vshrl.u32 %v3579_v54, 16  ;;  %v827_v25 = vshll.u32 %v4132_v57, 16  ;;  %v5854_v37 = vrot.slane %v3715_v49, 2  ;;  %v4179_v39 = vld [vmem:[%s3451_s9 + $0xc4] sm:$0xf] }
  0x7b   : > { %v1600_v52 = vsel %vm5802_vm8, %v3868_v45, %v1599_v14  ;;  %3110 = vmatpush3.bf16.msra.mxu0 %v3309_v27  ;;  %v5855_v45 = vrot.slane %v3670_v34, 2  ;;  %v682_v22 = vrot.slane %v5772_v60, 2  ;;  %5856 = vst [vmem:[#allocation15_spill] sm:$0xff] %v4179_v39  ;;  %2525 = vmatpush1.bf16.msra.mxu1 %v3290_v31  ;;  %v3293_v27 = vld [vmem:[%s5736_s1 + $0xa8] sm:$0xff]   ;;  %v3313_v34 = vld [vmem:[%s5736_s1 + $0x38] sm:$0xff]   ;;  %v5858_v49 = vrot.slane %v3478_v8, 2 }
  0x7c   : > { %712 = vrot.lane.b32.xlu1 %v681_v35, %s3373_s7  ;;  %v4164_v35 = vld [vmem:[%s3451_s9 + $0x7c] sm:$0xf]  ;;  %v825_v31 = vor.u32 %v823_v26, %v3596_v21  ;;  %2526 = vmatprep.subr.bf16.mxu1 %v5832_v7  ;;  %v4203_v60 = vrot.slane %v827_v25, 1  ;;  %v5860_v25 = vrot.slane %v3638_v24, 2 }
  0x7d   : > { %v1002_v14 = vsel %vm615_vm7, %v5855_v45, %v5854_v37  ;;  %v4185_v56 = vcombine.low %v2949_v13, %v4164_v35  ;;  %v1033_v37 = vsel %vm615_vm7, %v5858_v49, %v5774_v6  ;;  %v1359_v45 = vrot.slane %v3921_v4, 5  ;;  %3111 = vmatprep.subr.bf16.mxu0 %v3312_v0  ;;  %v3296_v0 = vld [vmem:[%s5736_s1 + $0xb0] sm:$0xff]  }
  0x7e   : > { %631 = vrot.lane.b32.xlu0 %v620_v19, %s3371_s14  ;;  %v683_v19 = vrot.slane %v5773_v30, 3  ;;  %v4201_v13 = vcombine.low %v4161_v12, %v4179_v39  ;;  %v5859_v6 = vrot.slane %v4096_v28, 2 }
  0x7f   : > { %5857 = vst [vmem:[#allocation16_spill] sm:$0xff] %v4185_v56  ;;  %v5775_v30 = vrot.slane %v4185_v56, 1  ;;  %v964_v47 = vshrl.u32 %v4185_v56, 16  ;;  %v967_v49 = vshll.u32 %v4185_v56, 16  ;;  %3112 = vmatpush3.bf16.msra.mxu0 %v3313_v34  ;;  %2527 = vmatpush1.bf16.msra.mxu1 %v3293_v27  ;;  %v4233_v27 = vsel %vm401_vm1, %v825_v31, %v4203_v60  ;;  %v3299_v31 = vld [vmem:[%s5736_s1 + $0xb8] sm:$0xff]  }
  0x80   : > { %1622 = vrot.lane.b32.xlu1 %v1600_v52, %s3373_s7  ;;  %v1362_v52 = vrot.slane %v3782_v36, 6  ;;  %v1530_v21 = vshrl.u32 %v4201_v13, 16  ;;  %v1533_v26 = vshll.u32 %v4201_v13, 16  ;;  %v651_v43 = vsel %vm615_vm7, %v5860_v25, %v5859_v6  ;;  %2528 = vmatprep.subr.bf16.mxu1 %v5832_v7 }
  0x81   : > { %v4217_v1 = vor.u32 %v683_v19, %v682_v22  ;;  %v966_v34 = vrot.slane %v964_v47, 1  ;;  %v969_v19 = vrot.slane %v967_v49, 2  ;;  %v5777_v53 = vrot.slane %v4201_v13, 7 }
  0x82   : > { %1013 = vrot.lane.b32.xlu0 %v1002_v14, %s3372_s15  ;;  %v5861_v14 = vrot.slane %v3973_v15, 1  ;;  %v1532_v6 = vrot.slane %v1530_v21, 6  ;;  %v1535_v22 = vrot.slane %v1533_v26, 7  ;;  %v4235_v25 = vor.u32 %v1362_v52, %v1359_v45 }
  0x83   : > { %v4241_v47 = vor.u32 %v969_v19, %v966_v34  ;;  %v685_v49 = vsel %vm674_vm9, %v4066_v44, %v4217_v1  ;;  %2529 = vmatpush1.bf16.msra.mxu1 %v3296_v0  ;;  %v5864_v45 = vrot.slane %v3969_v42, 7  ;;  %v5868_v0 = vrot.slane %v3973_v15, 2 }
  0x84   : > { %v4227_v38 = vsel %vm471_vm3, %v5861_v14, %v5775_v30  ;;  %1044 = vrot.lane.b32.xlu1 %v1033_v37, %s3373_s7  ;;  %v4239_v14 = vor.u32 %v1535_v22, %v1532_v6  ;;  %v5776_v37 = vrot.slane %v4185_v56, 2  ;;  %2530 = vmatprep.subr.bf16.mxu1 %v5832_v7  ;;  %v1364_v42 = vsel %vm1329_vm2, %v3627_v51, %v4235_v25  ;;  %v3302_v51 = vld [vmem:[%s5736_s1 + $0xc0] sm:$0xff]  }
  0x85   : > { %5862 = vst [vmem:[#allocation17_spill] sm:$0xff] %v4227_v38  ;;  %5863 = vst [vmem:[#allocation18_spill] sm:$0xff] %v4241_v47  ;;  %v4268_v52 = vsel %vm535_vm5, %v4072_v18, %v4241_v47  ;;  %v5870_v6 = vshrl.u32 %v3638_v24, 16  ;;  %v5871_v22 = vshll.u32 %v4096_v28, 16  ;;  %v5895_v38 = vrot.slane %v4096_v28, 2 }
  0x86   : > { %662 = vrot.lane.b32.xlu0 %v651_v43, %s3372_s15  ;;  %v4255_v43 = vsel %vm1561_vm6, %v5864_v45, %v5777_v53  ;;  %v4263_v44 = vsel %vm1434_vm4, %v4032_v63, %v4239_v14  ;;  %5867 = vst [vmem:[#allocation21_spill] sm:$0xff] %v4268_v52  ;;  %v4278_v34 = vsel %vm615_vm7, %v5868_v0, %v5776_v37  ;;  %v4281_v63 = vrot.slane %v1530_v21, 7 }
  0x87   : > { %5865 = vst [vmem:[#allocation19_spill] sm:$0xff] %v4255_v43  ;;  %5866 = vst [vmem:[#allocation20_spill] sm:$0xff] %v4263_v44  ;;  %v424_v18 = vor.u32 %v5870_v6, %v3685_v3  ;;  %v4288_v19 = vrot.slane %v5871_v22, 1  ;;  %2531 = vmatpush1.bf16.msra.mxu1 %v3299_v31  ;;  %v5780_v3 = vrot.slane %v4096_v28, 1  ;;  %v1447_v45 = vrot.slane %v3782_v36, 7  ;;  %v3306_v36 = vld [vmem:[%s5736_s1 + $0xc8] sm:$0xff]  }
  0x88   : > { %1288 = vrot.lane.b32.xlu1 %v4233_v27, %s3367_s10  ;;  %5869 = vst [vmem:[#allocation22_spill] sm:$0xff] %v4278_v34  ;;  %2532 = vmatprep.subr.bf16.mxu1 %v5832_v7  ;;  %v1608_v21 = vor.u32 %v4281_v63, %v1533_v26  ;;  %v5782_v0 = vrot.slane %v3767_v23, 6  ;;  %v4311_v26 = vshrl.u32 %v3913_v61, 16  ;;  %v5781_v53 = vrot.slane %v3527_v29, 1 }
  0x8a   : > { %714 = vrot.lane.b32.xlu0 %v685_v49, %s3373_s7  ;;  %v1446_v49 = vrot.slane %v3921_v4, 6  ;;  %v4305_v31 = vsel %vm5802_vm8, %v4059_v32, %v1608_v21  ;;  %5873 = vst [vmem:[#allocation24_spill] sm:$0xff] %v4311_v26  ;;  %v320_v32 = vld [vmem:[%s3451_s9 + $0x24] sm:$0xf] }
  0x8b   : > { %5872 = vst [vmem:[#allocation23_spill] sm:$0xff] %v4305_v31  ;;  %2533 = vmatpush1.bf16.msra.mxu1 %v3302_v51  ;;  %v5779_v51 = vrot.slane %v4311_v26, 7  ;;  %v4340_v47 = vcombine.low %v4050_v46, %v320_v32  ;;  %v5876_v46 = vrot.slane %v3921_v4, 7 }
  0x8c   : > { %1398 = vrot.lane.b32.xlu1 %v1364_v42, %s3369_s12  ;;  %v4294_v15 = vpop.permute.xlu1 %773  ;;  %v429_v42 = vsel %vm401_vm1, %v424_v18, %v4288_v19  ;;  %2534 = vmatprep.subr.bf16.mxu1 %v5832_v7  ;;  %v5874_v18 = vrot.slane %v3638_v24, 1  ;;  %v4327_v21 = vor.u32 %v1447_v45, %v1446_v49  ;;  %v3310_v49 = vld [vmem:[%s5736_s1 + $0xd0] sm:$0xff]  }
  0x8d   : > { %v1645_v45 = vor.u32 %v5779_v51, %v3946_v41  ;;  %v563_v51 = vshrl.u32 %v4340_v47, 16 }
  0x8e   : > { %777 = vrot.lane.b32.xlu0 %v3478_v8, %s3367_s10  ;;  %v478_v22 = vsel %vm471_vm3, %v5874_v18, %v5780_v3 }
  0x8f   : > { %2535 = vmatpush1.bf16.msra.mxu1 %v3306_v36  ;;  %v4358_v36 = vsel %vm5802_vm8, %v5876_v46, %v1645_v45  ;;  %v4377_v45 = vcombine.low %v4164_v35, %v4164_v35  ;;  %v4381_v46 = vcombine.low %v3949_v20, %v4161_v12 }
  0x90   : > { %846 = vrot.lane.b32.xlu1 %v3582_v55, %s3369_s12  ;;  %v4318_v6 = vpop.permute.xlu0 %1420  ;;  %v5875_v55 = vrot.slane %v3507_v17, 6  ;;  %2536 = vmatprep.subr.bf16.mxu1 %v5832_v7  ;;  %v1449_v17 = vsel %vm1434_vm4, %v3764_v40, %v4327_v21  ;;  %5877 = vst [vmem:[#allocation25_spill] sm:$0xff] %v4358_v36  ;;  %v5785_v7 = vrot.slane %v4340_v47, 1  ;;  %v566_v40 = vshll.u32 %v4340_v47, 16 }
  0x91   : > { %5879 = vst [vmem:[#allocation26_spill] sm:$0xff] %v4377_v45 }
  0x92   : > { %v4330_v30 = vpop.permute.xlu1 %1422  ;;  %461 = vrot.lane.b32.xlu0 %v429_v42, %s3367_s10  ;;  %v1413_v37 = vsel %vm1406_vm0, %v5875_v55, %v5782_v0  ;;  %v568_v0 = vrot.slane %v566_v40, 2 }
  0x93   : > { %2537 = vmatpush1.bf16.msra.mxu1 %v3310_v49  ;;  %v835_v49 = vshll.u32 %v4377_v45, 16  ;;  %v4405_v45 = vshll.u32 %v4381_v46, 16 }
  0x94   : > { %489 = vrot.lane.b32.xlu1 %v478_v22, %s3369_s12  ;;  %v4349_v42 = vpop.permute.xlu0 %1282  ;;  %v5878_v22 = vrot.slane %v3478_v8, 1 }
  0x95   : > { %v4399_v12 = vrot.slane %v835_v49, 1  ;;  %5882 = vst [vmem:[#allocation28_spill] sm:$0xff] %v4405_v45 }
  0x96   : > { %v4360_v18 = vpop.permute.xlu1 %1392  ;;  %1426 = vrot.lane.b32.xlu0 %v1413_v37, %s3368_s11  ;;  %v862_v55 = vsel %vm471_vm3, %v5878_v22, %v5781_v53  ;;  %v831_v37 = vshrl.u32 %v4132_v57, 16  ;;  %v565_v53 = vrot.slane %v563_v51, 1  ;;  %v4411_v51 = vld [vmem:[%s3451_s9 + $0xc8] sm:$0xf] }
  0x97   : > { %5881 = vst [vmem:[#allocation27_spill] sm:$0xff] %v4399_v12 }
  0x98   : > { %1468 = vrot.lane.b32.xlu1 %v1449_v17, %s3370_s13  ;;  %v4372_v4 = vpop.permute.xlu0 %1284  ;;  %v5880_v17 = vrot.slane %v3800_v16, 1  ;;  %v4397_v20 = vor.u32 %v831_v37, %v4203_v60  ;;  %v1519_v60 = vsel %vm1434_vm4, %v3886_v5, %v4030_v33  ;;  %v4421_v40 = vor.u32 %v568_v0, %v565_v53 }
  0x99   : > { %v3017_v37 = vcombine.low %v4411_v51, %v4411_v51 }
  0x9a   : > { %v4383_v22 = vpop.permute.xlu1 %457  ;;  %873 = vrot.lane.b32.xlu0 %v862_v55, %s3368_s11  ;;  %v514_v3 = vsel %vm471_vm3, %v5880_v17, %v5785_v7  ;;  %v4402_v55 = vld [vmem:[%s3451_s9 + $0x28] sm:$0xf]  ;;  %v5884_v17 = vrot.slane %v3946_v41, 1  ;;  %v570_v0 = vsel %vm535_vm5, %v3923_v59, %v4421_v40  ;;  %v5886_v59 = vrot.slane %v3904_v10, 7 }
  0x9b   : > { %v4426_v49 = vcombine.low %v320_v32, %v4402_v55  ;;  %v1539_v5 = vshrl.u32 %v3017_v37, 16  ;;  %v1542_v53 = vshll.u32 %v3017_v37, 16 }
  0x9c   : > { %909 = vrot.lane.b32.xlu1 %v3827_v62, %s3370_s13  ;;  %v4394_v36 = vpop.permute.xlu0 %1394  ;;  %v4416_v62 = vsel %vm401_vm1, %v4397_v20, %v4399_v12  ;;  %v1690_v7 = vor.u32 %v5884_v17, %v4311_v26  ;;  %v5787_v12 = vrot.slane %v4405_v45, 1 }
  0x9d   : > { %5883 = vst [vmem:[#allocation29_spill] sm:$0xff] %v4416_v62  ;;  %v1541_v32 = vrot.slane %v1539_v5, 6  ;;  %v1544_v62 = vrot.slane %v1542_v53, 7  ;;  %v434_v43 = vshll.u32 %v4426_v49, 16  ;;  %v5887_v5 = vrot.slane %v3811_v2, 7 }
  0x9e   : > { %v4407_v31 = vpop.permute.xlu1 %1286  ;;  %525 = vrot.lane.b32.xlu0 %v514_v3, %s3368_s11  ;;  %v1692_v17 = vsel %vm401_vm1, %v1690_v7, %v5787_v12  ;;  %v5789_v53 = vrot.slane %v4340_v47, 2 }
  0x9f   : > { %v1545_v52 = vor.u32 %v1544_v62, %v1541_v32  ;;  %v4468_v62 = vld [vmem:[%s3451_s9 + $0x80] sm:$0xf]  ;;  %v687_v32 = vrot.slane %v434_v43, 3 }
  0xa0   : > { %1672 = vrot.lane.b32.xlu1 %v3913_v61, %s3367_s10  ;;  %v4430_v3 = vpop.permute.xlu0 %842  ;;  %5889 = vst [vmem:[#allocation32_spill] sm:$0xff] %v4468_v62 }
  0xa1   : > { %v4462_v7 = vsel %vm1434_vm4, %v4239_v14, %v1545_v52  ;;  %v5890_v14 = vrot.slane %v3800_v16, 2 }
  0xa2   : > { %v4436_v33 = vpop.permute.xlu1 %775  ;;  %1553 = vrot.lane.b32.xlu0 %v1519_v60, %s3371_s14  ;;  %v5788_v60 = vshrl.u32 %v4426_v49, 16  ;;  %5888 = vst [vmem:[#allocation31_spill] sm:$0xff] %v4462_v7 }
  0xa3   : > { %v622_v52 = vsel %vm615_vm7, %v5890_v14, %v5789_v53 }
  0xa4   : > { %985 = vrot.lane.b32.xlu1 %v3864_v58, %s3371_s14  ;;  %v4444_v34 = vpop.permute.xlu0 %485  ;;  %v1568_v58 = vsel %vm1561_vm6, %v5887_v5, %v5886_v59  ;;  %v686_v2 = vrot.slane %v5788_v60, 2  ;;  %v5893_v60 = vld [vmem:[#allocation8_spill] sm:$0xff] }
  0xa6   : > { %v4451_v44 = vpop.permute.xlu1 %1396  ;;  %602 = vrot.lane.b32.xlu0 %v570_v0, %s3370_s13  ;;  %v4486_v0 = vcombine.low %v4164_v35, %v4468_v62  ;;  %v4497_v14 = vor.u32 %v687_v32, %v686_v2  ;;  %v4504_v35 = vld [vmem:[%s3451_s9 + $0xcc] sm:$0xf] }
  0xa7   : > { %5885 = vst [vmem:[#allocation30_spill] sm:$0xff] %v4451_v44  ;;  %v5897_v44 = vrot.slane %v4201_v13, 7  ;;  %v5900_v13 = vrot.slane %v3527_v29, 2 }
  0xa8   : > { %1706 = vrot.lane.b32.xlu1 %v1692_v17, %s3369_s12  ;;  %v4465_v12 = vpop.permute.xlu0 %869  ;;  %v5891_v17 = vshll.u32 %v3904_v10, 16  ;;  %5892 = vst [vmem:[#allocation33_spill] sm:$0xff] %v4486_v0  ;;  %v1573_v10 = vrot.slane %v3017_v37, 7  ;;  %v3018_v37 = vcombine.low %v4411_v51, %v4504_v35  ;;  %v689_v32 = vsel %vm674_vm9, %v4217_v1, %v4497_v14 }
  0xaa   : > { %v4473_v59 = vpop.permute.xlu1 %1464  ;;  %1581 = vrot.lane.b32.xlu0 %v1568_v58, %s3372_s15  ;;  %v1602_v5 = vor.u32 %v4078_v48, %v5891_v17  ;;  %v5894_v58 = vrot.slane %v4426_v49, 2  ;;  %v5790_v48 = vrot.slane %v3579_v54, 2  ;;  %v1267_v17 = vshll.u32 %v4486_v0, 16 }
  0xac   : > { %1015 = vrot.lane.b32.xlu1 %v5893_v60, %s3372_s15  ;;  %v4490_v7 = vpop.permute.xlu0 %1462  ;;  %v653_v16 = vsel %vm615_vm7, %v5895_v38, %v5894_v58  ;;  %v1603_v60 = vsel %vm5802_vm8, %v4070_v9, %v1602_v5  ;;  %v4512_v38 = vsel %vm1561_vm6, %v5897_v44, %v1573_v10  ;;  %v1611_v9 = vshrl.u32 %v3018_v37, 16 }
  0xad   : > { %5898 = vst [vmem:[#allocation34_spill] sm:$0xff] %v4512_v38  ;;  %v1035_v44 = vsel %vm615_vm7, %v5900_v13, %v5790_v48  ;;  %v4530_v5 = vrot.slane %v1267_v17, 1  ;;  %v1368_v58 = vrot.slane %v4311_v26, 5  ;;  %v1614_v38 = vshll.u32 %v3018_v37, 16  ;;  %v4543_v13 = vld [vmem:[%s3451_s9 + $0x84] sm:$0xf] }
  0xae   : > { %v4499_v53 = vpop.permute.xlu1 %521  ;;  %633 = vrot.lane.b32.xlu0 %v622_v52, %s3371_s14  ;;  %v1613_v10 = vrot.slane %v1611_v9, 7  ;;  %vm1131_vm6 = vcmask 785408  }
  0xaf   : > { %5896 = vst [vmem:[#allocation8_spill] sm:$0xff] %v4499_v53  ;;  %v4540_v53 = vrot.slane %v434_v43, 1  ;;  %v1270_v37 = vsel %vm401_vm1, %v4397_v20, %v4530_v5  ;;  %v322_v20 = vld [vmem:[%s3451_s9 + $0x2c] sm:$0xf] }
  0xb0   : > { %664 = vrot.lane.b32.xlu1 %v653_v16, %s3372_s15  ;;  %v4517_v2 = vpop.permute.xlu0 %459  ;;  %v1371_v16 = vrot.slane %v3946_v41, 6  ;;  %v1616_v48 = vor.u32 %v1614_v38, %v1613_v10  ;;  %v5792_v10 = vrot.slane %v3913_v61, 6 }
  0xb1   : > { %5899 = vst [vmem:[#allocation35_spill] sm:$0xff] %v4517_v2 }
  0xb2   : > { %v4522_v52 = vpop.permute.xlu1 %905  ;;  %1624 = vrot.lane.b32.xlu0 %v1603_v60, %s3373_s7  ;;  %v5902_v60 = vshrl.u32 %v4096_v28, 16  ;;  %v4553_v9 = vor.u32 %v1371_v16, %v1368_v58  ;;  %v5906_v58 = vrot.slane %v4185_v56, 2 }
  0xb4   : > { %716 = vrot.lane.b32.xlu1 %v689_v32, %s3373_s7  ;;  %v4535_v1 = vpop.permute.xlu0 %844  ;;  %v432_v2 = vor.u32 %v5902_v60, %v4288_v19  ;;  %v3001_v32 = vcombine.low %v4468_v62, %v4543_v13  ;;  %v4561_v19 = vsel %vm5802_vm8, %v4281_v63, %v1616_v48  ;;  %v1373_v63 = vsel %vm1329_vm2, %v4235_v25, %v4553_v9 }
  0xb5   : > { %5901 = vst [vmem:[#allocation36_spill] sm:$0xff] %v4535_v1  ;;  %5904 = vst [vmem:[#allocation38_spill] sm:$0xff] %v4561_v19  ;;  %v4589_v19 = vcombine.low %v4402_v55, %v322_v20  ;;  %vm1146_vm8 = vcmask 916480  }
  0xb6   : > { %v4545_v17 = vpop.permute.xlu1 %1547  ;;  %1046 = vrot.lane.b32.xlu0 %v1035_v44, %s3373_s7  ;;  %v4563_v44 = vrot.slane %v3001_v32, 2  ;;  %v437_v38 = vsel %vm401_vm1, %v432_v2, %v4540_v53  ;;  %v5908_v2 = vrot.slane %v3767_v23, 6 }
  0xb8   : > { %779 = vrot.lane.b32.xlu1 %v3527_v29, %s3367_s10  ;;  %v4557_v43 = vpop.permute.xlu0 %1424  ;;  %5905 = vst [vmem:[#allocation39_spill] sm:$0xff] %v4563_v44  ;;  %v4574_v16 = vsel %vm615_vm7, %v5906_v58, %v4563_v44  ;;  %v1415_v32 = vsel %vm1406_vm0, %v5908_v2, %v5792_v10  ;;  %v1451_v44 = vrot.slane %v3946_v41, 7  ;;  %v5910_v2 = vrot.slane %v3527_v29, 1 }
  0xb9   : > { %5903 = vst [vmem:[#allocation37_spill] sm:$0xff] %v4557_v43  ;;  %5907 = vst [vmem:[#allocation40_spill] sm:$0xff] %v4574_v16  ;;  %v5797_v10 = vrot.slane %v4589_v19, 1  ;;  %v572_v16 = vshrl.u32 %v4589_v19, 16  ;;  %v5913_v41 = vrot.slane %v4426_v49, 1 }
  0xba   : > { %v1667_v60 = vpop.permute.xlu1 %1666  ;;  %1290 = vrot.lane.b32.xlu0 %v1270_v37, %s3367_s10  ;;  %v5796_v37 = vrot.slane %v3579_v54, 1 }
  0xbc   : > { %463 = vrot.lane.b32.xlu1 %v437_v38, %s3367_s10  ;;  %v4580_v48 = vpop.permute.xlu0 %1549  ;;  %v1450_v38 = vrot.slane %v4311_v26, 6  ;;  %v864_v55 = vsel %vm471_vm3, %v5910_v2, %v5796_v37  ;;  %v5912_v26 = vld [vmem:[#allocation7_spill] sm:$0xff]  ;;  %v5916_v37 = vrot.slane %v4340_v47, 1 }
  0xbe   : > { %v4591_v58 = vpop.permute.xlu1 %487  ;;  %1400 = vrot.lane.b32.xlu0 %v1373_v63, %s3369_s12  ;;  %v575_v63 = vshll.u32 %v4589_v19, 16  ;;  %v4615_v62 = vor.u32 %v1451_v44, %v1450_v38 }
  0xbf   : > { %5909 = vst [vmem:[#allocation41_spill] sm:$0xff] %v4591_v58  ;;  %v516_v58 = vsel %vm471_vm3, %v5916_v37, %v5797_v10  ;;  %v5920_v37 = vld [vmem:[#allocation6_spill] sm:$0xff] }
  0xc0   : > { %1428 = vrot.lane.b32.xlu1 %v1415_v32, %s3368_s11  ;;  %v1669_v23 = vpop.permute.xlu0 %1668  ;;  %v5914_v32 = vrot.slane %v4096_v28, 1  ;;  %v1453_v44 = vsel %vm1434_vm4, %v4327_v21, %v4615_v62 }
  0xc2   : > { %v4606_v25 = vpop.permute.xlu1 %871  ;;  %848 = vrot.lane.b32.xlu0 %v5912_v26, %s3369_s12  ;;  %v480_v56 = vsel %vm471_vm3, %v5914_v32, %v5913_v41  ;;  %v577_v26 = vrot.slane %v575_v63, 2 }
  0xc3   : > { %5911 = vst [vmem:[#allocation42_spill] sm:$0xff] %v4606_v25  ;;  %v574_v25 = vrot.slane %v572_v16, 1  ;;  %v4641_v16 = vcombine.low %v4179_v39, %v4411_v51  ;;  %v4656_v51 = vld [vmem:[%s3451_s9 + $0x30] sm:$0xf] }
  0xc4   : > { %875 = vrot.lane.b32.xlu1 %v864_v55, %s3368_s11  ;;  %v4618_v2 = vpop.permute.xlu0 %598 }
  0xc5   : > { %5915 = vst [vmem:[#allocation7_spill] sm:$0xff] %v4618_v2  ;;  %v4634_v55 = vor.u32 %v577_v26, %v574_v25  ;;  %5919 = vst [vmem:[#allocation45_spill] sm:$0xff] %v4641_v16  ;;  %v5923_v25 = vld [vmem:[#allocation9_spill] sm:$0xff] }
  0xc6   : > { %v4625_v43 = vpop.permute.xlu1 %1466  ;;  %491 = vrot.lane.b32.xlu0 %v480_v56, %s3369_s12  ;;  %v5921_v56 = vld [vmem:[#allocation5_spill] sm:$0xff]  ;;  %v1817_v26 = vsel %vm1056_vm10, %v5923_v25, %v1669_v23  ;;  %v4668_v25 = vcombine.low %v322_v20, %v4656_v51 }
  0xc7   : > { %5917 = vst [vmem:[#allocation43_spill] sm:$0xff] %v4625_v43  ;;  %5918 = vst [vmem:[#allocation44_spill] sm:$0xff] %v4634_v55  ;;  %v5922_v63 = vrot.slane %v5921_v56, 7  ;;  %v5800_v56 = vshll.u32 %v4641_v16, 16 }
  0xc8   : > { %527 = vrot.lane.b32.xlu1 %v516_v58, %s3368_s11  ;;  %v4632_v38 = vpop.permute.xlu0 %981  ;;  %v579_v58 = vsel %vm535_vm5, %v4421_v40, %v4634_v55 }
  0xc9   : > { %v1637_v32 = vor.u32 %v5922_v63, %v5920_v37  ;;  %v4682_v20 = vrot.slane %v5800_v56, 1 }
  0xca   : > { %v4636_v41 = vpop.permute.xlu1 %1577  ;;  %1470 = vrot.lane.b32.xlu0 %v1453_v44, %s3370_s13 }
  0xcb   : > { %v1814_v40 = vsel %vm1056_vm10, %v1637_v32, %v1667_v60  ;;  %v2953_v60 = vld [vmem:[%s3451_s9 + $0x88] sm:$0xf]  ;;  %v5925_v32 = vrot.slane %v4405_v45, 1  ;;  %5926 = vst [vmem:[#allocation5_spill] sm:$0xff] %v4682_v20 }
  0xcc   : > { %1555 = vrot.lane.b32.xlu1 %v4056_v11, %s3371_s14  ;;  %v4648_v21 = vpop.permute.xlu0 %1575  ;;  %v4662_v11 = vshrl.u32 %v4381_v46, 16 }
  0xce   : > { %v1703_v44 = vpop.permute.xlu1 %1702  ;;  %911 = vrot.lane.b32.xlu0 %v4019_v50, %s3370_s13 }
  0xcf   : > { %v1836_v37 = vsel %vm1071_vm11, %v1817_v26, %v1703_v44  ;;  %v5801_v26 = vrot.slane %v4589_v19, 2 }
  0xd0   : > { %v1869_v63 = vshrl.u32 %v1836_v37, 16  ;;  %v1872_v10 = vshll.u32 %v1836_v37, 16  ;;  %604 = vrot.lane.b32.xlu1 %v579_v58, %s3370_s13  ;;  %v1701_v23 = vpop.permute.xlu0 %1700  ;;  %v1693_v58 = vor.u32 %v5925_v32, %v4662_v11 }
  0xd1   : > { %v1834_v50 = vsel %vm1071_vm11, %v1814_v40, %v1701_v23  ;;  %v5929_v23 = vrot.slane %v4340_v47, 2 }
  0xd2   : > { %v1871_v44 = vrot.slane %v1869_v63, 2  ;;  %v1874_v39 = vrot.slane %v1872_v10, 3  ;;  %v1862_v55 = vshrl.u32 %v1834_v50, 16  ;;  %v1865_v43 = vshll.u32 %v1834_v50, 16  ;;  %v4672_v2 = vpop.permute.xlu1 %629  ;;  %1674 = vrot.lane.b32.xlu0 %v4381_v46, %s3367_s10  ;;  %v5927_v10 = vld [vmem:[#allocation10_spill] sm:$0xff] }
  0xd3   : > { %5924 = vst [vmem:[#allocation6_spill] sm:$0xff] %v4672_v2  ;;  %v624_v50 = vsel %vm615_vm7, %v5929_v23, %v5801_v26  ;;  %v4694_v2 = vcombine.low %v4543_v13, %v2953_v60  ;;  %v1695_v47 = vsel %vm401_vm1, %v1693_v58, %v4682_v20  ;;  %v1271_v58 = vshrl.u32 %v4486_v0, 16 }
  0xd4   : > { %v1864_v37 = vrot.slane %v1862_v55, 2  ;;  %v1867_v40 = vrot.slane %v1865_v43, 3  ;;  %1583 = vrot.lane.b32.xlu1 %v5927_v10, %s3372_s15  ;;  %v4686_v63 = vpop.permute.xlu0 %523  ;;  %v4696_v32 = vor.u32 %v1874_v39, %v1871_v44  ;;  %v5933_v43 = vld [vmem:[#allocation12_spill] sm:$0xff]  ;;  %v442_v55 = vshll.u32 %v4668_v25, 16  ;;  %v5936_v39 = vld [vmem:[#allocation2_spill] sm:$0xff] }
  0xd5   : > { %5928 = vst [vmem:[#allocation9_spill] sm:$0xff] %v4686_v63  ;;  %5930 = vst [vmem:[#allocation10_spill] sm:$0xff] %v4694_v2  ;;  %v5803_v10 = vshrl.u32 %v4668_v25, 16  ;;  %v5934_v63 = vld [vmem:[#allocation4_spill] sm:$0xff]  ;;  %v1715_v23 = vsel %vm1056_vm10, %v5936_v39, %v4349_v42  ;;  %v1717_v13 = vsel %vm1056_vm10, %v3478_v8, %v4372_v4  ;;  %v5939_v39 = vrot.slane %v4132_v57, 2 }
  0xd6   : > { %5931 = vst [vmem:[#allocation46_spill] sm:$0xff] %v4696_v32  ;;  %v1868_v56 = vor.u32 %v1867_v40, %v1864_v37  ;;  %v4698_v1 = vpop.permute.xlu1 %1011  ;;  %987 = vrot.lane.b32.xlu0 %v5933_v43, %s3371_s14  ;;  %v1275_v43 = vshll.u32 %v4694_v2, 16  ;;  %v1731_v40 = vsel %vm1071_vm11, %v1717_v13, %v4394_v36  ;;  %v1380_v2 = vrot.slane %v4405_v45, 6  ;;  %v4738_v42 = vld [vmem:[%s3451_s9 + $0x34] sm:$0xf] }
  0xd7   : > { %5932 = vst [vmem:[#allocation47_spill] sm:$0xff] %v4698_v1  ;;  %v5940_v8 = vrot.slane %v3579_v54, 2  ;;  %v5941_v36 = vrot.slane %v4668_v25, 2  ;;  %v5942_v13 = vrot.slane %v4426_v49, 2  ;;  %v1273_v0 = vor.u32 %v1271_v58, %v4530_v5 }
  0xd8   : > { %635 = vrot.lane.b32.xlu1 %v624_v50, %s3371_s14  ;;  %v4710_v44 = vpop.permute.xlu0 %907  ;;  %v4714_v60 = vsel %vm674_vm9, %v1868_v56, %v4696_v32  ;;  %v690_v50 = vrot.slane %v5803_v10, 2  ;;  %v691_v56 = vrot.slane %v442_v55, 3  ;;  %v1377_v10 = vrot.slane %v4662_v11, 5 }
  0xd9   : > { %5935 = vst [vmem:[#allocation12_spill] sm:$0xff] %v4710_v44  ;;  %v1037_v4 = vsel %vm615_vm7, %v5940_v8, %v5939_v39  ;;  %v4751_v20 = vrot.slane %v1275_v43, 1  ;;  %v1729_v44 = vsel %vm1071_vm11, %v1715_v23, %v4360_v18  ;;  %v1454_v39 = vrot.slane %v4662_v11, 6 }
  0xda   : > { %v1619_v26 = vpop.permute.xlu1 %1618  ;;  %1708 = vrot.lane.b32.xlu0 %v1695_v47, %s3369_s12  ;;  %v5937_v47 = vld [vmem:[#allocation13_spill] sm:$0xff]  ;;  %v4757_v1 = vor.u32 %v691_v56, %v690_v50  ;;  %v1455_v8 = vrot.slane %v4405_v45, 7  ;;  %v5944_v5 = vshrl.u32 %v4426_v49, 16  ;;  %v4766_v43 = vrot.slane %v442_v55, 1 }
  0xdb   : > { %v4770_v18 = vcombine.low %v4656_v51, %v4738_v42  ;;  %v4775_v50 = vor.u32 %v1380_v2, %v1377_v10  ;;  %v1278_v55 = vsel %vm401_vm1, %v1273_v0, %v4751_v20 }
  0xdc   : > { %1626 = vrot.lane.b32.xlu1 %v5937_v47, %s3373_s7  ;;  %v4733_v37 = vpop.permute.xlu0 %1551  ;;  %v655_v47 = vsel %vm615_vm7, %v5942_v13, %v5941_v36  ;;  %v1745_v36 = vsel %vm1086_vm13, %v1731_v40, %v4330_v30  ;;  %v440_v58 = vor.u32 %v5944_v5, %v4540_v53  ;;  %v5811_v30 = vrot.slane %v4668_v25, 1 }
  0xdd   : > { %5938 = vst [vmem:[#allocation4_spill] sm:$0xff] %v4733_v37  ;;  %v5943_v37 = vld [vmem:[#allocation11_spill] sm:$0xff]  ;;  %v1759_v23 = vsel %vm1101_vm14, %v1745_v36, %v4473_v59  ;;  %v1416_v40 = vrot.slane %v4381_v46, 6  ;;  %v1743_v53 = vsel %vm1086_vm13, %v1729_v44, %v4318_v6  ;;  %v5817_v59 = vrot.slane %v4132_v57, 1  ;;  %v2969_v44 = vld [vmem:[%s3451_s9 + $0xd0] sm:$0xf] }
  0xde   : > { %v1671_v32 = vpop.permute.xlu1 %1670  ;;  %1017 = vrot.lane.b32.xlu0 %v5943_v37, %s3372_s15  ;;  %v1773_v51 = vsel %vm1116_vm15, %v1759_v23, %v4580_v48  ;;  %v1757_v56 = vsel %vm1101_vm14, %v1743_v53, %v4490_v7  ;;  %v693_v6 = vsel %vm674_vm9, %v4497_v14, %v4757_v1  ;;  %v4796_v48 = vor.u32 %v1455_v8, %v1454_v39 }
  0xdf   : > { %v1787_v2 = vsel %vm1131_vm6, %v1773_v51, %v4636_v41  ;;  %v1771_v0 = vsel %vm1116_vm15, %v1757_v56, %v4545_v17  ;;  %v5810_v7 = vrot.slane %v4770_v18, 1  ;;  %v581_v41 = vshrl.u32 %v4770_v18, 16 }
  0xe0   : > { %1048 = vrot.lane.b32.xlu1 %v1037_v4, %s3373_s7  ;;  %v1621_v37 = vpop.permute.xlu0 %1620  ;;  %v5945_v13 = vrot.slane %v3638_v24, 3  ;;  %v5947_v14 = vrot.slane %v4096_v28, 3  ;;  %v1785_v17 = vsel %vm1131_vm6, %v1771_v0, %v4648_v21  ;;  %v445_v23 = vsel %vm401_vm1, %v440_v58, %v4766_v43 }
  0xe1   : > { %v1801_v4 = vsel %vm1146_vm8, %v1787_v2, %v1621_v37  ;;  %v1799_v37 = vsel %vm1146_vm8, %v1785_v17, %v1619_v26  ;;  %v1382_v53 = vsel %vm1329_vm2, %v4553_v9, %v4775_v50  ;;  %v5949_v51 = vrot.slane %v4426_v49, 1 }
  0xe2   : > { %v4790_v10 = vpop.permute.xlu1 %660  ;;  %666 = vrot.lane.b32.xlu0 %v655_v47, %s3372_s15  ;;  %v5946_v47 = vrot.slane %v5934_v63, 3  ;;  %v5948_v39 = vmov %v5945_v13  ;;  %v4831_v21 = vcombine.low %v4504_v35, %v2969_v44  ;;  %v1857_v2 = vshll.u32 %v1801_v4, 16 }
  0xe3   : > { %v731_v8 = vsel %vm726_vm12, %v5948_v39, %v5947_v14  ;;  %v482_v56 = vsel %vm471_vm3, %v5949_v51, %v5811_v30  ;;  %v5950_v26 = vrot.slane %v3913_v61, 6  ;;  %v5951_v58 = vrot.slane %v3579_v54, 1  ;;  %v5953_v51 = vld [vmem:[#allocation3_spill] sm:$0xff] }
  0xe4   : > { %v729_v36 = vsel %vm726_vm12, %v5946_v47, %v5945_v13  ;;  %1292 = vrot.lane.b32.xlu1 %v1278_v55, %s3367_s10  ;;  %v4817_v5 = vpop.permute.xlu0 %600  ;;  %v1854_v55 = vshrl.u32 %v1801_v4, 16  ;;  %v4849_v35 = vsel %vm1434_vm4, %v4615_v62, %v4796_v48  ;;  %v4858_v44 = vrot.slane %v581_v41, 1 }
  0xe5   : > { %v1417_v9 = vsel %vm1406_vm0, %v5950_v26, %v1416_v40  ;;  %v4844_v13 = vsel %vm471_vm3, %v5951_v58, %v5817_v59  ;;  %v584_v4 = vshll.u32 %v4770_v18, 16  ;;  %v1163_v47 = vsel %vm1056_vm10, %v729_v36, %v4294_v15 }
  0xe6   : > { %v1043_v0 = vpop.permute.xlu1 %1042  ;;  %718 = vrot.lane.b32.xlu0 %v693_v6, %s3373_s7  ;;  %v5952_v6 = vrot.slane %v4589_v19, 1  ;;  %v1847_v14 = vshrl.u32 %v1799_v37, 16  ;;  %v1850_v39 = vshll.u32 %v1799_v37, 16  ;;  %v5813_v17 = vshrl.u32 %v4641_v16, 16  ;;  %v5954_v37 = vld [vmem:[#allocation14_spill] sm:$0xff] }
  0xe7   : > { %v1058_v26 = vsel %vm1056_vm10, %v5953_v51, %v4383_v22  ;;  %v1719_v41 = vsel %vm1056_vm10, %v3527_v29, %v4407_v31  ;;  %v1183_v58 = vsel %vm1071_vm11, %v1163_v47, %v4430_v3  ;;  %v5812_v15 = vshll.u32 %v4831_v21, 16 }
  0xe8   : > { %v4856_v61 = vsel %vm471_vm3, %v5952_v6, %v5810_v7  ;;  %1402 = vrot.lane.b32.xlu1 %v1382_v53, %s3369_s12  ;;  %v984_v62 = vpop.permute.xlu0 %983  ;;  %v1197_v36 = vsel %vm1086_vm13, %v1183_v58, %v4465_v12  ;;  %v1820_v53 = vsel %vm1056_vm10, %v5954_v37, %v1671_v32  ;;  %v1856_v6 = vrot.slane %v1854_v55, 2  ;;  %v5955_v58 = vld [vmem:[#allocation30_spill] sm:$0xff] }
  0xe9   : > { %v1859_v7 = vrot.slane %v1857_v2, 3  ;;  %v1073_v29 = vsel %vm1071_vm11, %v1058_v26, %v4444_v34  ;;  %v1211_v31 = vsel %vm1101_vm14, %v1197_v36, %v4522_v52  ;;  %v2053_v3 = vshll.u32 %v4714_v60, 16  ;;  %v5956_v26 = vld [vmem:[#allocation8_spill] sm:$0xff] }
  0xea   : > { %v1705_v30 = vpop.permute.xlu1 %1704  ;;  %781 = vrot.lane.b32.xlu0 %v3579_v54, %s3367_s10  ;;  %v1849_v12 = vrot.slane %v1847_v14, 2  ;;  %v1852_v47 = vrot.slane %v1850_v39, 3  ;;  %v1166_v2 = vsel %vm1056_vm10, %v731_v8, %v4436_v33  ;;  %v1733_v34 = vsel %vm1071_vm11, %v1719_v41, %v5955_v58  ;;  %v5957_v14 = vld [vmem:[#allocation47_spill] sm:$0xff]  ;;  %v5958_v33 = vld [vmem:[#allocation36_spill] sm:$0xff]  ;;  %v5959_v41 = vld [vmem:[#allocation37_spill] sm:$0xff] }
  0xeb   : > { %v1838_v22 = vsel %vm1071_vm11, %v1820_v53, %v1705_v30  ;;  %v1088_v52 = vsel %vm1086_vm13, %v1073_v29, %v5956_v26  ;;  %v1225_v30 = vsel %vm1116_vm15, %v1211_v31, %v4632_v38  ;;  %v4898_v36 = vor.u32 %v1859_v7, %v1856_v6  ;;  %v5960_v38 = vld [vmem:[#allocation7_spill] sm:$0xff] }
  0xec   : > { %v1885_v51 = vshrl.u32 %v1838_v22, 16  ;;  %v1888_v32 = vshll.u32 %v1838_v22, 16  ;;  %850 = vrot.lane.b32.xlu1 %v4233_v27, %s3369_s12  ;;  %v1580_v55 = vpop.permute.xlu0 %1579  ;;  %v1239_v39 = vsel %vm1131_vm6, %v1225_v30, %v5957_v14  ;;  %v1185_v8 = vsel %vm1071_vm11, %v1166_v2, %v5958_v33  ;;  %v5961_v26 = vld [vmem:[#allocation43_spill] sm:$0xff]  ;;  %v5963_v30 = vld [vmem:[#allocation6_spill] sm:$0xff] }
  0xed   : > { %v1747_v22 = vsel %vm1086_vm13, %v1733_v34, %v5959_v41  ;;  %v1253_v29 = vsel %vm1146_vm8, %v1239_v39, %v1043_v0  ;;  %v2055_v58 = vrot.slane %v2053_v3, 1  ;;  %v1103_v31 = vsel %vm1101_vm14, %v1088_v52, %v5960_v38  ;;  %v5964_v0 = vld [vmem:[#allocation4_spill] sm:$0xff] }
  0xee   : > { %v1887_v37 = vrot.slane %v1885_v51, 2  ;;  %v1890_v27 = vrot.slane %v1888_v32, 3  ;;  %v713_v53 = vpop.permute.xlu1 %712  ;;  %465 = vrot.lane.b32.xlu0 %v445_v23, %s3367_s10  ;;  %v1761_v7 = vsel %vm1101_vm14, %v1747_v22, %v5961_v26  ;;  %v1853_v6 = vor.u32 %v1852_v47, %v1849_v12  ;;  %v5962_v32 = vld [vmem:[#allocation42_spill] sm:$0xff] }
  0xef   : > { %v1199_v2 = vsel %vm1086_vm13, %v1185_v8, %v5962_v32  ;;  %v1118_v34 = vsel %vm1116_vm15, %v1103_v31, %v5963_v30  ;;  %v1775_v3 = vsel %vm1116_vm15, %v1761_v7, %v5964_v0  ;;  %v2051_v52 = vshrl.u32 %v4714_v60, 16  ;;  %v5967_v32 = vld [vmem:[#allocation35_spill] sm:$0xff] }
  0xf0   : > { %v4910_v51 = vor.u32 %v1890_v27, %v1887_v37  ;;  %493 = vrot.lane.b32.xlu1 %v482_v56, %s3369_s12  ;;  %v632_v23 = vpop.permute.xlu0 %631  ;;  %v2030_v14 = vshll.u32 %v1253_v29, 16  ;;  %v1789_v39 = vsel %vm1131_vm6, %v1775_v3, %v1580_v55  ;;  %v5965_v56 = vld [vmem:[#allocation46_spill] sm:$0xff]  ;;  %v1861_v37 = vsel %vm674_vm9, %v1853_v6, %v4898_v36  ;;  %v5966_v27 = vld [vmem:[#allocation12_spill] sm:$0xff] }
  0xf1   : > { %v1213_v33 = vsel %vm1101_vm14, %v1199_v2, %v5966_v27  ;;  %v2056_v60 = vor.u32 %v2055_v58, %v2051_v52  ;;  %v1133_v55 = vsel %vm1131_vm6, %v1118_v34, %v4790_v10  ;;  %v2041_v58 = vshll.u32 %v1861_v37, 16  ;;  %v5970_v27 = vld [vmem:[#allocation9_spill] sm:$0xff] }
  0xf2   : > { %v1623_v12 = vpop.permute.xlu1 %1622  ;;  %1430 = vrot.lane.b32.xlu0 %v1417_v9, %s3368_s11  ;;  %v4925_v47 = vsel %vm674_vm9, %v5965_v56, %v4910_v51  ;;  %v1227_v9 = vsel %vm1116_vm15, %v1213_v33, %v984_v62  ;;  %v1148_v26 = vsel %vm1146_vm8, %v1133_v55, %v713_v53  ;;  %v1060_v2 = vsel %vm1056_vm10, %v5934_v63, %v5967_v32 }
  0xf3   : > { %v1803_v8 = vsel %vm1146_vm8, %v1789_v39, %v1623_v12  ;;  %v2058_v41 = vshll.u32 %v4925_v47, 16  ;;  %v2032_v10 = vrot.slane %v2030_v14, 1  ;;  %v586_v52 = vrot.slane %v584_v4, 2  ;;  %v5971_v4 = vld [vmem:[#allocation5_spill] sm:$0xff] }
  0xf4   : > { %v1877_v22 = vshrl.u32 %v1803_v8, 16  ;;  %v1880_v38 = vshll.u32 %v1803_v8, 16  ;;  %1472 = vrot.lane.b32.xlu1 %v4849_v35, %s3370_s13  ;;  %v1014_v31 = vpop.permute.xlu0 %1013  ;;  %v5968_v35 = vld [vmem:[#allocation41_spill] sm:$0xff]  ;;  %v2028_v63 = vshrl.u32 %v1253_v29, 16  ;;  %v2020_v14 = vshll.u32 %v1148_v26, 16 }
  0xf5   : > { %v1241_v7 = vsel %vm1131_vm6, %v1227_v9, %v1014_v31  ;;  %v4940_v6 = vrot.slane %v2058_v41, 1  ;;  %v1075_v0 = vsel %vm1071_vm11, %v1060_v2, %v5968_v35  ;;  %v2043_v8 = vrot.slane %v2041_v58, 1 }
  0xf6   : > { %v1879_v30 = vrot.slane %v1877_v22, 2  ;;  %v1882_v62 = vrot.slane %v1880_v38, 3  ;;  %v1045_v34 = vpop.permute.xlu1 %1044  ;;  %877 = vrot.lane.b32.xlu0 %v4844_v13, %s3368_s11  ;;  %v5969_v13 = vld [vmem:[#allocation17_spill] sm:$0xff]  ;;  %v1090_v33 = vsel %vm1086_vm13, %v1075_v0, %v5970_v27  ;;  %v1696_v29 = vor.u32 %v5971_v4, %v5813_v17  ;;  %v5972_v0 = vld [vmem:[#allocation20_spill] sm:$0xff] }
  0xf7   : > { %v4950_v53 = vsel %vm1146_vm8, %v1241_v7, %v1045_v34  ;;  %v2061_v3 = vsel %vm401_vm1, %v2056_v60, %v4940_v6  ;;  %v1105_v60 = vsel %vm1101_vm14, %v1090_v33, %v4817_v5  ;;  %v2033_v9 = vor.u32 %v2032_v10, %v2028_v63  ;;  %v4981_v38 = vld [vmem:[%s3451_s9 + $0x38] sm:$0xf] }
  0xf8   : > { %v4956_v39 = vor.u32 %v1882_v62, %v1879_v30  ;;  %v2034_v12 = vshll.u32 %v4950_v53, 16  ;;  %913 = vrot.lane.b32.xlu1 %v5969_v13, %s3370_s13  ;;  %3049 = vmatprep.mubr.msk.bf16.mxu1 %vm1086_vm13, %v2061_v3  ;;  %v663_v56 = vpop.permute.xlu0 %662  ;;  %v1120_v31 = vsel %vm1116_vm15, %v1105_v60, %v632_v23  ;;  %v2039_v7 = vshrl.u32 %v1861_v37, 16  ;;  %v5974_v13 = vld [vmem:[#allocation21_spill] sm:$0xff] }
  0xf9   : > { %v4986_v58 = vor.u32 %v586_v52, %v4858_v44  ;;  %v2022_v32 = vrot.slane %v2020_v14, 1  ;;  %v1135_v2 = vsel %vm1131_vm6, %v1120_v31, %v663_v56  ;;  %v4995_v10 = vrot.slane %v5812_v15, 1  ;;  %v5973_v52 = vld [vmem:[#allocation44_spill] sm:$0xff] }
  0xfa   : > { %v4969_v41 = vrot.slane %v2034_v12, 1  ;;  %v4971_v55 = vpop.permute.xlu1 %1288  ;;  %529 = vrot.lane.b32.xlu0 %v4856_v61, %s3368_s11  ;;  %v4978_v22 = vsel %vm674_vm9, %v4898_v36, %v4956_v39  ;;  %v2044_v44 = vor.u32 %v2043_v8, %v2039_v7  ;;  %v5004_v30 = vcombine.low %v4738_v42, %v4981_v38 }
  0xfb   : > { %v2046_v5 = vshll.u32 %v4978_v22, 16  ;;  %v2018_v62 = vshrl.u32 %v1148_v26, 16  ;;  %v588_v63 = vsel %vm535_vm5, %v5973_v52, %v4986_v58  ;;  %v1698_v56 = vsel %vm401_vm1, %v1696_v29, %v4995_v10 }
  0xfc   : > { %1676 = vrot.lane.b32.xlu1 %v4641_v16, %s3367_s10  ;;  %v715_v61 = vpop.permute.xlu0 %714  ;;  %v2037_v36 = vsel %vm401_vm1, %v2033_v9, %v4969_v41  ;;  %v695_v27 = vshrl.u32 %v5004_v30, 16  ;;  %v698_v33 = vshll.u32 %v5004_v30, 16  ;;  %v5815_v60 = vrot.slane %v4770_v18, 2 }
  0xfd   : > { %v4998_v23 = vsel %vm1146_vm8, %v1135_v2, %v715_v61  ;;  %2460 = vmatprep.mubr.bf16.mxu0 %v2037_v36  ;;  %v5000_v37 = vrot.slane %v2046_v5, 1  ;;  %v2023_v14 = vor.u32 %v2022_v32, %v2018_v62  ;;  %v5814_v29 = vrot.slane %v5004_v30, 2  ;;  %v5975_v32 = vld [vmem:[#allocation19_spill] sm:$0xff]  ;;  %v5978_v62 = vld [vmem:[#allocation22_spill] sm:$0xff] }
  0xfe   : > { %v2024_v34 = vshll.u32 %v4998_v23, 16  ;;  %v5007_v35 = vpop.permute.xlu1 %1398  ;;  %1557 = vrot.lane.b32.xlu0 %v5972_v0, %s3371_s14  ;;  %v697_v31 = vrot.slane %v695_v27, 2  ;;  %v700_v7 = vrot.slane %v698_v33, 3  ;;  %v5976_v2 = vrot.slane %v4589_v19, 2  ;;  %v5977_v36 = vld [vmem:[#allocation15_spill] sm:$0xff] }
  0xff   : > { %v2049_v3 = vsel %vm401_vm1, %v2044_v44, %v5000_v37  ;;  %v3010_v44 = vcombine.low %v5977_v36, %v5977_v36  ;;  %v5979_v0 = vrot.slane %v4668_v25, 2  ;;  %v5060_v19 = vcombine.low %v4738_v42, %v4738_v42 }
 0x100   : > { %v5016_v12 = vrot.slane %v2024_v34, 1  ;;  %989 = vrot.lane.b32.xlu1 %v5974_v13, %s3371_s14  ;;  %2549 = vmatmul.mubr.bf16.vlgmr.msra.gmra.mrb[0].mxu1 %v2049_v3  ;;  %v5020_v26 = vpop.permute.xlu0 %777  ;;  %v626_v61 = vsel %vm615_vm7, %v5976_v2, %v5815_v60  ;;  %v5056_v52 = vor.u32 %v700_v7, %v697_v31  ;;  %v5981_v7 = vld [vmem:[#allocation23_spill] sm:$0xff] }
 0x101   : > { %v657_v3 = vsel %vm615_vm7, %v5979_v0, %v5814_v29  ;;  %v1387_v27 = vshll.u32 %v3010_v44, 16  ;;  %v450_v31 = vshll.u32 %v5060_v19, 16  ;;  %v5823_v16 = vrot.slane %v5060_v19, 1 }
 0x102   : > { %v5026_v8 = vpop.permute.xlu1 %846  ;;  %606 = vrot.lane.b32.xlu0 %v588_v63, %s3370_s13  ;;  %v2027_v4 = vsel %vm401_vm1, %v2023_v14, %v5016_v12  ;;  %v5980_v14 = vld [vmem:[#allocation33_spill] sm:$0xff] }
 0x103   : > { %2461 = vmatmul.mubr.bf16.vlgmr.msra.gmra.mrb[0].mxu0 %v2027_v4  ;;  %v5816_v13 = vrot.slane %v5980_v14, 2  ;;  %v702_v4 = vsel %vm674_vm9, %v4757_v1, %v5056_v52  ;;  %v1389_v0 = vrot.slane %v1387_v27, 6  ;;  %v5087_v17 = vrot.slane %v450_v31, 1 }
 0x104   : > { %1710 = vrot.lane.b32.xlu1 %v1698_v56, %s3369_s12  ;;  %v5033_v9 = vpop.permute.xlu0 %461  ;;  %v1384_v56 = vshrl.u32 %v3010_v44, 16 }
 0x106   : > { %v5036_v5 = vpop.permute.xlu1 %489  ;;  %1585 = vrot.lane.b32.xlu0 %v5975_v32, %s3372_s15  ;;  %v5982_v32 = vld [vmem:[#allocation10_spill] sm:$0xff]  ;;  %v1458_v31 = vrot.slane %v1384_v56, 6 }
 0x107   : > { %v1279_v2 = vshrl.u32 %v5982_v32, 16 }
 0x108   : > { %1019 = vrot.lane.b32.xlu1 %v5978_v62, %s3372_s15  ;;  %v5049_v34 = vpop.permute.xlu0 %1426  ;;  %v1386_v62 = vrot.slane %v1384_v56, 5 }
 0x109   : > { %v1281_v29 = vor.u32 %v1279_v2, %v4751_v20  ;;  %v1459_v2 = vrot.slane %v1387_v27, 7 }
 0x10a   : > { %v5062_v63 = vpop.permute.xlu1 %1468  ;;  %637 = vrot.lane.b32.xlu0 %v626_v61, %s3371_s14  ;;  %v5983_v61 = vrot.slane %v4132_v57, 2  ;;  %v1390_v60 = vor.u32 %v1389_v0, %v1386_v62  ;;  %v5985_v62 = vld [vmem:[#allocation25_spill] sm:$0xff] }
 0x10b   : > { %v1460_v27 = vor.u32 %v1459_v2, %v1458_v31  ;;  %v5989_v31 = vrot.slane %v4668_v25, 1 }
 0x10c   : > { %668 = vrot.lane.b32.xlu1 %v657_v3, %s3372_s15  ;;  %v5067_v33 = vpop.permute.xlu0 %873  ;;  %v1039_v36 = vsel %vm615_vm7, %v5983_v61, %v5816_v13  ;;  %v5984_v3 = vshrl.u32 %v4668_v25, 16  ;;  %v1418_v13 = vrot.slane %v3010_v44, 6  ;;  %v1391_v20 = vsel %vm1329_vm2, %v4775_v50, %v1390_v60  ;;  %v5986_v44 = vld [vmem:[#allocation26_spill] sm:$0xff] }
 0x10d   : > { %v1721_v60 = vsel %vm1056_vm10, %v3579_v54, %v4971_v55  ;;  %v1062_v54 = vsel %vm1056_vm10, %v3638_v24, %v5033_v9  ;;  %v484_v2 = vsel %vm471_vm3, %v5989_v31, %v5823_v16 }
 0x10e   : > { %v5073_v42 = vpop.permute.xlu1 %909  ;;  %1628 = vrot.lane.b32.xlu0 %v5981_v7, %s3373_s7  ;;  %v448_v15 = vor.u32 %v5984_v3, %v4766_v43  ;;  %v5100_v43 = vcombine.low %v4981_v38, %v4981_v38  ;;  %v5822_v3 = vrot.slane %v5986_v44, 1 }
 0x110   : > { %720 = vrot.lane.b32.xlu1 %v702_v4, %s3373_s7  ;;  %v526_v1 = vpop.permute.xlu0 %525  ;;  %v453_v4 = vsel %vm401_vm1, %v448_v15, %v5087_v17  ;;  %v519_v50 = vrot.slane %v5100_v43, 1  ;;  %v590_v46 = vshrl.u32 %v5100_v43, 16 }
 0x112   : > { %v1673_v7 = vpop.permute.xlu1 %1672  ;;  %1050 = vrot.lane.b32.xlu0 %v1039_v36, %s3373_s7  ;;  %v5821_v36 = vrot.slane %v4426_v49, 3 }
 0x113   : > { %v1823_v0 = vsel %vm1056_vm10, %v5985_v62, %v1673_v7  ;;  %v593_v62 = vshll.u32 %v5100_v43, 16 }
 0x114   : > { %783 = vrot.lane.b32.xlu1 %v4132_v57, %s3367_s10  ;;  %v1554_v61 = vpop.permute.xlu0 %1553 }
 0x115   : > { %v595_v16 = vrot.slane %v593_v62, 2 }
 0x116   : > { %v5095_v59 = vpop.permute.xlu1 %985  ;;  %1294 = vrot.lane.b32.xlu0 %v1281_v29, %s3367_s10  ;;  %v1419_v29 = vsel %vm1406_vm0, %v1416_v40, %v1418_v13  ;;  %v5987_v40 = vrot.slane %v4096_v28, 3  ;;  %vm6009_vm0 = vsmask.f32 256 }
 0x117   : > { %vm6015_vm2 = vmmov %vm6009_vm0 }
 0x118   : > { %467 = vrot.lane.b32.xlu1 %v453_v4, %s3367_s10  ;;  %v603_v15 = vpop.permute.xlu0 %602  ;;  %v733_v13 = vsel %vm726_vm12, %v5987_v40, %v5821_v36  ;;  %v5991_v36 = vld [vmem:[#allocation29_spill] sm:$0xff] }
 0x119   : > { %v1169_v31 = vsel %vm1056_vm10, %v733_v13, %v5020_v26  ;;  %v2084_v26 = vshrl.u32 %v4925_v47, 16 }
 0x11a   : > { %v1707_v45 = vpop.permute.xlu1 %1706  ;;  %1404 = vrot.lane.b32.xlu0 %v1391_v20, %s3369_s12 }
 0x11b   : > { %v1840_v56 = vsel %vm1071_vm11, %v1823_v0, %v1707_v45  ;;  %v5988_v45 = vrot.slane %v4132_v57, 1  ;;  %v5990_v0 = vld [vmem:[#allocation32_spill] sm:$0xff] }
 0x11c   : > { %v1901_v7 = vshrl.u32 %v1840_v56, 16  ;;  %v1904_v4 = vshll.u32 %v1840_v56, 16  ;;  %1432 = vrot.lane.b32.xlu1 %v1419_v29, %s3368_s11  ;;  %v1582_v20 = vpop.permute.xlu0 %1581  ;;  %v5142_v29 = vcombine.low %v5990_v0, %v5990_v0  ;;  %v1735_v56 = vsel %vm1071_vm11, %v1721_v60, %v5007_v35 }
 0x11d   : > { %v868_v55 = vsel %vm471_vm3, %v5988_v45, %v5822_v3  ;;  %v5992_v45 = vrot.slane %v4770_v18, 1  ;;  %v1749_v0 = vsel %vm1086_vm13, %v1735_v56, %v5049_v34  ;;  %v1461_v35 = vsel %vm1434_vm4, %v4796_v48, %v1460_v27 }
 0x11e   : > { %v1903_v24 = vrot.slane %v1901_v7, 2  ;;  %v1906_v9 = vrot.slane %v1904_v4, 3  ;;  %v1016_v40 = vpop.permute.xlu1 %1015  ;;  %852 = vrot.lane.b32.xlu0 %v5991_v36, %s3369_s12  ;;  %v592_v60 = vrot.slane %v590_v46, 1  ;;  %v1077_v7 = vsel %vm1071_vm11, %v1062_v54, %v5036_v5 }
 0x11f   : > { %v520_v3 = vsel %vm471_vm3, %v5992_v45, %v519_v50  ;;  %v973_v45 = vshrl.u32 %v5142_v29, 16  ;;  %v1092_v13 = vsel %vm1086_vm13, %v1077_v7, %v526_v1  ;;  %v903_v34 = vrot.slane %v5142_v29, 1 }
 0x120   : > { %v5161_v36 = vor.u32 %v1906_v9, %v1903_v24  ;;  %879 = vrot.lane.b32.xlu1 %v868_v55, %s3368_s11  ;;  %v634_v4 = vpop.permute.xlu0 %633  ;;  %v976_v48 = vshll.u32 %v5142_v29, 16  ;;  %v1187_v27 = vsel %vm1071_vm11, %v1169_v31, %v5026_v8  ;;  %v1763_v5 = vsel %vm1101_vm14, %v1749_v0, %v5062_v63 }
 0x121   : > { %v1107_v46 = vsel %vm1101_vm14, %v1092_v13, %v603_v15  ;;  %v1201_v1 = vsel %vm1086_vm13, %v1187_v27, %v5067_v33  ;;  %v1777_v62 = vsel %vm1116_vm15, %v1763_v5, %v1554_v61  ;;  %v975_v56 = vrot.slane %v973_v45, 1 }
 0x122   : > { %v665_v54 = vpop.permute.xlu1 %664  ;;  %495 = vrot.lane.b32.xlu0 %v484_v2, %s3369_s12  ;;  %v5178_v47 = vsel %vm674_vm9, %v4910_v51, %v5161_v36  ;;  %v1122_v8 = vsel %vm1116_vm15, %v1107_v46, %v634_v4  ;;  %v1791_v63 = vsel %vm1131_vm6, %v1777_v62, %v1582_v20  ;;  %v5187_v2 = vor.u32 %v595_v16, %v592_v60  ;;  %v326_v16 = vld [vmem:[%s3451_s9 + $0x3c] sm:$0xf] }
 0x123   : > { %v2088_v55 = vshll.u32 %v5178_v47, 16  ;;  %v2086_v51 = vor.u32 %v2084_v26, %v4940_v6  ;;  %v978_v61 = vrot.slane %v976_v48, 2  ;;  %v1215_v9 = vsel %vm1101_vm14, %v1201_v1, %v5073_v42  ;;  %v5993_v42 = vld [vmem:[#allocation16_spill] sm:$0xff] }
 0x124   : > { %531 = vrot.lane.b32.xlu1 %v520_v3, %s3368_s11  ;;  %v1625_v15 = vpop.permute.xlu0 %1624  ;;  %v1137_v31 = vsel %vm1131_vm6, %v1122_v8, %v665_v54  ;;  %v1229_v3 = vsel %vm1116_vm15, %v1215_v9, %v5095_v59  ;;  %v5994_v4 = vrot.slane %v5993_v42, 1  ;;  %v5995_v59 = vld [vmem:[#allocation31_spill] sm:$0xff]  ;;  %v597_v46 = vsel %vm535_vm5, %v4986_v58, %v5187_v2 }
 0x125   : > { %v1805_v24 = vsel %vm1146_vm8, %v1791_v63, %v1625_v15  ;;  %v5191_v33 = vrot.slane %v2088_v55, 1  ;;  %v1243_v26 = vsel %vm1131_vm6, %v1229_v3, %v1016_v40  ;;  %v2984_v40 = vcombine.low %v4981_v38, %v326_v16 }
 0x126   : > { %v1893_v0 = vshrl.u32 %v1805_v24, 16  ;;  %v1896_v20 = vshll.u32 %v1805_v24, 16  ;;  %v717_v7 = vpop.permute.xlu1 %716  ;;  %1474 = vrot.lane.b32.xlu0 %v1461_v35, %s3370_s13  ;;  %v904_v45 = vsel %vm471_vm3, %v5994_v4, %v903_v34  ;;  %v2069_v54 = vshrl.u32 %v4950_v53, 16  ;;  %v327_v24 = vld [vmem:[%s3451_s9 + $0x40] sm:$0xf]  ;;  %vm6017_vm3 = vmmov %vm6009_vm0 }
 0x127   : > { %v5201_v6 = vsel %vm1146_vm8, %v1137_v31, %v717_v7  ;;  %v2091_v60 = vsel %vm401_vm1, %v2086_v51, %v5191_v33  ;;  %v5229_v55 = vor.u32 %v978_v61, %v975_v56  ;;  %v2062_v63 = vshrl.u32 %v4998_v23, 16 }
 0x128   : > { %v1895_v13 = vrot.slane %v1893_v0, 2  ;;  %v1898_v35 = vrot.slane %v1896_v20, 3  ;;  %v2065_v48 = vshll.u32 %v5201_v6, 16  ;;  %1559 = vrot.lane.b32.xlu1 %v5995_v59, %s3371_s14  ;;  %3050 = vmatprep.mubr.msk.bf16.mxu1 %vm1086_vm13, %v2091_v60  ;;  %v1047_v27 = vpop.permute.xlu0 %1046  ;;  %v2071_v58 = vor.u32 %v2069_v54, %v4969_v41  ;;  %v5997_v60 = vld [vmem:[#allocation34_spill] sm:$0xff] }
 0x129   : > { %v5216_v5 = vsel %vm1146_vm8, %v1243_v26, %v1047_v27  ;;  %v2064_v56 = vor.u32 %v2062_v63, %v5016_v12  ;;  %v2076_v61 = vshrl.u32 %v4978_v22, 16  ;;  %v5247_v9 = vrot.slane %v2984_v40, 2  ;;  %v5999_v54 = vld [vmem:[#allocation38_spill] sm:$0xff] }
 0x12a   : > { %v5223_v1 = vor.u32 %v1898_v35, %v1895_v13  ;;  %v2072_v62 = vshll.u32 %v5216_v5, 16  ;;  %v5226_v8 = vpop.permute.xlu1 %779  ;;  %915 = vrot.lane.b32.xlu0 %v904_v45, %s3370_s13  ;;  %v5232_v15 = vrot.slane %v2065_v48, 1  ;;  %v1659_v12 = vshrl.u32 %v4831_v21, 16 }
 0x12b   : > { %v2078_v20 = vor.u32 %v2076_v61, %v5000_v37  ;;  %v5264_v3 = vcombine.low %v326_v16, %v327_v24  ;;  %v5998_v45 = vrot.slane %v4770_v18, 2  ;;  %v1040_v59 = vrot.slane %v5982_v32, 2  ;;  %v6001_v24 = vld [vmem:[#allocation40_spill] sm:$0xff] }
 0x12c   : > { %v5235_v51 = vrot.slane %v2072_v62, 1  ;;  %608 = vrot.lane.b32.xlu1 %v597_v46, %s3370_s13  ;;  %v1291_v53 = vpop.permute.xlu0 %1290  ;;  %v5241_v38 = vsel %vm674_vm9, %v4956_v39, %v5223_v1  ;;  %v5996_v39 = vld [vmem:[#allocation18_spill] sm:$0xff]  ;;  %v2068_v22 = vsel %vm401_vm1, %v2064_v56, %v5232_v15  ;;  %v1699_v37 = vor.u32 %v4995_v10, %v1659_v12 }
 0x12d   : > { %v2080_v23 = vshll.u32 %v5241_v38, 16  ;;  %v980_v0 = vsel %vm535_vm5, %v5996_v39, %v5229_v55  ;;  %v628_v26 = vsel %vm615_vm7, %v5998_v45, %v5247_v9  ;;  %v704_v16 = vshrl.u32 %v5264_v3, 16 }
 0x12e   : > { %v5249_v41 = vpop.permute.xlu1 %463  ;;  %1678 = vrot.lane.b32.xlu0 %v4831_v21, %s3367_s10  ;;  %v2075_v31 = vsel %vm401_vm1, %v2071_v58, %v5235_v51  ;;  %v707_v35 = vshll.u32 %v5264_v3, 16  ;;  %v658_v27 = vrot.slane %v5264_v3, 2  ;;  %v6000_v62 = vrot.slane %v5980_v14, 2 }
 0x12f   : > { %2468 = vmatprep.mubr.bf16.mxu0 %v2075_v31  ;;  %v5262_v7 = vrot.slane %v2080_v23, 1  ;;  %v706_v46 = vrot.slane %v704_v16, 2  ;;  %v6002_v56 = vrot.slane %v5004_v30, 2  ;;  %v839_v39 = vshrl.u32 %v5986_v44, 16 }
 0x130   : > { %1587 = vrot.lane.b32.xlu1 %v5997_v60, %s3372_s15  ;;  %v1401_v42 = vpop.permute.xlu0 %1400  ;;  %2469 = vmatmul.mubr.bf16.gmra.mrb[4].mxu0 %v2068_v22  ;;  %v709_v40 = vrot.slane %v707_v35, 3  ;;  %v1041_v63 = vsel %vm615_vm7, %v6000_v62, %v1040_v59  ;;  %v454_v22 = vshrl.u32 %v5060_v19, 16  ;;  %v6005_v62 = vrot.slane %v4426_v49, 3 }
 0x131   : > { %v2083_v4 = vsel %vm401_vm1, %v2078_v20, %v5262_v7  ;;  %v659_v61 = vsel %vm615_vm7, %v6002_v56, %v658_v27  ;;  %vm3376_vm4 = vmmov 0  }
 0x132   : > { %v1429_v13 = vpop.permute.xlu1 %1428  ;;  %991 = vrot.lane.b32.xlu0 %v980_v0, %s3371_s14  ;;  %2557 = vmatmul.mubr.bf16.gmra.mrb[4].mxu1 %v2083_v4  ;;  %v5300_v23 = vor.u32 %v709_v40, %v706_v46  ;;  %v6003_v4 = vld [vmem:[#allocation27_spill] sm:$0xff]  ;;  %v456_v35 = vor.u32 %v454_v22, %v5087_v17  ;;  %v6004_v40 = vld [vmem:[#allocation28_spill] sm:$0xff]  ;;  %v6006_v17 = vrot.slane %v5986_v44, 1 }
 0x133   : > { %v841_v45 = vor.u32 %v839_v39, %v6003_v4  ;;  %v6007_v39 = vld [vmem:[#allocation24_spill] sm:$0xff] }
 0x134   : > { %639 = vrot.lane.b32.xlu1 %v628_v26, %s3371_s14  ;;  %v849_v48 = vpop.permute.xlu0 %848  ;;  %v711_v20 = vsel %vm674_vm9, %v5056_v52, %v5300_v23  ;;  %v1647_v26 = vrot.slane %v4662_v11, 7  ;;  %v1723_v52 = vsel %vm1056_vm10, %v4132_v57, %v1291_v53  ;;  %v6008_v22 = vrot.slane %v6007_v39, 7 }
 0x136   : > { %v876_v18 = vpop.permute.xlu1 %875  ;;  %1712 = vrot.lane.b32.xlu0 %v1699_v37, %s3369_s12  ;;  %v734_v37 = vrot.slane %v4668_v25, 3 }
 0x138   : > { %1630 = vrot.lane.b32.xlu1 %v5999_v54, %s3373_s7  ;;  %v492_v10 = vpop.permute.xlu0 %491  ;;  %v1648_v54 = vor.u32 %v1647_v26, %v6004_v40 }
 0x13a   : > { %v5291_v58 = vpop.permute.xlu1 %527  ;;  %1021 = vrot.lane.b32.xlu0 %v6001_v24, %s3372_s15  ;;  %v1737_v24 = vsel %vm1071_vm11, %v1723_v52, %v1401_v42 }
 0x13c   : > { %1052 = vrot.lane.b32.xlu1 %v1041_v63, %s3373_s7  ;;  %v1471_v31 = vpop.permute.xlu0 %1470  ;;  %v735_v63 = vsel %vm726_vm12, %v6005_v62, %v734_v37 }
 0x13d   : > { %v1172_v53 = vsel %vm1056_vm10, %v735_v63, %v5226_v8 }
 0x13e   : > { %v1556_v0 = vpop.permute.xlu1 %1555  ;;  %670 = vrot.lane.b32.xlu0 %v659_v61, %s3372_s15  ;;  %v1751_v61 = vsel %vm1086_vm13, %v1737_v24, %v1429_v13  ;;  %v1189_v4 = vsel %vm1071_vm11, %v1172_v53, %v849_v48 }
 0x13f   : > { %v1765_v42 = vsel %vm1101_vm14, %v1751_v61, %v1471_v31  ;;  %v1203_v13 = vsel %vm1086_vm13, %v1189_v4, %v876_v18 }
 0x140   : > { %785 = vrot.lane.b32.xlu1 %v5986_v44, %s3367_s10  ;;  %v912_v60 = vpop.permute.xlu0 %911  ;;  %v1779_v52 = vsel %vm1116_vm15, %v1765_v42, %v1556_v0 }
 0x141   : > { %v1217_v31 = vsel %vm1101_vm14, %v1203_v13, %v912_v60  ;;  %v2106_v13 = vshrl.u32 %v5241_v38, 16 }
 0x142   : > { %v605_v16 = vpop.permute.xlu1 %604  ;;  %722 = vrot.lane.b32.xlu0 %v711_v20, %s3373_s7  ;;  %v1649_v20 = vsel %vm6009_vm0, %v6008_v22, %v1648_v54  ;;  %v2099_v22 = vshrl.u32 %v5216_v5, 16 }
 0x143   : > { %v2108_v38 = vor.u32 %v2106_v13, %v5262_v7 }
 0x144   : > { %854 = vrot.lane.b32.xlu1 %v841_v45, %s3369_s12  ;;  %v1675_v46 = vpop.permute.xlu0 %1674  ;;  %v2101_v42 = vor.u32 %v2099_v22, %v5235_v51 }
 0x145   : > { %v1826_v44 = vsel %vm1056_vm10, %v1649_v20, %v1675_v46 }
 0x146   : > { %v1584_v56 = vpop.permute.xlu1 %1583  ;;  %469 = vrot.lane.b32.xlu0 %v456_v35, %s3367_s10  ;;  %v6010_v35 = vrot.slane %v5060_v19, 1 }
 0x147   : > { %v1793_v40 = vsel %vm1131_vm6, %v1779_v52, %v1584_v56  ;;  %v1064_v56 = vsel %vm1056_vm10, %v4096_v28, %v5249_v41 }
 0x148   : > { %881 = vrot.lane.b32.xlu1 %v6006_v17, %s3368_s11  ;;  %v988_v57 = vpop.permute.xlu0 %987  ;;  %v1079_v43 = vsel %vm1071_vm11, %v1064_v56, %v492_v10  ;;  %v6011_v10 = vld [vmem:[#allocation39_spill] sm:$0xff] }
 0x149   : > { %v1231_v29 = vsel %vm1116_vm15, %v1217_v31, %v988_v57  ;;  %v2092_v31 = vshrl.u32 %v5201_v6, 16 }
 0x14a   : > { %v636_v45 = vpop.permute.xlu1 %635  ;;  %497 = vrot.lane.b32.xlu0 %v6010_v35, %s3369_s12 }
 0x14c   : > { %917 = vrot.lane.b32.xlu1 %v903_v34, %s3370_s13  ;;  %v1709_v8 = vpop.permute.xlu0 %1708 }
 0x14d   : > { %v1842_v48 = vsel %vm1071_vm11, %v1826_v44, %v1709_v8 }
 0x14e   : > { %v1917_v54 = vshrl.u32 %v1842_v48, 16  ;;  %v1920_v62 = vshll.u32 %v1842_v48, 16  ;;  %v1627_v63 = vpop.permute.xlu1 %1626  ;;  %533 = vrot.lane.b32.xlu0 %v519_v50, %s3368_s11 }
 0x14f   : > { %v1807_v34 = vsel %vm1146_vm8, %v1793_v40, %v1627_v63 }
 0x150   : > { %v1919_v18 = vrot.slane %v1917_v54, 2  ;;  %v1922_v46 = vrot.slane %v1920_v62, 3  ;;  %v1909_v0 = vshrl.u32 %v1807_v34, 16  ;;  %v1912_v24 = vshll.u32 %v1807_v34, 16  ;;  %993 = vrot.lane.b32.xlu1 %v5229_v55, %s3371_s14  ;;  %v1018_v60 = vpop.permute.xlu0 %1017 }
 0x151   : > { %v1245_v17 = vsel %vm1131_vm6, %v1231_v29, %v1018_v60  ;;  %v2114_v55 = vshrl.u32 %v5178_v47, 16  ;;  %v2094_v62 = vor.u32 %v2092_v31, %v5232_v15 }
 0x152   : > { %v5364_v50 = vor.u32 %v1922_v46, %v1919_v18  ;;  %v1911_v57 = vrot.slane %v1909_v0, 2  ;;  %v1914_v53 = vrot.slane %v1912_v24, 3  ;;  %v1049_v61 = vpop.permute.xlu1 %1048  ;;  %610 = vrot.lane.b32.xlu0 %v5187_v2, %s3370_s13  ;;  %v1094_v2 = vsel %vm1086_vm13, %v1079_v43, %v5291_v58  ;;  %v3326_v18 = vld [vmem:[%s5738_s3] sm:$0xff]   ;;  %v6012_v24 = vld [vmem:[#allocation45_spill] sm:$0xff]  ;;  %s3196_s13 = smul.u32 13, %s6031_s21 }
 0x153   : > { %v5369_v39 = vsel %vm1146_vm8, %v1245_v17, %v1049_v61  ;;  %v2116_v47 = vor.u32 %v2114_v55, %v5191_v33  ;;  %v1109_v35 = vsel %vm1101_vm14, %v1094_v2, %v605_v16  ;;  %v3375_v46 = vmov 0.0  }
 0x154   : > { %v5373_v28 = vor.u32 %v1914_v53, %v1911_v57  ;;  %v2102_v41 = vshll.u32 %v5369_v39, 16  ;;  %1023 = vrot.lane.b32.xlu1 %v6011_v10, %s3372_s15  ;;  %v667_v20 = vpop.permute.xlu0 %666  ;;  %v5381_v4 = vsel %vm674_vm9, %v5161_v36, %v5364_v50  ;;  %v1124_v58 = vsel %vm1116_vm15, %v1109_v35, %v636_v45  ;;  %3163 = vmatprep.subr.bf16.mxu0 %v3375_v46 }
 0x155   : > { %v2118_v5 = vshll.u32 %v5381_v4, 16  ;;  %v1139_v16 = vsel %vm1131_vm6, %v1124_v58, %v667_v20  ;;  %3193 = vmatprep.subr.bf16.mxu1 %v3375_v46  ;;  %3164 = vmatpush3.bf16.msra.mxu0 %v3326_v18  ;;  %v6013_v60 = vshrl.u32 %v6012_v24, 16  ;;  %v6014_v57 = vshll.u32 %v6012_v24, 16 }
 0x156   : > { %v5389_v44 = vrot.slane %v2102_v41, 1  ;;  %v1293_v8 = vpop.permute.xlu1 %1292  ;;  %641 = vrot.lane.b32.xlu0 %v5247_v9, %s3371_s14  ;;  %v5396_v36 = vsel %vm674_vm9, %v5223_v1, %v5373_v28  ;;  %3194 = vmatpush3.bf16.msra.mxu1 %v3326_v18  ;;  %v736_v10 = vrot.slane %v5004_v30, 3  ;;  %s3197_s14 = smul.u32 104, %s6029_s22 }
 0x157   : > { %v5399_v33 = vrot.slane %v2118_v5, 1  ;;  %v2110_v51 = vshll.u32 %v5396_v36, 16  ;;  %v5439_v56 = vrot.slane %v6013_v60, 7  ;;  %v1725_v5 = vsel %vm1056_vm10, %v5980_v14, %v1293_v8 }
 0x158   : > { %1054 = vrot.lane.b32.xlu1 %v1040_v59, %s3373_s7  ;;  %v719_v9 = vpop.permute.xlu0 %718  ;;  %v2105_v52 = vsel %vm401_vm1, %v2101_v42, %v5389_v44  ;;  %v737_v11 = vsel %vm726_vm12, %v734_v37, %v736_v10 }
 0x159   : > { %v5410_v1 = vsel %vm1146_vm8, %v1139_v16, %v719_v9  ;;  %2476 = vmatprep.mubr.bf16.mxu0 %v2105_v52  ;;  %v2121_v45 = vsel %vm401_vm1, %v2116_v47, %v5399_v33  ;;  %v5415_v48 = vrot.slane %v2110_v51, 1  ;;  %v1656_v53 = vor.u32 %v6014_v57, %v5439_v56 }
 0x15a   : > { %v2095_v40 = vshll.u32 %v5410_v1, 16  ;;  %v1403_v59 = vpop.permute.xlu1 %1402  ;;  %672 = vrot.lane.b32.xlu0 %v658_v27, %s3372_s15  ;;  %3051 = vmatprep.mubr.msk.bf16.mxu1 %vm1086_vm13, %v2121_v45  ;;  %s5649_s15 = sadd.s32 %s3197_s14, %s3196_s13 }
 0x15b   : > { %v2113_v54 = vsel %vm401_vm1, %v2108_v38, %v5415_v48  ;;  %v1657_v22 = vsel %vm6015_vm2, %v1647_v26, %v1656_v53  ;;  %v1739_v51 = vsel %vm1071_vm11, %v1725_v5, %v1403_v59  ;;  %s2936_s19 = sshll.u32 %s5649_s15, 3 }
 0x15c   : > { %v5426_v63 = vrot.slane %v2095_v40, 1  ;;  %2565 = vmatmul.mubr.bf16.gmra.mrb[8].mxu1 %v2113_v54  ;;  %v782_v7 = vpop.permute.xlu0 %781  ;;  %v2144_v40 = vshrl.u32 %v5381_v4, 16  ;;  %s5675_s29 = scalar_lea.vmem %s5741_s6, %s2936_s19 }
 0x15d   : > { %v1175_v14 = vsel %vm1056_vm10, %v737_v11, %v782_v7 }
 0x15e   : > { %v851_v29 = vpop.permute.xlu1 %850  ;;  %724 = vrot.lane.b32.xlu0 %v5300_v23, %s3373_s7  ;;  %v2098_v6 = vsel %vm401_vm1, %v2094_v62, %v5426_v63  ;;  %s2935_s7 = sshll.u32 %s5649_s15, 2 }
 0x15f   : > { %2477 = vmatmul.mubr.bf16.gmra.mrb[8].mxu0 %v2098_v6  ;;  %s5657_s16 = scalar_lea.vmem %s5740_s5, %s2935_s7 }
 0x160   : > { %v466_v27 = vpop.permute.xlu0 %465 }
 0x161   : > { %v1066_v13 = vsel %vm1056_vm10, %v4426_v49, %v466_v27  ;;  %v1191_v49 = vsel %vm1071_vm11, %v1175_v14, %v851_v29 }
 0x162   : > { %v494_v34 = vpop.permute.xlu1 %493 }
 0x163   : > { %v1081_v45 = vsel %vm1071_vm11, %v1066_v13, %v494_v34 }
 0x164   : > { %v1431_v15 = vpop.permute.xlu0 %1430 }
 0x165   : > { %v1753_v8 = vsel %vm1086_vm13, %v1739_v51, %v1431_v15 }
 0x166   : > { %v1473_v0 = vpop.permute.xlu1 %1472 }
 0x167   : > { %v1767_v59 = vsel %vm1101_vm14, %v1753_v8, %v1473_v0  ;;  %v2146_v0 = vor.u32 %v2144_v40, %v5399_v33 }
 0x168   : > { %v878_v23 = vpop.permute.xlu0 %877 }
 0x169   : > { %v1205_v6 = vsel %vm1086_vm13, %v1191_v49, %v878_v23 }
 0x16a   : > { %v914_v17 = vpop.permute.xlu1 %913 }
 0x16c   : > { %v530_v43 = vpop.permute.xlu0 %529 }
 0x16d   : > { %v1096_v31 = vsel %vm1086_vm13, %v1081_v45, %v530_v43 }
 0x16e   : > { %v1677_v61 = vpop.permute.xlu1 %1676 }
 0x16f   : > { %v1829_v20 = vsel %vm1056_vm10, %v1657_v22, %v1677_v61 }
 0x170   : > { %v1558_v55 = vpop.permute.xlu0 %1557 }
 0x171   : > { %v1781_v27 = vsel %vm1116_vm15, %v1767_v59, %v1558_v55 }
 0x172   : > { %v990_v41 = vpop.permute.xlu1 %989 }
 0x174   : > { %v607_v2 = vpop.permute.xlu0 %606 }
 0x175   : > { %v1111_v54 = vsel %vm1101_vm14, %v1096_v31, %v607_v2 }
 0x176   : > { %v1711_v47 = vpop.permute.xlu1 %1710 }
 0x177   : > { %v1844_v42 = vsel %vm1071_vm11, %v1829_v20, %v1711_v47 }
 0x178   : > { %v1933_v35 = vshrl.u32 %v1844_v42, 16  ;;  %v1936_v26 = vshll.u32 %v1844_v42, 16  ;;  %v1586_v58 = vpop.permute.xlu0 %1585 }
 0x179   : > { %v1795_v29 = vsel %vm1131_vm6, %v1781_v27, %v1586_v58 }
 0x17a   : > { %v1935_v16 = vrot.slane %v1933_v35, 2  ;;  %v1938_v9 = vrot.slane %v1936_v26, 3  ;;  %v1020_v52 = vpop.permute.xlu1 %1019  ;;  %v2122_v35 = vshrl.u32 %v5410_v1, 16 }
 0x17c   : > { %v5463_v38 = vor.u32 %v1938_v9, %v1935_v16  ;;  %v638_v37 = vpop.permute.xlu0 %637  ;;  %v2136_v9 = vshrl.u32 %v5396_v36, 16 }
 0x17d   : > { %v1126_v34 = vsel %vm1116_vm15, %v1111_v54, %v638_v37 }
 0x17e   : > { %v669_v62 = vpop.permute.xlu1 %668  ;;  %v5473_v7 = vsel %vm674_vm9, %v5364_v50, %v5463_v38  ;;  %v1219_v50 = vsel %vm1101_vm14, %v1205_v6, %v914_v17  ;;  %v2138_v8 = vor.u32 %v2136_v9, %v5415_v48  ;;  %v1661_v6 = vrot.slane %v1659_v12, 7 }
 0x17f   : > { %v2148_v4 = vshll.u32 %v5473_v7, 16  ;;  %v1141_v60 = vsel %vm1131_vm6, %v1126_v34, %v669_v62  ;;  %v1233_v53 = vsel %vm1116_vm15, %v1219_v50, %v990_v41  ;;  %v2129_v41 = vshrl.u32 %v5369_v39, 16 }
 0x180   : > { %v1629_v18 = vpop.permute.xlu0 %1628  ;;  %v1247_v22 = vsel %vm1131_vm6, %v1233_v53, %v1020_v52  ;;  %v2124_v39 = vor.u32 %v2122_v35, %v5426_v63  ;;  %v738_v48 = vrot.slane %v5264_v3, 3 }
 0x181   : > { %v1809_v15 = vsel %vm1146_vm8, %v1795_v29, %v1629_v18  ;;  %v5482_v24 = vrot.slane %v2148_v4, 1  ;;  %v2131_v58 = vor.u32 %v2129_v41, %v5389_v44  ;;  %v6016_v29 = vshll.u32 %v4831_v21, 16 }
 0x182   : > { %v1925_v23 = vshrl.u32 %v1809_v15, 16  ;;  %v1928_v43 = vshll.u32 %v1809_v15, 16  ;;  %v721_v57 = vpop.permute.xlu1 %720  ;;  %v739_v15 = vsel %vm726_vm12, %v736_v10, %v738_v48 }
 0x183   : > { %v5488_v61 = vsel %vm1146_vm8, %v1141_v60, %v721_v57  ;;  %v2151_v55 = vsel %vm401_vm1, %v2146_v0, %v5482_v24  ;;  %v1664_v18 = vor.u32 %v6016_v29, %v1661_v6 }
 0x184   : > { %v1927_v33 = vrot.slane %v1925_v23, 2  ;;  %v1930_v20 = vrot.slane %v1928_v43, 3  ;;  %v2125_v2 = vshll.u32 %v5488_v61, 16  ;;  %3052 = vmatprep.mubr.msk.bf16.mxu1 %vm1086_vm13, %v2151_v55  ;;  %v1051_v17 = vpop.permute.xlu0 %1050 }
 0x185   : > { %v5496_v47 = vsel %vm1146_vm8, %v1247_v22, %v1051_v17 }
 0x186   : > { %v5499_v5 = vor.u32 %v1930_v20, %v1927_v33  ;;  %v2132_v42 = vshll.u32 %v5496_v47, 16  ;;  %v784_v11 = vpop.permute.xlu1 %783  ;;  %v5503_v26 = vrot.slane %v2125_v2, 1 }
 0x187   : > { %v1178_v60 = vsel %vm1056_vm10, %v739_v15, %v784_v11 }
 0x188   : > { %v5506_v13 = vrot.slane %v2132_v42, 1  ;;  %v1295_v51 = vpop.permute.xlu0 %1294  ;;  %v5511_v16 = vsel %vm674_vm9, %v5373_v28, %v5499_v5  ;;  %v2128_v44 = vsel %vm401_vm1, %v2124_v39, %v5503_v26 }
 0x189   : > { %v2140_v52 = vshll.u32 %v5511_v16, 16  ;;  %v1727_v4 = vsel %vm1056_vm10, %v5982_v32, %v1295_v51  ;;  %v1665_v32 = vsel %vm6017_vm3, %v5439_v56, %v1664_v18  ;;  %v2166_v6 = vshrl.u32 %v5511_v16, 16 }
 0x18a   : > { %v468_v14 = vpop.permute.xlu1 %467  ;;  %v2135_v1 = vsel %vm401_vm1, %v2131_v58, %v5506_v13 }
 0x18b   : > { %2484 = vmatprep.mubr.bf16.mxu0 %v2135_v1  ;;  %v5521_v45 = vrot.slane %v2140_v52, 1  ;;  %v1068_v9 = vsel %vm1056_vm10, %v4668_v25, %v468_v14  ;;  %v2174_v1 = vshrl.u32 %v5473_v7, 16 }
 0x18c   : > { %v1405_v28 = vpop.permute.xlu0 %1404  ;;  %2485 = vmatmul.mubr.bf16.gmra.mrb[12].mxu0 %v2128_v44 }
 0x18d   : > { %v2143_v63 = vsel %vm401_vm1, %v2138_v8, %v5521_v45  ;;  %v1741_v0 = vsel %vm1071_vm11, %v1727_v4, %v1405_v28 }
 0x18e   : > { %v1433_v36 = vpop.permute.xlu1 %1432  ;;  %2573 = vmatmul.mubr.bf16.gmra.mrb[12].mxu1 %v2143_v63 }
 0x18f   : > { %v1755_v23 = vsel %vm1086_vm13, %v1741_v0, %v1433_v36 }
 0x190   : > { %v853_v37 = vpop.permute.xlu0 %852 }
 0x191   : > { %v1193_v21 = vsel %vm1071_vm11, %v1178_v60, %v853_v37 }
 0x192   : > { %v880_v31 = vpop.permute.xlu1 %879 }
 0x193   : > { %v1207_v10 = vsel %vm1086_vm13, %v1193_v21, %v880_v31  ;;  %v2176_v31 = vor.u32 %v2174_v1, %v5482_v24  ;;  %v2152_v21 = vshrl.u32 %v5488_v61, 16 }
 0x194   : > { %v496_v40 = vpop.permute.xlu0 %495 }
 0x195   : > { %v1083_v44 = vsel %vm1071_vm11, %v1068_v9, %v496_v40 }
 0x196   : > { %v532_v49 = vpop.permute.xlu1 %531 }
 0x197   : > { %v1098_v40 = vsel %vm1086_vm13, %v1083_v44, %v532_v49 }
 0x198   : > { %v1475_v59 = vpop.permute.xlu0 %1474 }
 0x199   : > { %v1769_v43 = vsel %vm1101_vm14, %v1755_v23, %v1475_v59  ;;  %v2159_v59 = vshrl.u32 %v5496_v47, 16 }
 0x19a   : > { %v1560_v54 = vpop.permute.xlu1 %1559 }
 0x19b   : > { %v1783_v55 = vsel %vm1116_vm15, %v1769_v43, %v1560_v54  ;;  %v2161_v4 = vor.u32 %v2159_v59, %v5506_v13  ;;  %v2168_v13 = vor.u32 %v2166_v6, %v5521_v45 }
 0x19c   : > { %v916_v62 = vpop.permute.xlu0 %915 }
 0x19d   : > { %v1221_v33 = vsel %vm1101_vm14, %v1207_v10, %v916_v62 }
 0x19e   : > { %v609_v27 = vpop.permute.xlu1 %608 }
 0x19f   : > { %v1113_v29 = vsel %vm1101_vm14, %v1098_v40, %v609_v27 }
 0x1a0   : > { %v1679_v34 = vpop.permute.xlu0 %1678 }
 0x1a1   : > { %v1832_v30 = vsel %vm1056_vm10, %v1665_v32, %v1679_v34 }
 0x1a2   : > { %v1588_v50 = vpop.permute.xlu1 %1587 }
 0x1a3   : > { %v1797_v20 = vsel %vm1131_vm6, %v1783_v55, %v1588_v50 }
 0x1a4   : > { %v992_v12 = vpop.permute.xlu0 %991 }
 0x1a5   : > { %v1235_v41 = vsel %vm1116_vm15, %v1221_v33, %v992_v12 }
 0x1a6   : > { %v640_v57 = vpop.permute.xlu1 %639 }
 0x1a7   : > { %v1128_v15 = vsel %vm1116_vm15, %v1113_v29, %v640_v57 }
 0x1a8   : > { %v1713_v53 = vpop.permute.xlu0 %1712 }
 0x1a9   : > { %v1846_v22 = vsel %vm1071_vm11, %v1832_v30, %v1713_v53  ;;  %v2154_v53 = vor.u32 %v2152_v21, %v5503_v26 }
 0x1aa   : > { %v1949_v2 = vshrl.u32 %v1846_v22, 16  ;;  %v1952_v56 = vshll.u32 %v1846_v22, 16  ;;  %v1631_v17 = vpop.permute.xlu1 %1630 }
 0x1ab   : > { %v1811_v42 = vsel %vm1146_vm8, %v1797_v20, %v1631_v17 }
 0x1ac   : > { %v1951_v11 = vrot.slane %v1949_v2, 2  ;;  %v1954_v35 = vrot.slane %v1952_v56, 3  ;;  %v1941_v58 = vshrl.u32 %v1811_v42, 16  ;;  %v1944_v51 = vshll.u32 %v1811_v42, 16  ;;  %v1022_v39 = vpop.permute.xlu0 %1021 }
 0x1ad   : > { %v1249_v52 = vsel %vm1131_vm6, %v1235_v41, %v1022_v39 }
 0x1ae   : > { %v1955_v8 = vor.u32 %v1954_v35, %v1951_v11  ;;  %v1943_v28 = vrot.slane %v1941_v58, 2  ;;  %v1946_v63 = vrot.slane %v1944_v51, 3  ;;  %v1053_v36 = vpop.permute.xlu1 %1052 }
 0x1af   : > { %v5558_v37 = vsel %vm1146_vm8, %v1249_v52, %v1053_v36 }
 0x1b0   : > { %v1947_v54 = vor.u32 %v1946_v63, %v1943_v28  ;;  %v2162_v25 = vshll.u32 %v5558_v37, 16  ;;  %v671_v14 = vpop.permute.xlu0 %670  ;;  %v1956_v7 = vsel %vm674_vm9, %v5463_v38, %v1955_v8  ;;  %v2208_v34 = vshll.u32 %v1955_v8, 16 }
 0x1b1   : > { %v2178_v62 = vshll.u32 %v1956_v7, 16  ;;  %v2204_v50 = vshrl.u32 %v1956_v7, 16  ;;  %v1143_v49 = vsel %vm1131_vm6, %v1128_v15, %v671_v14  ;;  %v2221_v41 = vshrl.u32 %v1955_v8, 16 }
 0x1b2   : > { %v5569_v24 = vrot.slane %v2162_v25, 1  ;;  %v786_v47 = vpop.permute.xlu1 %785  ;;  %v1948_v18 = vsel %vm674_vm9, %v5499_v5, %v1947_v54  ;;  %v2210_v27 = vrot.slane %v2208_v34, 1  ;;  %v2200_v33 = vshll.u32 %v1947_v54, 16 }
 0x1b3   : > { %v2180_v0 = vrot.slane %v2178_v62, 1  ;;  %v2170_v38 = vshll.u32 %v1948_v18, 16  ;;  %v2196_v22 = vshrl.u32 %v1948_v18, 16  ;;  %v1181_v58 = vsel %vm1056_vm10, %v738_v48, %v786_v47 }
 0x1b4   : > { %v723_v12 = vpop.permute.xlu0 %722  ;;  %v2165_v16 = vsel %vm401_vm1, %v2161_v4, %v5569_v24  ;;  %v2202_v17 = vrot.slane %v2200_v33, 1  ;;  %v2223_v35 = vor.u32 %v2221_v41, %v2210_v27  ;;  %v2218_v52 = vshrl.u32 %v1947_v54, 16 }
 0x1b5   : > { %v5579_v60 = vsel %vm1146_vm8, %v1143_v49, %v723_v12  ;;  %2492 = vmatprep.mubr.bf16.mxu0 %v2165_v16  ;;  %v2181_v5 = vsel %vm401_vm1, %v2176_v31, %v2180_v0  ;;  %v2172_v23 = vrot.slane %v2170_v38, 1  ;;  %v2206_v32 = vor.u32 %v2204_v50, %v2180_v0 }
 0x1b6   : > { %v2155_v43 = vshll.u32 %v5579_v60, 16  ;;  %v855_v57 = vpop.permute.xlu1 %854  ;;  %3053 = vmatprep.mubr.msk.bf16.mxu1 %vm1086_vm13, %v2181_v5  ;;  %v2220_v44 = vor.u32 %v2218_v52, %v2202_v17  ;;  %v2189_v54 = vshrl.u32 %v5558_v37, 16  ;;  %v2182_v18 = vshrl.u32 %v5579_v60, 16 }
 0x1b7   : > { %v2173_v30 = vsel %vm401_vm1, %v2168_v13, %v2172_v23  ;;  %v2211_v45 = vsel %vm401_vm1, %v2206_v32, %v2210_v27  ;;  %v2198_v2 = vor.u32 %v2196_v22, %v2172_v23  ;;  %v1195_v39 = vsel %vm1071_vm11, %v1181_v58, %v855_v57  ;;  %v5619_v23 = vld [vmem:[%s5737_s2] ss:$0 sm:$0xff] }
 0x1b8   : > { %v2157_v10 = vrot.slane %v2155_v43, 1  ;;  %2581 = vmatmul.mubr.bf16.gmra.mrb[16].mxu1 %v2173_v30  ;;  %v470_v55 = vpop.permute.xlu0 %469  ;;  %v2191_v62 = vor.u32 %v2189_v54, %v5569_v24 }
 0x1b9   : > { %3054 = vmatprep.mubr.msk.bf16.mxu1 %vm1086_vm13, %v2211_v45  ;;  %v2203_v11 = vsel %vm401_vm1, %v2198_v2, %v2202_v17  ;;  %v1070_v31 = vsel %vm1056_vm10, %v5060_v19, %v470_v55 }
 0x1ba   : > { %v882_v20 = vpop.permute.xlu1 %881  ;;  %v2158_v61 = vsel %vm401_vm1, %v2154_v53, %v2157_v10  ;;  %v2184_v38 = vor.u32 %v2182_v18, %v2157_v10 }
 0x1bb   : > { %2493 = vmatmul.mubr.bf16.gmra.mrb[16].mxu0 %v2158_v61  ;;  %v1209_v8 = vsel %vm1086_vm13, %v1195_v39, %v882_v20 }
 0x1bc   : > { %v498_v56 = vpop.permute.xlu0 %497 }
 0x1bd   : > { %v1085_v25 = vsel %vm1071_vm11, %v1070_v31, %v498_v56 }
 0x1be   : > { %v918_v42 = vpop.permute.xlu1 %917 }
 0x1bf   : > { %v1223_v28 = vsel %vm1101_vm14, %v1209_v8, %v918_v42 }
 0x1c0   : > { %2589 = vmatmul.mubr.bf16.gmra.mrb[20].mxu1 %v2203_v11  ;;  %v534_v26 = vpop.permute.xlu0 %533 }
 0x1c1   : > { %3055 = vmatprep.mubr.msk.bf16.mxu1 %vm1086_vm13, %v2223_v35  ;;  %v1100_v40 = vsel %vm1086_vm13, %v1085_v25, %v534_v26 }
 0x1c2   : > { %v994_v51 = vpop.permute.xlu1 %993 }
 0x1c3   : > { %v1237_v36 = vsel %vm1116_vm15, %v1223_v28, %v994_v51 }
 0x1c4   : > { %v611_v9 = vpop.permute.xlu0 %610 }
 0x1c5   : > { %v1115_v6 = vsel %vm1101_vm14, %v1100_v40, %v611_v9 }
 0x1c6   : > { %v1024_v1 = vpop.permute.xlu1 %1023 }
 0x1c7   : > { %v1251_v3 = vsel %vm1131_vm6, %v1237_v36, %v1024_v1 }
 0x1c8   : > { %2597 = vmatmul.mubr.bf16.gmra.mrb[24].mxu1 %v2220_v44  ;;  %v642_v63 = vpop.permute.xlu0 %641 }
 0x1c9   : > { %3185 = vmatprep.mubr.msk.bf16.mxu1 %vm3376_vm4, %v3375_v46  ;;  %v1130_v4 = vsel %vm1116_vm15, %v1115_v6, %v642_v63 }
 0x1ca   : > { %v1055_v48 = vpop.permute.xlu1 %1054 }
 0x1cb   : > { %v1265_v59 = vsel %vm1146_vm8, %v1251_v3, %v1055_v48 }
 0x1cc   : > { %v2192_v14 = vshll.u32 %v1265_v59, 16  ;;  %v673_v7 = vpop.permute.xlu0 %672  ;;  %v2215_v50 = vshrl.u32 %v1265_v59, 16 }
 0x1cd   : > { %v1145_v29 = vsel %vm1131_vm6, %v1130_v4, %v673_v7 }
 0x1ce   : > { %v2194_v34 = vrot.slane %v2192_v14, 1 }
 0x1d0   : > { %v725_v19 = vpop.permute.xlu0 %724  ;;  %v2195_v47 = vsel %vm401_vm1, %v2191_v62, %v2194_v34  ;;  %v2217_v5 = vor.u32 %v2215_v50, %v2194_v34 }
 0x1d1   : > { %v1160_v37 = vsel %vm1146_vm8, %v1145_v29, %v725_v19  ;;  %2500 = vmatprep.mubr.bf16.mxu0 %v2195_v47 }
 0x1d2   : > { %v2185_v15 = vshll.u32 %v1160_v37, 16  ;;  %v2212_v45 = vshrl.u32 %v1160_v37, 16 }
 0x1d3   : > { %v2550_v0 = vpop.f32.mrb[0].mxu1 }
 0x1d4   : > { %v2187_v24 = vrot.slane %v2185_v15, 1  ;;  %v2552_v49 = vpop.f32.mrb[1].mxu1 }
 0x1d5   : > { %v2553_v12 = vpop.f32.mrb[2].mxu1 }
 0x1d6   : > { %v2555_v16 = vpop.f32.mrb[3].mxu1  ;;  %v3113_v13 = vpop.f32.mrb[0].mxu0  ;;  %v2188_v27 = vsel %vm401_vm1, %v2184_v38, %v2187_v24  ;;  %v2214_v55 = vor.u32 %v2212_v45, %v2187_v24  ;;  %vm2812_vm1 = vcmask 257024  }
 0x1d7   : > { %v3114_v32 = vpop.f32.mrb[1].mxu0  ;;  %2501 = vmatmul.mubr.bf16.gmra.mrb[20].mxu0 %v2188_v27 }
 0x1d8   : > { %v3115_v60 = vadd.f32 %v3114_v32, %v3113_v13  ;;  %v3116_v21 = vpop.f32.mrb[2].mxu0  ;;  %2508 = vmatprep.mubr.bf16.mxu0 %v2217_v5 }
 0x1d9   : > { %v3117_v43 = vpop.f32.mrb[3].mxu0 }
 0x1da   : > { %v2463_v57 = vadd.f32 %v3115_v60, %v5619_v23  ;;  %v3118_v30 = vadd.f32 %v3117_v43, %v3116_v21 }
 0x1dc   : > { %v2551_v53 = vadd.f32 %v2550_v0, %v2463_v57  ;;  %v2466_v10 = vadd.f32 %v3118_v30, %v5619_v23 }
 0x1de   : > { %v2554_v22 = vadd.f32 %v2553_v12, %v2466_v10  ;;  %v2604_v33 = vmax.f32 %v2551_v53, 0.0 }
 0x1df   : > { %2509 = vmatmul.mubr.bf16.gmra.mrb[24].mxu0 %v2214_v55 }
 0x1e0   : > { %v2605_v20 = vmax.f32 %v2554_v22, 0.0  ;;  %3165 = vmatprep.mubr.msk.bf16.mxu0 %vm3376_vm4, %v3375_v46 }
 0x1e2   : > { %v2617_v61 = vpack.c.bf16 %v2605_v20, %v2604_v33 }
 0x1e7   : > { %3166 = vmatmul.mubr.msk.bf16.vlgmr.msra.gmra.mrb[28].mxu0 %vm1056_vm10, %v2617_v61 }
 0x1e8   : > { %3169 = vmatprep.mubr.msk.bf16.mxu0 %vm3376_vm4, %v3375_v46 }
 0x203   : > { %v3119_v2 = vpop.f32.mrb[4].mxu0 }
 0x204   : > { %v3120_v56 = vpop.f32.mrb[5].mxu0 }
 0x205   : > { %v3121_v17 = vadd.f32 %v3120_v56, %v3119_v2  ;;  %v3122_v41 = vpop.f32.mrb[6].mxu0  ;;  %v2558_v42 = vpop.f32.mrb[4].mxu1 }
 0x206   : > { %v3123_v11 = vpop.f32.mrb[7].mxu0  ;;  %v2560_v35 = vpop.f32.mrb[5].mxu1 }
 0x207   : > { %v2471_v26 = vadd.f32 %v3121_v17, %v5619_v23  ;;  %v3124_v58 = vadd.f32 %v3123_v11, %v3122_v41  ;;  %v2561_v51 = vpop.f32.mrb[6].mxu1 }
 0x208   : > { %v2563_v39 = vpop.f32.mrb[7].mxu1 }
 0x209   : > { %v2559_v9 = vadd.f32 %v2558_v42, %v2471_v26  ;;  %v2474_v52 = vadd.f32 %v3124_v58, %v5619_v23 }
 0x20b   : > { %v2562_v1 = vadd.f32 %v2561_v51, %v2474_v52  ;;  %v2606_v44 = vmax.f32 %v2559_v9, 0.0 }
 0x20d   : > { %v2607_v8 = vmax.f32 %v2562_v1, 0.0 }
 0x20f   : > { %v2618_v28 = vpack.c.bf16 %v2607_v8, %v2606_v44 }
 0x211   : > { %3170 = vmatmul.mubr.msk.bf16.gmra.mrb[32].mxu0 %vm1056_vm10, %v2618_v28 }
 0x212   : > { %3173 = vmatprep.mubr.msk.bf16.mxu0 %vm3376_vm4, %v3375_v46 }
 0x22f   : > { %v2566_v63 = vpop.f32.mrb[8].mxu1 }
 0x230   : > { %v2568_v36 = vpop.f32.mrb[9].mxu1 }
 0x231   : > { %v2569_v3 = vpop.f32.mrb[10].mxu1 }
 0x232   : > { %v2571_v48 = vpop.f32.mrb[11].mxu1  ;;  %v3125_v31 = vpop.f32.mrb[8].mxu0 }
 0x233   : > { %v3126_v59 = vpop.f32.mrb[9].mxu0 }
 0x234   : > { %v3127_v54 = vadd.f32 %v3126_v59, %v3125_v31  ;;  %v3128_v25 = vpop.f32.mrb[10].mxu0 }
 0x235   : > { %v3129_v14 = vpop.f32.mrb[11].mxu0 }
 0x236   : > { %v2479_v7 = vadd.f32 %v3127_v54, %v5619_v23  ;;  %v3130_v40 = vadd.f32 %v3129_v14, %v3128_v25 }
 0x238   : > { %v2567_v62 = vadd.f32 %v2566_v63, %v2479_v7  ;;  %v2482_v6 = vadd.f32 %v3130_v40, %v5619_v23 }
 0x23a   : > { %v2570_v34 = vadd.f32 %v2569_v3, %v2482_v6  ;;  %v2608_v4 = vmax.f32 %v2567_v62, 0.0 }
 0x23c   : > { %v2609_v29 = vmax.f32 %v2570_v34, 0.0 }
 0x23e   : > { %v2619_v19 = vpack.c.bf16 %v2609_v29, %v2608_v4 }
 0x240   : > { %3174 = vmatmul.mubr.msk.bf16.gmra.mrb[36].mxu0 %vm1056_vm10, %v2619_v19  ;;  %v3069_v19 = vld [vmem:[%s5657_s16] sm:$0xff]  }
 0x241   : > { %3177 = vmatprep.mubr.msk.bf16.mxu0 %vm3376_vm4, %v3375_v46 }
 0x25f   : > { %v3131_v47 = vpop.f32.mrb[12].mxu0 }
 0x260   : > { %v3132_v37 = vpop.f32.mrb[13].mxu0 }
 0x261   : > { %v3133_v18 = vadd.f32 %v3132_v37, %v3131_v47  ;;  %v3134_v15 = vpop.f32.mrb[14].mxu0  ;;  %v2574_v0 = vpop.f32.mrb[12].mxu1  ;;  %v5665_v37 = vld [vmem:[%s5739_s4] ss:$0 sm:$0xff] }
 0x262   : > { %v3135_v38 = vpop.f32.mrb[15].mxu0  ;;  %v2576_v50 = vpop.f32.mrb[13].mxu1 }
 0x263   : > { %v2487_v24 = vadd.f32 %v3133_v18, %v5619_v23  ;;  %v3136_v49 = vadd.f32 %v3135_v38, %v3134_v15  ;;  %v2577_v12 = vpop.f32.mrb[14].mxu1  ;;  %v3070_v18 = vunpack.c.l.bf16 %v3069_v19  ;;  %v3071_v50 = vunpack.c.h.bf16 %v3069_v19 }
 0x264   : > { %v2579_v16 = vpop.f32.mrb[15].mxu1 }
 0x265   : > { %v2575_v13 = vadd.f32 %v2574_v0, %v2487_v24  ;;  %v2490_v27 = vadd.f32 %v3136_v49, %v5619_v23 }
 0x267   : > { %v2578_v5 = vadd.f32 %v2577_v12, %v2490_v27  ;;  %v2610_v32 = vmax.f32 %v2575_v13, 0.0 }
 0x269   : > { %v2611_v60 = vmax.f32 %v2578_v5, 0.0 }
 0x26b   : > { %v2620_v21 = vpack.c.bf16 %v2611_v60, %v2610_v32  ;;  %v3092_v32 = vld [vmem:[%s5657_s16 + $0x8] sm:$0xff]  }
 0x26c   : > { %v3074_v60 = vunpack.c.l.bf16 %v3092_v32 }
 0x26d   : > { %3178 = vmatmul.mubr.msk.bf16.gmra.mrb[40].mxu0 %vm1056_vm10, %v2620_v21 }
 0x26e   : > { %3181 = vmatprep.mubr.msk.bf16.mxu0 %vm3376_vm4, %v3375_v46 }
 0x28b   : > { %v2582_v43 = vpop.f32.mrb[16].mxu1 }
 0x28c   : > { %v2584_v57 = vpop.f32.mrb[17].mxu1 }
 0x28d   : > { %v2585_v30 = vpop.f32.mrb[18].mxu1 }
 0x28e   : > { %v2587_v45 = vpop.f32.mrb[19].mxu1  ;;  %v3137_v53 = vpop.f32.mrb[16].mxu0 }
 0x28f   : > { %v3138_v10 = vpop.f32.mrb[17].mxu0 }
 0x290   : > { %v3139_v55 = vadd.f32 %v3138_v10, %v3137_v53  ;;  %v3140_v22 = vpop.f32.mrb[18].mxu0 }
 0x291   : > { %v3141_v33 = vpop.f32.mrb[19].mxu0 }
 0x292   : > { %v2495_v20 = vadd.f32 %v3139_v55, %v5619_v23  ;;  %v3142_v61 = vadd.f32 %v3141_v33, %v3140_v22 }
 0x293   : > { %v2590_v2 = vpop.f32.mrb[20].mxu1 }
 0x294   : > { %v2583_v56 = vadd.f32 %v2582_v43, %v2495_v20  ;;  %v2498_v17 = vadd.f32 %v3142_v61, %v5619_v23  ;;  %v2592_v41 = vpop.f32.mrb[21].mxu1  ;;  %v3093_v61 = vld [vmem:[%s5657_s16 + $0x10] sm:$0xff]  }
 0x295   : > { %v2593_v42 = vpop.f32.mrb[22].mxu1 }
 0x296   : > { %v2586_v11 = vadd.f32 %v2585_v30, %v2498_v17  ;;  %v2595_v35 = vpop.f32.mrb[23].mxu1  ;;  %v2612_v26 = vmax.f32 %v2583_v56, 0.0  ;;  %v3075_v30 = vunpack.c.h.bf16 %v3092_v32 }
 0x298   : > { %v2613_v58 = vmax.f32 %v2586_v11, 0.0 }
 0x29a   : > { %v2621_v51 = vpack.c.bf16 %v2613_v58, %v2612_v26 }
 0x29b   : > { %v2598_v39 = vpop.f32.mrb[24].mxu1 }
 0x29c   : > { %v2600_v9 = vpop.f32.mrb[25].mxu1  ;;  %3182 = vmatmul.mubr.msk.bf16.gmra.mrb[44].mxu0 %vm1056_vm10, %v2621_v51 }
 0x29d   : > { %v2601_v52 = vpop.f32.mrb[26].mxu1 }
 0x29e   : > { %v2602_v1 = vpop.f32.mrb[27].mxu1  ;;  %v3094_v52 = vld [vmem:[%s5657_s16 + $0x18] sm:$0xff]  }
 0x29f   : > { %v3082_v1 = vunpack.c.l.bf16 %v3094_v52 }
 0x2aa   : > { %v3143_v44 = vpop.f32.mrb[20].mxu0 }
 0x2ab   : > { %v3144_v8 = vpop.f32.mrb[21].mxu0 }
 0x2ac   : > { %v3145_v28 = vadd.f32 %v3144_v8, %v3143_v44  ;;  %v3146_v63 = vpop.f32.mrb[22].mxu0 }
 0x2ad   : > { %v3147_v36 = vpop.f32.mrb[23].mxu0 }
 0x2ae   : > { %v2503_v3 = vadd.f32 %v3145_v28, %v5619_v23  ;;  %v3148_v48 = vadd.f32 %v3147_v36, %v3146_v63  ;;  %v3083_v63 = vunpack.c.h.bf16 %v3094_v52 }
 0x2b0   : > { %v2591_v31 = vadd.f32 %v2590_v2, %v2503_v3  ;;  %v2506_v59 = vadd.f32 %v3148_v48, %v5619_v23  ;;  %v3078_v2 = vunpack.c.l.bf16 %v3093_v61 }
 0x2b2   : > { %v2594_v54 = vadd.f32 %v2593_v42, %v2506_v59  ;;  %v3149_v25 = vpop.f32.mrb[24].mxu0  ;;  %v2614_v7 = vmax.f32 %v2591_v31, 0.0  ;;  %v3079_v42 = vunpack.c.h.bf16 %v3093_v61 }
 0x2b3   : > { %v3150_v14 = vpop.f32.mrb[25].mxu0 }
 0x2b4   : > { %v2615_v40 = vmax.f32 %v2594_v54, 0.0  ;;  %v3151_v62 = vadd.f32 %v3150_v14, %v3149_v25  ;;  %v3152_v6 = vpop.f32.mrb[26].mxu0  ;;  %v3095_v14 = vld [vmem:[%s5657_s16 + $0x20] sm:$0xff]  }
 0x2b5   : > { %v3153_v34 = vpop.f32.mrb[27].mxu0 }
 0x2b6   : > { %v2622_v4 = vpack.c.bf16 %v2615_v40, %v2614_v7  ;;  %v2511_v29 = vadd.f32 %v3151_v62, %v5619_v23  ;;  %v3086_v7 = vunpack.c.l.bf16 %v3095_v14  ;;  %v3087_v34 = vunpack.c.h.bf16 %v3095_v14 }
 0x2b8   : > { %v2599_v47 = vadd.f32 %v2598_v39, %v2511_v29  ;;  %3186 = vmatmul.mubr.msk.bf16.vlgmr.msra.gmra.mrb[28].mxu1 %vm1056_vm10, %v2622_v4 }
 0x2b9   : > { %3189 = vmatprep.mubr.msk.bf16.mxu1 %vm3376_vm4, %v3375_v46 }
 0x2ba   : > { %v2616_v15 = vmax.f32 %v2599_v47, 0.0  ;;  %v2694_v0 = vpop.f32.mrb[28].mxu0 }
 0x2bb   : > { %v2695_v38 = vadd.f32 %v5665_v37, %v2694_v0  ;;  %v3167_v23 = vpop.f32.mrb[29].mxu0 }
 0x2bc   : > { %v2697_v24 = vpop.f32.mrb[30].mxu0  ;;  %v2623_v13 = vpack.c.bf16 %v2616_v15, %v2616_v15 }
 0x2bd   : > { %v2774_v49 = vadd.f32 %v3070_v18, %v2695_v38  ;;  %v2698_v12 = vadd.f32 %v5665_v37, %v2697_v24  ;;  %v3168_v16 = vpop.f32.mrb[31].mxu0  ;;  %v3096_v38 = vld [vmem:[%s5657_s16 + $0x28] sm:$0xff]  }
 0x2be   : > { %v3090_v23 = vunpack.c.l.bf16 %v3096_v38 }
 0x2bf   : > { %v2787_v46 = vmax.f32 %v2774_v49, 0.0  ;;  %v2775_v27 = vadd.f32 %v3071_v50, %v2698_v12  ;;  %v3091_v12 = vunpack.c.h.bf16 %v3096_v38 }
 0x2c0   : > { %3190 = vmatmul.mubr.msk.bf16.gmra.mrb[32].mxu1 %vm1056_vm10, %v2623_v13 }
 0x2c1   : > { %2800 = vst.msk [vmem:[%s5675_s29] sm:$0xff] %vm1071_vm11, %v2787_v46  ;;  %v2788_v5 = vmax.f32 %v2775_v27, 0.0 }
 0x2c3   : > { %2801 = vst.msk [vmem:[%s5675_s29 + $0x8] sm:$0xff] %vm1071_vm11, %v2788_v5  ;;  %v2760_v5 = vld [vmem:[%s5657_s16 + $0x30] sm:$0x3] }
 0x2e4   : > { %v2702_v21 = vpop.f32.mrb[32].mxu0 }
 0x2e5   : > { %v2703_v43 = vadd.f32 %v5665_v37, %v2702_v21  ;;  %v3171_v57 = vpop.f32.mrb[33].mxu0 }
 0x2e6   : > { %v2705_v45 = vpop.f32.mrb[34].mxu0 }
 0x2e7   : > { %v2776_v53 = vadd.f32 %v3074_v60, %v2703_v43  ;;  %v2706_v10 = vadd.f32 %v5665_v37, %v2705_v45  ;;  %v3172_v55 = vpop.f32.mrb[35].mxu0  ;;  %v2773_v43 = vunpack.c.l.bf16 %v2760_v5 }
 0x2e9   : > { %v2789_v22 = vmax.f32 %v2776_v53, 0.0  ;;  %v2777_v33 = vadd.f32 %v3075_v30, %v2706_v10 }
 0x2eb   : > { %2802 = vst.msk [vmem:[%s5675_s29 + $0x10] sm:$0xff] %vm1071_vm11, %v2789_v22  ;;  %v2790_v20 = vmax.f32 %v2777_v33, 0.0 }
 0x2ed   : > { %2803 = vst.msk [vmem:[%s5675_s29 + $0x18] sm:$0xff] %vm1071_vm11, %v2790_v20 }
 0x313   : > { %v2710_v56 = vpop.f32.mrb[36].mxu0 }
 0x314   : > { %v2711_v17 = vadd.f32 %v5665_v37, %v2710_v56  ;;  %v3175_v41 = vpop.f32.mrb[37].mxu0 }
 0x315   : > { %v2713_v11 = vpop.f32.mrb[38].mxu0 }
 0x316   : > { %v2778_v35 = vadd.f32 %v3078_v2, %v2711_v17  ;;  %v2714_v26 = vadd.f32 %v5665_v37, %v2713_v11  ;;  %v3176_v58 = vpop.f32.mrb[39].mxu0 }
 0x318   : > { %v2791_v51 = vmax.f32 %v2778_v35, 0.0  ;;  %v2779_v39 = vadd.f32 %v3079_v42, %v2714_v26 }
 0x31a   : > { %2804 = vst.msk [vmem:[%s5675_s29 + $0x20] sm:$0xff] %vm1071_vm11, %v2791_v51  ;;  %v2792_v9 = vmax.f32 %v2779_v39, 0.0 }
 0x31c   : > { %2805 = vst.msk [vmem:[%s5675_s29 + $0x28] sm:$0xff] %vm1071_vm11, %v2792_v9 }
 0x340   : > { %v2718_v44 = vpop.f32.mrb[40].mxu0 }
 0x341   : > { %v2719_v8 = vadd.f32 %v5665_v37, %v2718_v44  ;;  %v3179_v28 = vpop.f32.mrb[41].mxu0 }
 0x342   : > { %v2721_v36 = vpop.f32.mrb[42].mxu0 }
 0x343   : > { %v2780_v3 = vadd.f32 %v3082_v1, %v2719_v8  ;;  %v2722_v48 = vadd.f32 %v5665_v37, %v2721_v36  ;;  %v3180_v31 = vpop.f32.mrb[43].mxu0 }
 0x345   : > { %v2793_v59 = vmax.f32 %v2780_v3, 0.0  ;;  %v2781_v54 = vadd.f32 %v3083_v63, %v2722_v48 }
 0x347   : > { %2806 = vst.msk [vmem:[%s5675_s29 + $0x30] sm:$0xff] %vm1071_vm11, %v2793_v59  ;;  %v2794_v25 = vmax.f32 %v2781_v54, 0.0 }
 0x349   : > { %2807 = vst.msk [vmem:[%s5675_s29 + $0x38] sm:$0xff] %vm1071_vm11, %v2794_v25 }
 0x36f   : > { %v2726_v40 = vpop.f32.mrb[44].mxu0 }
 0x370   : > { %v2727_v62 = vadd.f32 %v5665_v37, %v2726_v40  ;;  %v3183_v6 = vpop.f32.mrb[45].mxu0 }
 0x371   : > { %v2729_v4 = vpop.f32.mrb[46].mxu0 }
 0x372   : > { %v2782_v29 = vadd.f32 %v3086_v7, %v2727_v62  ;;  %v2730_v19 = vadd.f32 %v5665_v37, %v2729_v4  ;;  %v3184_v47 = vpop.f32.mrb[47].mxu0 }
 0x374   : > { %v2795_v18 = vmax.f32 %v2782_v29, 0.0  ;;  %v2783_v15 = vadd.f32 %v3087_v34, %v2730_v19 }
 0x376   : > { %2808 = vst.msk [vmem:[%s5675_s29 + $0x40] sm:$0xff] %vm1071_vm11, %v2795_v18  ;;  %v2796_v0 = vmax.f32 %v2783_v15, 0.0 }
 0x378   : > { %2809 = vst.msk [vmem:[%s5675_s29 + $0x48] sm:$0xff] %vm1071_vm11, %v2796_v0 }
 0x38b   : > { %v2734_v50 = vpop.f32.mrb[28].mxu1 }
 0x38c   : > { %v2735_v24 = vadd.f32 %v5665_v37, %v2734_v50  ;;  %v3187_v49 = vpop.f32.mrb[29].mxu1 }
 0x38d   : > { %v2737_v16 = vpop.f32.mrb[30].mxu1 }
 0x38e   : > { %v2784_v13 = vadd.f32 %v3090_v23, %v2735_v24  ;;  %v2738_v46 = vadd.f32 %v5665_v37, %v2737_v16  ;;  %v3188_v27 = vpop.f32.mrb[31].mxu1 }
 0x390   : > { %v2797_v32 = vmax.f32 %v2784_v13, 0.0  ;;  %v2785_v60 = vadd.f32 %v3091_v12, %v2738_v46 }
 0x392   : > { %2810 = vst.msk [vmem:[%s5675_s29 + $0x50] sm:$0xff] %vm1071_vm11, %v2797_v32  ;;  %v2798_v21 = vmax.f32 %v2785_v60, 0.0 }
 0x393   : > { %v2742_v57 = vpop.f32.mrb[32].mxu1 }
 0x394   : > { %2811 = vst.msk [vmem:[%s5675_s29 + $0x58] sm:$0xff] %vm1071_vm11, %v2798_v21  ;;  %v2743_v30 = vadd.f32 %v5665_v37, %v2742_v57  ;;  %v3191_v45 = vpop.f32.mrb[33].mxu1 }
 0x395   : > { %v2745_v53 = vpop.f32.mrb[34].mxu1 }
 0x396   : > { %v2786_v10 = vadd.f32 %v2773_v43, %v2743_v30  ;;  %v3192_v55 = vpop.f32.mrb[35].mxu1 }
 0x398   : > { %v2799_v22 = vmax.f32 %v2786_v10, 0.0 }
 0x39a   : > { %2813 = vst.msk [vmem:[%s5675_s29 + $0x60] sm:$0xf] %vm2812_vm1, %v2799_v22 }
 0x39b PF: > { %s16_s25 = sadd.s32 1, %s3365_s25   ;;  %s6018_s21 = smov %s3357_s23 }
 0x39c   : > { %p13_p7 = scmp.ge.s32.totalorder %s16_s25, 18   ;;  %s6019_s22 = smov %s3361_s24 }
 0x39d   : > { %s6020_s23 = smov %s6023_s26  ;;  %s6021_s24 = smov %s6027_s27 }
 0x39e   :  { %15 = sbr.rel (!%p13_p7) target bundleno = 3 (0x3), region = 80 }

</bundles_post_ra>
